<compile_context>
chip_gen: v7x
topology: tpu7x:2x2x1
jax: 0.10.0
libtpu: 0.0.40
codegen_flags: <defaults>
</compile_context>

<pallas_src>
import jax
import jax.numpy as jnp
from jax.experimental import pallas as pl
from jax.experimental.pallas import tpu as pltpu


_COMPILER_PARAMS = pltpu.CompilerParams(
    dimension_semantics=("parallel",),
    vmem_limit_bytes=64 * 1024 * 1024,
)


# ----------------------------- Pallas kernels ------------------------------


def _conv_relu_pool_kernel(p00_ref, p01_ref, p10_ref, p11_ref, w_ref, b_ref, o_ref):
    """Fused conv-as-matmul + bias + ReLU + 2x2 max pool.

    Each p*_ref is an im2col patch matrix for one of the 4 pool taps; rows of
    all four correspond to the same pooled output position.
    """
    w = w_ref[...]
    b = b_ref[...]

    def tap(p_ref):
        acc = jnp.dot(p_ref[...], w, preferred_element_type=jnp.float32)
        return jnp.maximum(acc + b, 0.0)

    pooled = jnp.maximum(
        jnp.maximum(tap(p00_ref), tap(p01_ref)),
        jnp.maximum(tap(p10_ref), tap(p11_ref)),
    )
    o_ref[...] = pooled.astype(o_ref.dtype)


def _fc_fused_kernel(x_ref, w1_ref, b1_ref, w2_ref, b2_ref, o_ref):
    """Fused fc1 (+ReLU) -> fc2; the (B, 64) hidden never leaves VMEM."""
    h = jnp.dot(x_ref[...], w1_ref[...], preferred_element_type=jnp.float32)
    h = jnp.maximum(h + b1_ref[...], 0.0).astype(w2_ref.dtype)
    out = jnp.dot(h, w2_ref[...], preferred_element_type=jnp.float32) + b2_ref[...]
    o_ref[...] = out.astype(o_ref.dtype)


# ------------------------------ call wrappers -------------------------------


def _choose_block(m, cap=256):
    """Row-tile size: <= cap, multiple of 8, and >=2 grid tiles when possible."""
    if m <= 8:
        return m
    half = -(-m // 2)                 # cdiv(m, 2)
    half = ((half + 7) // 8) * 8      # round up to sublane multiple
    return min(cap, half)


def conv_relu_pool(taps, w, b):
    """taps: 4 x (M, K) bf16 patch matrices; w: (K, N) bf16; b: (1, N) f32."""
    M, K = taps[0].shape
    N = w.shape[1]
    tm = _choose_block(M)
    grid = (pl.cdiv(M, tm),)
    patch_spec = pl.BlockSpec((tm, K), lambda i: (i, 0))
    return pl.pallas_call(
        _conv_relu_pool_kernel,
        out_shape=jax.ShapeDtypeStruct((M, N), jnp.bfloat16),
        grid=grid,
        in_specs=[patch_spec] * 4 + [
            pl.BlockSpec((K, N), lambda i: (0, 0)),
            pl.BlockSpec((1, N), lambda i: (0, 0)),
        ],
        out_specs=pl.BlockSpec((tm, N), lambda i: (i, 0)),
        compiler_params=_COMPILER_PARAMS,
    )(*taps, w, b)


def fc_fused(x, w1, b1, w2, b2):
    """logits = (relu(x @ w1 + b1)) @ w2 + b2 in a single kernel."""
    M, K1 = x.shape
    H = w1.shape[1]
    N = w2.shape[1]
    tm = _choose_block(M)
    grid = (pl.cdiv(M, tm),)
    return pl.pallas_call(
        _fc_fused_kernel,
        out_shape=jax.ShapeDtypeStruct((M, N), jnp.float32),
        grid=grid,
        in_specs=[
            pl.BlockSpec((tm, K1), lambda i: (i, 0)),
            pl.BlockSpec((K1, H), lambda i: (0, 0)),
            pl.BlockSpec((1, H), lambda i: (0, 0)),
            pl.BlockSpec((H, N), lambda i: (0, 0)),
            pl.BlockSpec((1, N), lambda i: (0, 0)),
        ],
        out_specs=pl.BlockSpec((tm, N), lambda i: (i, 0)),
        compiler_params=_COMPILER_PARAMS,
    )(x, w1, b1, w2, b2)


# ------------------------------- JAX glue -----------------------------------


def _pooled_tap_patches(x_nhwc, k, dh, dw, ph, pw):
    """Patch matrix for pool tap (dh, dw).

    Row r = (b, po, qo) holds the k*k*C input patch of conv output position
    (2*po+dh, 2*qo+dw).  K ordering is (kh, kw, c_in), matching the prepared
    conv weight matrix.  Returns (B*ph*pw, k*k*C).
    """
    B, _, _, C = x_nhwc.shape
    parts = [
        x_nhwc[:, dh + kh: dh + kh + 2 * ph: 2, dw + kw: dw + kw + 2 * pw: 2, :]
        for kh in range(k)
        for kw in range(k)
    ]
    p = jnp.concatenate(parts, axis=-1)      # (B, ph, pw, k*k*C)
    return p.reshape(B * ph * pw, k * k * C)


def init_params(key):
    """Parameters in the PyTorch layouts (Conv: (Cout,Cin,kh,kw); Linear: (out,in))."""
    ks = jax.random.split(key, 8)
    scale = 0.05
    return {
        "conv1_w": scale * jax.random.normal(ks[0], (32, 3, 3, 3), jnp.float32),
        "conv1_b": scale * jax.random.normal(ks[1], (32,), jnp.float32),
        "conv2_w": scale * jax.random.normal(ks[2], (64, 32, 3, 3), jnp.float32),
        "conv2_b": scale * jax.random.normal(ks[3], (64,), jnp.float32),
        "fc1_w": scale * jax.random.normal(ks[4], (64, 64 * 3 * 3 * 4), jnp.float32),
        "fc1_b": scale * jax.random.normal(ks[5], (64,), jnp.float32),
        "fc2_w": scale * jax.random.normal(ks[6], (10, 64), jnp.float32),
        "fc2_b": scale * jax.random.normal(ks[7], (10,), jnp.float32),
    }


def prepare_params(params):
    """One-time weight preprocessing (layout + dtype), hoisted out of forward()."""

    def conv_w(w):  # (Cout, Cin, kh, kw) -> (kh*kw*Cin, Cout), bf16
        cout, cin, kh, kw = w.shape
        return (
            jnp.transpose(w, (2, 3, 1, 0)).reshape(kh * kw * cin, cout)
            .astype(jnp.bfloat16)
        )

    # fc1: PyTorch input index is c*36 + h*6 + w (NCHW flatten); our activations
    # are flattened NHWC (h*384 + w*64 + c), so permute fc1's input axis once.
    fc1_w = params["fc1_w"].reshape(64, 64, 6, 6)        # (out, c, h, w)
    fc1_w = jnp.transpose(fc1_w, (0, 2, 3, 1))           # (out, h, w, c)
    fc1_w = fc1_w.reshape(64, 64 * 6 * 6).T              # (2304, 64)

    return {
        "conv1_w": conv_w(params["conv1_w"]),
        "conv1_b": params["conv1_b"].reshape(1, -1).astype(jnp.float32),
        "conv2_w": conv_w(params["conv2_w"]),
        "conv2_b": params["conv2_b"].reshape(1, -1).astype(jnp.float32),
        "fc1_w": fc1_w.astype(jnp.bfloat16),
        "fc1_b": params["fc1_b"].reshape(1, -1).astype(jnp.float32),
        "fc2_w": params["fc2_w"].T.astype(jnp.bfloat16),
        "fc2_b": params["fc2_b"].reshape(1, -1).astype(jnp.float32),
    }


@jax.jit
def forward(x_nchw, pp):
    B = x_nchw.shape[0]
    # NCHW (PyTorch) -> NHWC, bf16 at the kernel boundary.
    x = jnp.transpose(x_nchw, (0, 2, 3, 1)).astype(jnp.bfloat16)   # (B, 32, 32, 3)

    # conv1 (3->32, k=3) + ReLU + 2x2 pool, fused -> rows (b, po, qo), 15x15
    taps = [_pooled_tap_patches(x, 3, dh, dw, 15, 15) for dh in (0, 1) for dw in (0, 1)]
    y = conv_relu_pool(taps, pp["conv1_w"], pp["conv1_b"])          # (B*225, 32)
    y = y.reshape(B, 15, 15, 32)

    # conv2 (32->64, k=3) + ReLU + 2x2 pool (floor: 13->6), fused -> 6x6
    taps = [_pooled_tap_patches(y, 3, dh, dw, 6, 6) for dh in (0, 1) for dw in (0, 1)]
    y = conv_relu_pool(taps, pp["conv2_w"], pp["conv2_b"])          # (B*36, 64)

    # NHWC flatten; the NCHW-flatten permutation is pre-folded into fc1_w.
    flat = y.reshape(B, 6 * 6 * 64)                                  # (B, 2304)

    # fc1 (+ReLU) and fc2 fused in one kernel.
    return fc_fused(flat, pp["fc1_w"], pp["fc1_b"], pp["fc2_w"], pp["fc2_b"])


if __name__ == "__main__":
    key = jax.random.PRNGKey(0)
    k_params, k_x = jax.random.split(key)
    params = init_params(k_params)
    pp = prepare_params(params)
    # Spatial size must be 32x32 (CIFAR-10) so fc1's 64*6*6=2304 input matches.
    x = jax.random.normal(k_x, (2, 3, 32, 32), jnp.float32)

    out = forward(x, pp)
    out = jax.block_until_ready(out)
    assert out.shape == (2, 10), out.shape
    assert bool(jnp.all(jnp.isfinite(out)))
    print("KERNEL_OK")
</pallas_src>

<mosaic_0001>
module attributes {stable_mosaic.version = 11 : i64} {
  func.func @_conv_relu_pool_kernel(%arg0: i32, %arg1: memref<232x27xbf16, #tpu.memory_space<vmem>>, %arg2: memref<232x27xbf16, #tpu.memory_space<vmem>>, %arg3: memref<232x27xbf16, #tpu.memory_space<vmem>>, %arg4: memref<232x27xbf16, #tpu.memory_space<vmem>>, %arg5: memref<27x32xbf16, #tpu.memory_space<vmem>>, %arg6: memref<1x32xf32, #tpu.memory_space<vmem>>, %arg7: memref<232x32xbf16, #tpu.memory_space<vmem>>) attributes {dimension_semantics = [#tpu.dimension_semantics<parallel>], iteration_bounds = array<i64: 2>, scalar_prefetch = 0 : i64, scratch_operands = 0 : i64, tpu.core_type = #tpu.core_type<tc>, window_params = [{transform_indices = @transform_0, window_bounds = array<i64: 232, 27>}, {transform_indices = @transform_1, window_bounds = array<i64: 232, 27>}, {transform_indices = @transform_2, window_bounds = array<i64: 232, 27>}, {transform_indices = @transform_3, window_bounds = array<i64: 232, 27>}, {pipeline_mode = #tpu.pipeline_mode<synchronous>, transform_indices = @transform_4, window_bounds = array<i64: 27, 32>}, {pipeline_mode = #tpu.pipeline_mode<synchronous>, transform_indices = @transform_5, window_bounds = array<i64: 1, 32>}, {transform_indices = @transform_6, window_bounds = array<i64: 232, 32>}]} {
    %c0 = arith.constant 0 : index
    %c0_0 = arith.constant 0 : index
    %0 = vector.load %arg5[%c0, %c0_0] : memref<27x32xbf16, #tpu.memory_space<vmem>>, vector<27x32xbf16>
    %c0_1 = arith.constant 0 : index
    %c0_2 = arith.constant 0 : index
    %1 = vector.load %arg6[%c0_1, %c0_2] : memref<1x32xf32, #tpu.memory_space<vmem>>, vector<1x32xf32>
    %c0_3 = arith.constant 0 : index
    %c0_4 = arith.constant 0 : index
    %2 = vector.load %arg1[%c0_3, %c0_4] : memref<232x27xbf16, #tpu.memory_space<vmem>>, vector<232x27xbf16>
    %cst = arith.constant dense<0.000000e+00> : vector<232x32xf32>
    %3 = tpu.matmul %2, %0, %cst {dimension_numbers = #tpu.dot_dimension_numbers<[1], [0], [0], [1], [0, 0, 1, 1], [], []>} : vector<232x27xbf16>, vector<27x32xbf16>, vector<232x32xf32> -> vector<232x32xf32>
    %4 = vector.broadcast %1 : vector<1x32xf32> to vector<232x32xf32>
    %5 = arith.addf %3, %4 : vector<232x32xf32>
    %cst_5 = arith.constant 0.000000e+00 : f32
    %6 = vector.broadcast %cst_5 : f32 to vector<232x32xf32>
    %7 = arith.maximumf %5, %6 : vector<232x32xf32>
    %c0_6 = arith.constant 0 : index
    %c0_7 = arith.constant 0 : index
    %8 = vector.load %arg2[%c0_6, %c0_7] : memref<232x27xbf16, #tpu.memory_space<vmem>>, vector<232x27xbf16>
    %cst_8 = arith.constant dense<0.000000e+00> : vector<232x32xf32>
    %9 = tpu.matmul %8, %0, %cst_8 {dimension_numbers = #tpu.dot_dimension_numbers<[1], [0], [0], [1], [0, 0, 1, 1], [], []>} : vector<232x27xbf16>, vector<27x32xbf16>, vector<232x32xf32> -> vector<232x32xf32>
    %10 = vector.broadcast %1 : vector<1x32xf32> to vector<232x32xf32>
    %11 = arith.addf %9, %10 : vector<232x32xf32>
    %cst_9 = arith.constant 0.000000e+00 : f32
    %12 = vector.broadcast %cst_9 : f32 to vector<232x32xf32>
    %13 = arith.maximumf %11, %12 : vector<232x32xf32>
    %14 = arith.maximumf %7, %13 : vector<232x32xf32>
    %c0_10 = arith.constant 0 : index
    %c0_11 = arith.constant 0 : index
    %15 = vector.load %arg3[%c0_10, %c0_11] : memref<232x27xbf16, #tpu.memory_space<vmem>>, vector<232x27xbf16>
    %cst_12 = arith.constant dense<0.000000e+00> : vector<232x32xf32>
    %16 = tpu.matmul %15, %0, %cst_12 {dimension_numbers = #tpu.dot_dimension_numbers<[1], [0], [0], [1], [0, 0, 1, 1], [], []>} : vector<232x27xbf16>, vector<27x32xbf16>, vector<232x32xf32> -> vector<232x32xf32>
    %17 = vector.broadcast %1 : vector<1x32xf32> to vector<232x32xf32>
    %18 = arith.addf %16, %17 : vector<232x32xf32>
    %cst_13 = arith.constant 0.000000e+00 : f32
    %19 = vector.broadcast %cst_13 : f32 to vector<232x32xf32>
    %20 = arith.maximumf %18, %19 : vector<232x32xf32>
    %c0_14 = arith.constant 0 : index
    %c0_15 = arith.constant 0 : index
    %21 = vector.load %arg4[%c0_14, %c0_15] : memref<232x27xbf16, #tpu.memory_space<vmem>>, vector<232x27xbf16>
    %cst_16 = arith.constant dense<0.000000e+00> : vector<232x32xf32>
    %22 = tpu.matmul %21, %0, %cst_16 {dimension_numbers = #tpu.dot_dimension_numbers<[1], [0], [0], [1], [0, 0, 1, 1], [], []>} : vector<232x27xbf16>, vector<27x32xbf16>, vector<232x32xf32> -> vector<232x32xf32>
    %23 = vector.broadcast %1 : vector<1x32xf32> to vector<232x32xf32>
    %24 = arith.addf %22, %23 : vector<232x32xf32>
    %cst_17 = arith.constant 0.000000e+00 : f32
    %25 = vector.broadcast %cst_17 : f32 to vector<232x32xf32>
    %26 = arith.maximumf %24, %25 : vector<232x32xf32>
    %27 = arith.maximumf %20, %26 : vector<232x32xf32>
    %28 = arith.maximumf %14, %27 : vector<232x32xf32>
    %29 = arith.truncf %28 : vector<232x32xf32> to vector<232x32xbf16>
    %c0_18 = arith.constant 0 : index
    %c0_19 = arith.constant 0 : index
    %30 = vector.load %arg7[%c0_18, %c0_19] : memref<232x32xbf16, #tpu.memory_space<vmem>>, vector<232x32xbf16>
    tpu.vector_store %arg7[%c0_18, %c0_19], %29 {strides = array<i32>} : memref<232x32xbf16, #tpu.memory_space<vmem>>, vector<232x32xbf16>,
    return
  }
  func.func @transform_0(%arg0: i32) -> (i32, i32) {
    %c0_i32 = arith.constant 0 : i32
    %c0_i32_0 = arith.constant 0 : i32
    return %arg0, %c0_i32 : i32, i32
  }
  func.func @transform_1(%arg0: i32) -> (i32, i32) {
    %c0_i32 = arith.constant 0 : i32
    %c0_i32_0 = arith.constant 0 : i32
    return %arg0, %c0_i32 : i32, i32
  }
  func.func @transform_2(%arg0: i32) -> (i32, i32) {
    %c0_i32 = arith.constant 0 : i32
    %c0_i32_0 = arith.constant 0 : i32
    return %arg0, %c0_i32 : i32, i32
  }
  func.func @transform_3(%arg0: i32) -> (i32, i32) {
    %c0_i32 = arith.constant 0 : i32
    %c0_i32_0 = arith.constant 0 : i32
    return %arg0, %c0_i32 : i32, i32
  }
  func.func @transform_4(%arg0: i32) -> (i32, i32) {
    %c0_i32 = arith.constant 0 : i32
    %c0_i32_0 = arith.constant 0 : i32
    %c0_i32_1 = arith.constant 0 : i32
    return %c0_i32, %c0_i32_0 : i32, i32
  }
  func.func @transform_5(%arg0: i32) -> (i32, i32) {
    %c0_i32 = arith.constant 0 : i32
    %c0_i32_0 = arith.constant 0 : i32
    %c0_i32_1 = arith.constant 0 : i32
    return %c0_i32, %c0_i32_0 : i32, i32
  }
  func.func @transform_6(%arg0: i32) -> (i32, i32) {
    %c0_i32 = arith.constant 0 : i32
    %c0_i32_0 = arith.constant 0 : i32
    return %arg0, %c0_i32 : i32, i32
  }
}

module attributes {stable_mosaic.version = 11 : i64} {
  func.func @_conv_relu_pool_kernel(%arg0: i32, %arg1: memref<40x288xbf16, #tpu.memory_space<vmem>>, %arg2: memref<40x288xbf16, #tpu.memory_space<vmem>>, %arg3: memref<40x288xbf16, #tpu.memory_space<vmem>>, %arg4: memref<40x288xbf16, #tpu.memory_space<vmem>>, %arg5: memref<288x64xbf16, #tpu.memory_space<vmem>>, %arg6: memref<1x64xf32, #tpu.memory_space<vmem>>, %arg7: memref<40x64xbf16, #tpu.memory_space<vmem>>) attributes {dimension_semantics = [#tpu.dimension_semantics<parallel>], iteration_bounds = array<i64: 2>, scalar_prefetch = 0 : i64, scratch_operands = 0 : i64, tpu.core_type = #tpu.core_type<tc>, window_params = [{transform_indices = @transform_0, window_bounds = array<i64: 40, 288>}, {transform_indices = @transform_1, window_bounds = array<i64: 40, 288>}, {transform_indices = @transform_2, window_bounds = array<i64: 40, 288>}, {transform_indices = @transform_3, window_bounds = array<i64: 40, 288>}, {pipeline_mode = #tpu.pipeline_mode<synchronous>, transform_indices = @transform_4, window_bounds = array<i64: 288, 64>}, {pipeline_mode = #tpu.pipeline_mode<synchronous>, transform_indices = @transform_5, window_bounds = array<i64: 1, 64>}, {transform_indices = @transform_6, window_bounds = array<i64: 40, 64>}]} {
    %c0 = arith.constant 0 : index
    %c0_0 = arith.constant 0 : index
    %0 = vector.load %arg5[%c0, %c0_0] : memref<288x64xbf16, #tpu.memory_space<vmem>>, vector<288x64xbf16>
    %c0_1 = arith.constant 0 : index
    %c0_2 = arith.constant 0 : index
    %1 = vector.load %arg6[%c0_1, %c0_2] : memref<1x64xf32, #tpu.memory_space<vmem>>, vector<1x64xf32>
    %c0_3 = arith.constant 0 : index
    %c0_4 = arith.constant 0 : index
    %2 = vector.load %arg1[%c0_3, %c0_4] : memref<40x288xbf16, #tpu.memory_space<vmem>>, vector<40x288xbf16>
    %cst = arith.constant dense<0.000000e+00> : vector<40x64xf32>
    %3 = tpu.matmul %2, %0, %cst {dimension_numbers = #tpu.dot_dimension_numbers<[1], [0], [0], [1], [0, 0, 1, 1], [], []>} : vector<40x288xbf16>, vector<288x64xbf16>, vector<40x64xf32> -> vector<40x64xf32>
    %4 = vector.broadcast %1 : vector<1x64xf32> to vector<40x64xf32>
    %5 = arith.addf %3, %4 : vector<40x64xf32>
    %cst_5 = arith.constant 0.000000e+00 : f32
    %6 = vector.broadcast %cst_5 : f32 to vector<40x64xf32>
    %7 = arith.maximumf %5, %6 : vector<40x64xf32>
    %c0_6 = arith.constant 0 : index
    %c0_7 = arith.constant 0 : index
    %8 = vector.load %arg2[%c0_6, %c0_7] : memref<40x288xbf16, #tpu.memory_space<vmem>>, vector<40x288xbf16>
    %cst_8 = arith.constant dense<0.000000e+00> : vector<40x64xf32>
    %9 = tpu.matmul %8, %0, %cst_8 {dimension_numbers = #tpu.dot_dimension_numbers<[1], [0], [0], [1], [0, 0, 1, 1], [], []>} : vector<40x288xbf16>, vector<288x64xbf16>, vector<40x64xf32> -> vector<40x64xf32>
    %10 = vector.broadcast %1 : vector<1x64xf32> to vector<40x64xf32>
    %11 = arith.addf %9, %10 : vector<40x64xf32>
    %cst_9 = arith.constant 0.000000e+00 : f32
    %12 = vector.broadcast %cst_9 : f32 to vector<40x64xf32>
    %13 = arith.maximumf %11, %12 : vector<40x64xf32>
    %14 = arith.maximumf %7, %13 : vector<40x64xf32>
    %c0_10 = arith.constant 0 : index
    %c0_11 = arith.constant 0 : index
    %15 = vector.load %arg3[%c0_10, %c0_11] : memref<40x288xbf16, #tpu.memory_space<vmem>>, vector<40x288xbf16>
    %cst_12 = arith.constant dense<0.000000e+00> : vector<40x64xf32>
    %16 = tpu.matmul %15, %0, %cst_12 {dimension_numbers = #tpu.dot_dimension_numbers<[1], [0], [0], [1], [0, 0, 1, 1], [], []>} : vector<40x288xbf16>, vector<288x64xbf16>, vector<40x64xf32> -> vector<40x64xf32>
    %17 = vector.broadcast %1 : vector<1x64xf32> to vector<40x64xf32>
    %18 = arith.addf %16, %17 : vector<40x64xf32>
    %cst_13 = arith.constant 0.000000e+00 : f32
    %19 = vector.broadcast %cst_13 : f32 to vector<40x64xf32>
    %20 = arith.maximumf %18, %19 : vector<40x64xf32>
    %c0_14 = arith.constant 0 : index
    %c0_15 = arith.constant 0 : index
    %21 = vector.load %arg4[%c0_14, %c0_15] : memref<40x288xbf16, #tpu.memory_space<vmem>>, vector<40x288xbf16>
    %cst_16 = arith.constant dense<0.000000e+00> : vector<40x64xf32>
    %22 = tpu.matmul %21, %0, %cst_16 {dimension_numbers = #tpu.dot_dimension_numbers<[1], [0], [0], [1], [0, 0, 1, 1], [], []>} : vector<40x288xbf16>, vector<288x64xbf16>, vector<40x64xf32> -> vector<40x64xf32>
    %23 = vector.broadcast %1 : vector<1x64xf32> to vector<40x64xf32>
    %24 = arith.addf %22, %23 : vector<40x64xf32>
    %cst_17 = arith.constant 0.000000e+00 : f32
    %25 = vector.broadcast %cst_17 : f32 to vector<40x64xf32>
    %26 = arith.maximumf %24, %25 : vector<40x64xf32>
    %27 = arith.maximumf %20, %26 : vector<40x64xf32>
    %28 = arith.maximumf %14, %27 : vector<40x64xf32>
    %29 = arith.truncf %28 : vector<40x64xf32> to vector<40x64xbf16>
    %c0_18 = arith.constant 0 : index
    %c0_19 = arith.constant 0 : index
    %30 = vector.load %arg7[%c0_18, %c0_19] : memref<40x64xbf16, #tpu.memory_space<vmem>>, vector<40x64xbf16>
    tpu.vector_store %arg7[%c0_18, %c0_19], %29 {strides = array<i32>} : memref<40x64xbf16, #tpu.memory_space<vmem>>, vector<40x64xbf16>,
    return
  }
  func.func @transform_0(%arg0: i32) -> (i32, i32) {
    %c0_i32 = arith.constant 0 : i32
    %c0_i32_0 = arith.constant 0 : i32
    return %arg0, %c0_i32 : i32, i32
  }
  func.func @transform_1(%arg0: i32) -> (i32, i32) {
    %c0_i32 = arith.constant 0 : i32
    %c0_i32_0 = arith.constant 0 : i32
    return %arg0, %c0_i32 : i32, i32
  }
  func.func @transform_2(%arg0: i32) -> (i32, i32) {
    %c0_i32 = arith.constant 0 : i32
    %c0_i32_0 = arith.constant 0 : i32
    return %arg0, %c0_i32 : i32, i32
  }
  func.func @transform_3(%arg0: i32) -> (i32, i32) {
    %c0_i32 = arith.constant 0 : i32
    %c0_i32_0 = arith.constant 0 : i32
    return %arg0, %c0_i32 : i32, i32
  }
  func.func @transform_4(%arg0: i32) -> (i32, i32) {
    %c0_i32 = arith.constant 0 : i32
    %c0_i32_0 = arith.constant 0 : i32
    %c0_i32_1 = arith.constant 0 : i32
    return %c0_i32, %c0_i32_0 : i32, i32
  }
  func.func @transform_5(%arg0: i32) -> (i32, i32) {
    %c0_i32 = arith.constant 0 : i32
    %c0_i32_0 = arith.constant 0 : i32
    %c0_i32_1 = arith.constant 0 : i32
    return %c0_i32, %c0_i32_0 : i32, i32
  }
  func.func @transform_6(%arg0: i32) -> (i32, i32) {
    %c0_i32 = arith.constant 0 : i32
    %c0_i32_0 = arith.constant 0 : i32
    return %arg0, %c0_i32 : i32, i32
  }
}

module attributes {stable_mosaic.version = 11 : i64} {
  func.func @_fc_fused_kernel(%arg0: i32, %arg1: memref<2x2304xbf16, #tpu.memory_space<vmem>>, %arg2: memref<2304x64xbf16, #tpu.memory_space<vmem>>, %arg3: memref<1x64xf32, #tpu.memory_space<vmem>>, %arg4: memref<64x10xbf16, #tpu.memory_space<vmem>>, %arg5: memref<1x10xf32, #tpu.memory_space<vmem>>, %arg6: memref<2x10xf32, #tpu.memory_space<vmem>>) attributes {dimension_semantics = [#tpu.dimension_semantics<parallel>], iteration_bounds = array<i64: 1>, scalar_prefetch = 0 : i64, scratch_operands = 0 : i64, tpu.core_type = #tpu.core_type<tc>, window_params = [{transform_indices = @transform_0, window_bounds = array<i64: 2, 2304>}, {pipeline_mode = #tpu.pipeline_mode<synchronous>, transform_indices = @transform_1, window_bounds = array<i64: 2304, 64>}, {pipeline_mode = #tpu.pipeline_mode<synchronous>, transform_indices = @transform_2, window_bounds = array<i64: 1, 64>}, {pipeline_mode = #tpu.pipeline_mode<synchronous>, transform_indices = @transform_3, window_bounds = array<i64: 64, 10>}, {pipeline_mode = #tpu.pipeline_mode<synchronous>, transform_indices = @transform_4, window_bounds = array<i64: 1, 10>}, {transform_indices = @transform_5, window_bounds = array<i64: 2, 10>}]} {
    %c0 = arith.constant 0 : index
    %c0_0 = arith.constant 0 : index
    %0 = vector.load %arg1[%c0, %c0_0] : memref<2x2304xbf16, #tpu.memory_space<vmem>>, vector<2x2304xbf16>
    %c0_1 = arith.constant 0 : index
    %c0_2 = arith.constant 0 : index
    %1 = vector.load %arg2[%c0_1, %c0_2] : memref<2304x64xbf16, #tpu.memory_space<vmem>>, vector<2304x64xbf16>
    %cst = arith.constant dense<0.000000e+00> : vector<2x64xf32>
    %2 = tpu.matmul %0, %1, %cst {dimension_numbers = #tpu.dot_dimension_numbers<[1], [0], [0], [1], [0, 0, 1, 1], [], []>} : vector<2x2304xbf16>, vector<2304x64xbf16>, vector<2x64xf32> -> vector<2x64xf32>
    %c0_3 = arith.constant 0 : index
    %c0_4 = arith.constant 0 : index
    %3 = vector.load %arg3[%c0_3, %c0_4] : memref<1x64xf32, #tpu.memory_space<vmem>>, vector<1x64xf32>
    %4 = vector.broadcast %3 : vector<1x64xf32> to vector<2x64xf32>
    %5 = arith.addf %2, %4 : vector<2x64xf32>
    %cst_5 = arith.constant 0.000000e+00 : f32
    %6 = vector.broadcast %cst_5 : f32 to vector<2x64xf32>
    %7 = arith.maximumf %5, %6 : vector<2x64xf32>
    %8 = arith.truncf %7 : vector<2x64xf32> to vector<2x64xbf16>
    %c0_6 = arith.constant 0 : index
    %c0_7 = arith.constant 0 : index
    %9 = vector.load %arg4[%c0_6, %c0_7] : memref<64x10xbf16, #tpu.memory_space<vmem>>, vector<64x10xbf16>
    %cst_8 = arith.constant dense<0.000000e+00> : vector<2x10xf32>
    %10 = tpu.matmul %8, %9, %cst_8 {dimension_numbers = #tpu.dot_dimension_numbers<[1], [0], [0], [1], [0, 0, 1, 1], [], []>} : vector<2x64xbf16>, vector<64x10xbf16>, vector<2x10xf32> -> vector<2x10xf32>
    %c0_9 = arith.constant 0 : index
    %c0_10 = arith.constant 0 : index
    %11 = vector.load %arg5[%c0_9, %c0_10] : memref<1x10xf32, #tpu.memory_space<vmem>>, vector<1x10xf32>
    %12 = vector.broadcast %11 : vector<1x10xf32> to vector<2x10xf32>
    %13 = arith.addf %10, %12 : vector<2x10xf32>
    %c0_11 = arith.constant 0 : index
    %c0_12 = arith.constant 0 : index
    %14 = vector.load %arg6[%c0_11, %c0_12] : memref<2x10xf32, #tpu.memory_space<vmem>>, vector<2x10xf32>
    tpu.vector_store %arg6[%c0_11, %c0_12], %13 {strides = array<i32>} : memref<2x10xf32, #tpu.memory_space<vmem>>, vector<2x10xf32>,
    return
  }
  func.func @transform_0(%arg0: i32) -> (i32, i32) {
    %c0_i32 = arith.constant 0 : i32
    %c0_i32_0 = arith.constant 0 : i32
    return %arg0, %c0_i32 : i32, i32
  }
  func.func @transform_1(%arg0: i32) -> (i32, i32) {
    %c0_i32 = arith.constant 0 : i32
    %c0_i32_0 = arith.constant 0 : i32
    %c0_i32_1 = arith.constant 0 : i32
    return %c0_i32, %c0_i32_0 : i32, i32
  }
  func.func @transform_2(%arg0: i32) -> (i32, i32) {
    %c0_i32 = arith.constant 0 : i32
    %c0_i32_0 = arith.constant 0 : i32
    %c0_i32_1 = arith.constant 0 : i32
    return %c0_i32, %c0_i32_0 : i32, i32
  }
  func.func @transform_3(%arg0: i32) -> (i32, i32) {
    %c0_i32 = arith.constant 0 : i32
    %c0_i32_0 = arith.constant 0 : i32
    %c0_i32_1 = arith.constant 0 : i32
    return %c0_i32, %c0_i32_0 : i32, i32
  }
  func.func @transform_4(%arg0: i32) -> (i32, i32) {
    %c0_i32 = arith.constant 0 : i32
    %c0_i32_0 = arith.constant 0 : i32
    %c0_i32_1 = arith.constant 0 : i32
    return %c0_i32, %c0_i32_0 : i32, i32
  }
  func.func @transform_5(%arg0: i32) -> (i32, i32) {
    %c0_i32 = arith.constant 0 : i32
    %c0_i32_0 = arith.constant 0 : i32
    return %arg0, %c0_i32 : i32, i32
  }
}

</mosaic_0001>

<bundles_post_ra>
// kernel: forward.3
= control target key start
LH: loop header
LB: loop body
LE: loop exit
PB: predicated region body
PF: predicated region fallthrough
CT: control target
= control target key end

     0   :  { %11 = vsyncpa [#allocation3], 0  ;;  %s4143_s0 = inlined_call_operand.hbm [shape: bf16[450,27], index: 0, kind: input, shape index: {}]   ;;  %s4144_s1 = inlined_call_operand.hbm [shape: bf16[450,27], index: 1, kind: input, shape index: {}]   ;;  %s4145_s2 = inlined_call_operand.hbm [shape: bf16[450,27], index: 2, kind: input, shape index: {}]   ;;  %s4146_s3 = inlined_call_operand.hbm [shape: bf16[450,27], index: 3, kind: input, shape index: {}]   ;;  %s4147_s4 = inlined_call_operand.hbm [shape: bf16[27,32], index: 4, kind: input, shape index: {}]   ;;  %s4148_s5 = inlined_call_operand.hbm [shape: f32[1,32], index: 5, kind: input, shape index: {}]   ;;  %s4149_s6 = inlined_call_operand.hbm [shape: bf16[450,32], index: 6, kind: output, shape index: {}]  }
   0x1   :  { %13 = vsyncpa [#allocation3 + $0x1], 0 }
   0x2   :  { %14 = vsyncpa [#allocation6], 0 }
   0x3   :  { %16 = vsyncpa [#allocation6 + $0x1], 0 }
   0x4   :  { %17 = vsyncpa [#allocation9], 0 }
   0x5   :  { %19 = vsyncpa [#allocation9 + $0x1], 0 }
   0x6   :  { %20 = vsyncpa [#allocation12], 0 }
   0x7   :  { %21 = vsyncpa [#allocation4], 0 }
   0x8   :  { %23 = vsyncpa [#allocation4 + $0x1], 0  ;;  %s3218_s21 = smov 0   ;;  %s3220_s22 = smov 0  }
   0x9   :  { %s3222_s23 = smov 0   ;;  %s3224_s24 = smov 0  }
   0xa LB: > { %s3239_s25 = sadd.s32 4294967295, %s3159_s24   ;;  %s2218_s26 = sadd.s32 4294967294, %s3159_s24   ;;  %s3159_s24 = sphi %s3224_s24, %s4175_s24   ;;  %s3155_s23 = sphi %s3222_s23, %s4179_s23   ;;  %s3151_s22 = sphi %s3220_s22, %s4178_s22   ;;  %s3147_s21 = sphi %s3218_s21, %s4177_s21  }
   0xb   : > { %s3243_s27 = sadd.s32 1, %s3159_s24   ;;  %s36_s28 = sadd.s32 1, %s3155_s23 }
   0xc   : > { %4155 = sst [smem:[#allocation20_spill]] %s3243_s27  ;;  %s33_s29 = ssub.s32 %s3159_s24, %s3243_s27 }
   0xd   : > { %p43_p0 = scmp.ne.s32.totalorder %s3155_s23, %s3151_s22  ;;  %p34_p1 = scmp.eq.s32.totalorder %s33_s29, 0 }
   0xe   : > { %p44_p2 = scmp.eq.s32.totalorder %s3159_s24, 0  ;;  %p49_p3 = scmp.ne.s32.totalorder %s3151_s22, %s3147_s21 }
   0xf   : > { %p4150_p4 = scmp.eq.s32.totalorder %s3239_s25, 0  ;;  %p193_p7 = scmp.eq.s32.totalorder %s3239_s25, 1 }
  0x10   : > { %s3255_s30 = scalar_select %p34_p1, %s3155_s23, %s36_s28  }
  0x11   : > { %p3257_p5 = por %p44_p2, %p43_p0  ;;  %p3263_p6 = por %p4150_p4, %p49_p3 }
  0x12   : > { %4156 = sst [smem:[#allocation21_spill]] %s3255_s30  ;;  %p199_p8 = scmp.eq.s32.totalorder %s2218_s26, 1 }
  0x13   : > { %s4157_s7 = scalar_select %p3257_p5, 1, 0 }
  0x14   : > { %s4158_s8 = scalar_select %p3263_p6, 1, 0 }
  0x15   : > { %p2219_p9 = scmp.ge.s32.totalorder %s3159_s24, 1  ;;  %p206_p10 = scmp.lt.s32.totalorder %s3159_s24, 3 }
  0x16   : > { %p3270_p11 = por %p193_p7, %p43_p0  ;;  %p3274_p12 = por %p199_p8, %p49_p3 }
  0x17   : > { %p3278_p13 = pnand %p2219_p9, %p206_p10  ;;  %s3161_s12 = smov [#allocation10]  }
  0x18   : > { %s4159_s9 = scalar_select %p3270_p11, 1, 0 }
  0x19   : > { %s4160_s10 = scalar_select %p3274_p12, 1, 0 }
  0x1a   : > { %s4161_s11 = scalar_select %p3278_p13, 1, 0 }
  0x1b   : > { %p2781_p1 = pneg %p3278_p13  ;;  %s218_s13 = sshll.u32 %s3161_s12, 4  ;;  %s219_s13 = int_to_ptr.vmem [resolvable:$true] %s218_s13 }
  0x1c   : > { %s3162_s15 = smov [#allocation11]   ;;  %s2909_s19 = scalar_lea.hbm %s4147_s4, 256 }
  0x1d   : > { %p3286_p2 = pnand %p2781_p1, %p4150_p4  ;;  %s232_s16 = sshll.u32 %s3162_s15, 4  ;;  %s3290_s16 = int_to_ptr.vmem [resolvable:$true] %s232_s16 }
  0x1e   : > { %p2910_p0 = scmp.ne.s32.totalorder %s4147_s4, %s2909_s19  ;;  %p2916_p9 = scmp.lt.u32.totalorder %s2909_s19, %s4147_s4 }
  0x1f   : > { %p2911_p3 = pneg %p3286_p2 }
  0x21   : > { %p2912_p7 = pnand %p2911_p3, %p2910_p0 }
  0x23   : > { %p2913_p8 = pneg %p2912_p7 }
  0x25   : > { %p2918_p10 = pnand %p2916_p9, %p2913_p8 }
  0x27   : > { %2921 = shalt.err (!%p2918_p10)
}
  0x28   : > { %s2922_s12 = scalar_lea.vmem %s219_s13, 256  ;;  %p2930_p11 = scmp.lt.s32.totalorder %s219_s13, %s219_s13 }
  0x29   : > { %p2923_p1 = scmp.ne.s32.totalorder %s219_s13, %s2922_s12  ;;  %p2931_p6 = scmp.lt.s32.totalorder %s2922_s12, %s2922_s12 }
  0x2b   : > { %p2925_p4 = pnand %p2923_p1, %p2911_p3  ;;  %p2932_p13 = por %p2931_p6, %p2930_p11 }
  0x2d   : > { %p2926_p12 = pneg %p2925_p4 }
  0x2f   : > { %p2933_p5 = pnand %p2932_p13, %p2926_p12 }
  0x31   : > { %2936 = shalt.err (!%p2933_p5)
}
  0x32   : > { %s3163_s15 = smov 64   ;;  %s3164_s17 = smov 4  }
  0x33   : > { %2784 = dma.hbm_to_vmem [thread:$0]  (!%p3286_p2), %s4147_s4, 256, %s219_s13, [#allocation9], %s3163_s15, %s3163_s15, %s3164_s17  }
  0x34   : > { %s2937_s28 = scalar_lea.hbm %s4148_s5, 16 }
  0x35   : > { %p2938_p4 = scmp.ne.s32.totalorder %s4148_s5, %s2937_s28  ;;  %p2944_p11 = scmp.lt.u32.totalorder %s2937_s28, %s4148_s5 }
  0x37   : > { %p2940_p5 = pnand %p2938_p4, %p2911_p3 }
  0x39   : > { %p2941_p6 = pneg %p2940_p5 }
  0x3b   : > { %p2946_p12 = pnand %p2944_p11, %p2941_p6 }
  0x3d   : > { %2949 = shalt.err (!%p2946_p12)
}
  0x3e   : > { %s2950_s13 = scalar_lea.vmem %s3290_s16, 16  ;;  %s2957_s30 = scalar_lea.vmem %s3290_s16, 32 }
  0x3f   : > { %p2951_p13 = scmp.ne.s32.totalorder %s3290_s16, %s2950_s13  ;;  %p2958_p8 = scmp.lt.s32.totalorder %s3290_s16, %s3290_s16 }
  0x40   : > { %p2959_p9 = scmp.lt.s32.totalorder %s2957_s30, %s2950_s13 }
  0x41   : > { %p2953_p0 = pnand %p2951_p13, %p2911_p3 }
  0x42   : > { %p2960_p10 = por %p2959_p9, %p2958_p8 }
  0x43   : > { %p2954_p7 = pneg %p2953_p0 }
  0x45   : > { %p2961_p1 = pnand %p2960_p10, %p2954_p7 }
  0x47   : > { %2964 = shalt.err (!%p2961_p1)
}
  0x48   : > { %2787 = dma.hbm_to_vmem [thread:$0]  (!%p3286_p2), %s4148_s5, 16, %s3290_s16, [#allocation12]  }
  0x49   : > { %p2222_p4 = scmp.ge.s32.totalorder %s3159_s24, 2 }
  0x4a   : > { %p4163_p3 = scmp.ne.s32.totalorder (!%p2222_p4), %s4157_s7, 0 }
  0x4b   : > { %239 = sbr.rel (%p2222_p4) target bundleno = 228 (0xe4), region = 24 }
  0x52   : > { %242 = sbr.rel (!%p4163_p3) target bundleno = 117 (0x75), region = 28  ;;  %s243_s17 = sand.u32 (%p4163_p3), 1, %s3155_s23  }
  0x53   : > { %s248_s18 = smul.u32 (%p4163_p3), 29, %s3159_s24  ;;  %s3350_s26 = scalar_lea.sflag (%p4163_p3), [#allocation3], %s243_s17 }
  0x54   : > { %s2763_s19 = smul.u32 (%p4163_p3), 116, %s243_s17 }
  0x55   : > { %s249_s20 = ssub.s32 (%p4163_p3), 57, %s248_s18 }
  0x56   : > { %p250_p5 = scmp.lt.s32.totalorder (%p4163_p3), %s249_s20, 29  ;;  %s247_s28 = scalar_lea.vmem (%p4163_p3), [#allocation2], %s2763_s19 }
  0x59   : > { %s4181_s20 = smov (!%p250_p5, %s249_s20), 29 }
  0x5a   : > { %s3347_s14 = sshll.u32 %s4181_s20, 6 }
  0x5b   : > { %s254_s16 = ssub.s32 1856, %s3347_s14 }
  0x5c   : > { %255 = vsyncadd %s3350_s26, %s254_s16  ;;  %p2224_p2 = scmp.ne.s32.totalorder %s3347_s14, 0  ;;  %s2405_s29 = smul.u32 1856, %s3159_s24 }
  0x5d   : > { %s260_s12 = sshll.u32 %s247_s28, 4  ;;  %s2969_s19 = scalar_lea.hbm %s4143_s0, 3648  ;;  %s3360_s12 = int_to_ptr.vmem [resolvable:$true] %s260_s12 }
  0x5e   : > { %s3358_s27 = scalar_lea.hbm %s4143_s0, %s2405_s29 }
  0x5f   : > { %s2965_s15 = scalar_lea.hbm %s3358_s27, %s3347_s14  ;;  %p2970_p13 = scmp.lt.u32.totalorder %s3358_s27, %s4143_s0 }
  0x60   : > { %p2966_p6 = scmp.ne.s32.totalorder %s3358_s27, %s2965_s15  ;;  %p2971_p0 = scmp.lt.u32.totalorder %s2969_s19, %s2965_s15 }
  0x61   : > { %p2973_p8 = scmp.lt.u32.totalorder %s2965_s15, %s3358_s27 }
  0x62   : > { %p2967_p11 = pnand %p2966_p6, %p2224_p2  ;;  %p2972_p7 = por %p2971_p0, %p2970_p13 }
  0x64   : > { %p2968_p12 = pneg %p2967_p11  ;;  %p2974_p9 = por %p2973_p8, %p2972_p7 }
  0x66   : > { %p2975_p10 = pnand %p2974_p9, %p2968_p12 }
  0x68   : > { %2978 = shalt.err (!%p2975_p10)
}
  0x69   : > { %s2979_s28 = scalar_lea.vmem %s3360_s12, %s3347_s14  ;;  %s3165_s29 = smov [#allocation2]  }
  0x6a   : > { %p2980_p1 = scmp.ne.s32.totalorder %s3360_s12, %s2979_s28  ;;  %s2983_s13 = sshll.u32 %s3165_s29, 4  ;;  %s2984_s13 = int_to_ptr.vmem [resolvable:$false] %s2983_s13 }
  0x6b   : > { %s2985_s30 = scalar_lea.vmem %s2984_s13, 3712  ;;  %p2986_p6 = scmp.lt.s32.totalorder %s3360_s12, %s2984_s13 }
  0x6c   : > { %p2981_p3 = pnand %p2980_p1, %p2224_p2  ;;  %p2987_p11 = scmp.lt.s32.totalorder %s2985_s30, %s2979_s28 }
  0x6e   : > { %p2982_p5 = pneg %p2981_p3  ;;  %p2988_p13 = por %p2987_p11, %p2986_p6 }
  0x70   : > { %p2989_p0 = pnand %p2988_p13, %p2982_p5 }
  0x72   : > { %2992 = shalt.err (!%p2989_p0)
}
  0x73   : > { %s3166_s15 = smov 64   ;;  %s3167_s17 = smov 4  }
  0x74   : > { %266 = dma.hbm_to_vmem [thread:$0]  (%p2224_p2), %s3358_s27, %s3347_s14, %s3360_s12, %s3350_s26, %s3166_s15, %s3166_s15, %s3167_s17  }
  0x75 PF: > { %p4164_p12 = scmp.ne.s32.totalorder %s4157_s7, 0 }
  0x76   : > { %s270_s18 = sand.u32 (%p4164_p12), 1, %s3159_s24   ;;  %s272_s19 = sand.u32 (%p4164_p12), 1, %s3155_s23  }
  0x77   : > { %269 = sbr.rel (!%p4164_p12) target bundleno = 154 (0x9a), region = 32  ;;  %s3395_s30 = scalar_lea.sflag (%p4164_p12), [#allocation6], %s270_s18 }
  0x78   : > { %s2764_s20 = smul.u32 (%p4164_p12), 116, %s272_s19 }
  0x79   : > { %s275_s16 = smul.u32 (%p4164_p12), 29, %s3159_s24 }
  0x7a   : > { %s274_s14 = scalar_lea.vmem (%p4164_p12), [#allocation5], %s2764_s20 }
  0x7b   : > { %s276_s28 = ssub.s32 (%p4164_p12), 57, %s275_s16 }
  0x7c   : > { %p277_p7 = scmp.lt.s32.totalorder (%p4164_p12), %s276_s28, 29 }
  0x7e   : > { %s4183_s28 = smov (!%p277_p7, %s276_s28), 29 }
  0x7f   : > { %s3392_s29 = sshll.u32 %s4183_s28, 6 }
  0x80   : > { %s281_s13 = ssub.s32 1856, %s3392_s29 }
  0x81   : > { %282 = vsyncadd %s3395_s30, %s281_s13  ;;  %p2229_p2 = scmp.ne.s32.totalorder %s3392_s29, 0  ;;  %s2406_s26 = smul.u32 1856, %s3159_s24 }
  0x82   : > { %s287_s12 = sshll.u32 %s274_s14, 4  ;;  %s2997_s16 = scalar_lea.hbm %s4144_s1, 3648  ;;  %s3405_s12 = int_to_ptr.vmem [resolvable:$true] %s287_s12 }
  0x83   : > { %s3403_s17 = scalar_lea.hbm %s4144_s1, %s2406_s26 }
  0x84   : > { %s2993_s18 = scalar_lea.hbm %s3403_s17, %s3392_s29  ;;  %p2998_p1 = scmp.lt.u32.totalorder %s3403_s17, %s4144_s1 }
  0x85   : > { %p2994_p8 = scmp.ne.s32.totalorder %s3403_s17, %s2993_s18  ;;  %p2999_p3 = scmp.lt.u32.totalorder %s2997_s16, %s2993_s18 }
  0x86   : > { %p3001_p6 = scmp.lt.u32.totalorder %s2993_s18, %s3403_s17 }
  0x87   : > { %p2995_p9 = pnand %p2994_p8, %p2229_p2  ;;  %p3000_p5 = por %p2999_p3, %p2998_p1 }
  0x89   : > { %p2996_p10 = pneg %p2995_p9  ;;  %p3002_p11 = por %p3001_p6, %p3000_p5 }
  0x8b   : > { %p3003_p13 = pnand %p3002_p11, %p2996_p10 }
  0x8d   : > { %3006 = shalt.err (!%p3003_p13)
}
  0x8e   : > { %s3007_s14 = scalar_lea.vmem %s3405_s12, %s3392_s29  ;;  %s3168_s26 = smov [#allocation5]  }
  0x8f   : > { %p3008_p0 = scmp.ne.s32.totalorder %s3405_s12, %s3007_s14  ;;  %s3011_s27 = sshll.u32 %s3168_s26, 4  ;;  %s3012_s27 = int_to_ptr.vmem [resolvable:$false] %s3011_s27 }
  0x90   : > { %s3013_s15 = scalar_lea.vmem %s3012_s27, 3712  ;;  %p3014_p8 = scmp.lt.s32.totalorder %s3405_s12, %s3012_s27 }
  0x91   : > { %p3009_p12 = pnand %p3008_p0, %p2229_p2  ;;  %p3015_p9 = scmp.lt.s32.totalorder %s3013_s15, %s3007_s14 }
  0x93   : > { %p3010_p7 = pneg %p3009_p12  ;;  %p3016_p1 = por %p3015_p9, %p3014_p8 }
  0x95   : > { %p3017_p3 = pnand %p3016_p1, %p3010_p7 }
  0x97   : > { %3020 = shalt.err (!%p3017_p3)
}
  0x98   : > { %s3169_s18 = smov 64   ;;  %s3170_s19 = smov 4  }
  0x99   : > { %293 = dma.hbm_to_vmem [thread:$0]  (%p2229_p2), %s3403_s17, %s3392_s29, %s3405_s12, %s3395_s30, %s3169_s18, %s3169_s18, %s3170_s19  }
  0x9a PF: > { %p4165_p10 = scmp.ne.s32.totalorder %s4157_s7, 0 }
  0x9b   : > { %s297_s20 = sand.u32 (%p4165_p10), 1, %s3159_s24   ;;  %s299_s16 = sand.u32 (%p4165_p10), 1, %s3155_s23  }
  0x9c   : > { %296 = sbr.rel (!%p4165_p10) target bundleno = 191 (0xbf), region = 36  ;;  %s3440_s15 = scalar_lea.sflag (%p4165_p10), [#allocation6], %s297_s20 }
  0x9d   : > { %s2765_s28 = smul.u32 (%p4165_p10), 116, %s299_s16 }
  0x9e   : > { %s302_s13 = smul.u32 (%p4165_p10), 29, %s3159_s24 }
  0x9f   : > { %s301_s29 = scalar_lea.vmem (%p4165_p10), [#allocation7], %s2765_s28 }
  0xa0   : > { %s303_s14 = ssub.s32 (%p4165_p10), 57, %s302_s13 }
  0xa1   : > { %p304_p5 = scmp.lt.s32.totalorder (%p4165_p10), %s303_s14, 29 }
  0xa3   : > { %s4185_s14 = smov (!%p304_p5, %s303_s14), 29 }
  0xa4   : > { %s3437_s26 = sshll.u32 %s4185_s14, 6 }
  0xa5   : > { %s308_s27 = ssub.s32 1856, %s3437_s26 }
  0xa6   : > { %309 = vsyncadd %s3440_s15, %s308_s27  ;;  %p2234_p2 = scmp.ne.s32.totalorder %s3437_s26, 0  ;;  %s2407_s30 = smul.u32 1856, %s3159_s24 }
  0xa7   : > { %s314_s12 = sshll.u32 %s301_s29, 4  ;;  %s3025_s13 = scalar_lea.hbm %s4145_s2, 3648  ;;  %s3450_s12 = int_to_ptr.vmem [resolvable:$true] %s314_s12 }
  0xa8   : > { %s3448_s19 = scalar_lea.hbm %s4145_s2, %s2407_s30 }
  0xa9   : > { %s3021_s20 = scalar_lea.hbm %s3448_s19, %s3437_s26  ;;  %p3026_p0 = scmp.lt.u32.totalorder %s3448_s19, %s4145_s2 }
  0xaa   : > { %p3022_p6 = scmp.ne.s32.totalorder %s3448_s19, %s3021_s20  ;;  %p3027_p12 = scmp.lt.u32.totalorder %s3025_s13, %s3021_s20 }
  0xab   : > { %p3029_p8 = scmp.lt.u32.totalorder %s3021_s20, %s3448_s19 }
  0xac   : > { %p3023_p11 = pnand %p3022_p6, %p2234_p2  ;;  %p3028_p7 = por %p3027_p12, %p3026_p0 }
  0xae   : > { %p3024_p13 = pneg %p3023_p11  ;;  %p3030_p9 = por %p3029_p8, %p3028_p7 }
  0xb0   : > { %p3031_p1 = pnand %p3030_p9, %p3024_p13 }
  0xb2   : > { %3034 = shalt.err (!%p3031_p1)
}
  0xb3   : > { %s3035_s29 = scalar_lea.vmem %s3450_s12, %s3437_s26  ;;  %s3171_s30 = smov [#allocation7]  }
  0xb4   : > { %p3036_p3 = scmp.ne.s32.totalorder %s3450_s12, %s3035_s29  ;;  %s3039_s17 = sshll.u32 %s3171_s30, 4  ;;  %s3040_s17 = int_to_ptr.vmem [resolvable:$false] %s3039_s17 }
  0xb5   : > { %s3041_s18 = scalar_lea.vmem %s3040_s17, 3712  ;;  %p3042_p6 = scmp.lt.s32.totalorder %s3450_s12, %s3040_s17 }
  0xb6   : > { %p3037_p10 = pnand %p3036_p3, %p2234_p2  ;;  %p3043_p11 = scmp.lt.s32.totalorder %s3041_s18, %s3035_s29 }
  0xb8   : > { %p3038_p5 = pneg %p3037_p10  ;;  %p3044_p0 = por %p3043_p11, %p3042_p6 }
  0xba   : > { %p3045_p12 = pnand %p3044_p0, %p3038_p5 }
  0xbc   : > { %3048 = shalt.err (!%p3045_p12)
}
  0xbd   : > { %s3172_s20 = smov 64   ;;  %s3173_s16 = smov 4  }
  0xbe   : > { %320 = dma.hbm_to_vmem [thread:$0]  (%p2234_p2), %s3448_s19, %s3437_s26, %s3450_s12, %s3440_s15, %s3172_s20, %s3172_s20, %s3173_s16  }
  0xbf PF: > { %p4166_p13 = scmp.ne.s32.totalorder %s4157_s7, 0 }
  0xc0   : > { %s324_s28 = sand.u32 (%p4166_p13), 1, %s3159_s24   ;;  %s326_s13 = sand.u32 (%p4166_p13), 1, %s3155_s23  }
  0xc1   : > { %323 = sbr.rel (!%p4166_p13) target bundleno = 228 (0xe4), region = 40  ;;  %s3485_s18 = scalar_lea.sflag (%p4166_p13), [#allocation9], %s324_s28 }
  0xc2   : > { %s2766_s14 = smul.u32 (%p4166_p13), 116, %s326_s13 }
  0xc3   : > { %s329_s27 = smul.u32 (%p4166_p13), 29, %s3159_s24 }
  0xc4   : > { %s328_s26 = scalar_lea.vmem (%p4166_p13), [#allocation8], %s2766_s14 }
  0xc5   : > { %s330_s29 = ssub.s32 (%p4166_p13), 57, %s329_s27 }
  0xc6   : > { %p331_p7 = scmp.lt.s32.totalorder (%p4166_p13), %s330_s29, 29 }
  0xc8   : > { %s4187_s29 = smov (!%p331_p7, %s330_s29), 29 }
  0xc9   : > { %s3482_s30 = sshll.u32 %s4187_s29, 6 }
  0xca   : > { %s335_s17 = ssub.s32 1856, %s3482_s30 }
  0xcb   : > { %336 = vsyncadd %s3485_s18, %s335_s17  ;;  %p2239_p2 = scmp.ne.s32.totalorder %s3482_s30, 0  ;;  %s2408_s7 = smul.u32 1856, %s3159_s24 }
  0xcc   : > { %s341_s15 = sshll.u32 %s328_s26, 4  ;;  %s3053_s14 = scalar_lea.hbm %s4146_s3, 3648  ;;  %s3495_s15 = int_to_ptr.vmem [resolvable:$true] %s341_s15 }
  0xcd   : > { %s3493_s20 = scalar_lea.hbm %s4146_s3, %s2408_s7 }
  0xce   : > { %s3049_s16 = scalar_lea.hbm %s3493_s20, %s3482_s30  ;;  %p3054_p3 = scmp.lt.u32.totalorder %s3493_s20, %s4146_s3 }
  0xcf   : > { %p3050_p8 = scmp.ne.s32.totalorder %s3493_s20, %s3049_s16  ;;  %p3055_p10 = scmp.lt.u32.totalorder %s3053_s14, %s3049_s16 }
  0xd0   : > { %p3057_p6 = scmp.lt.u32.totalorder %s3049_s16, %s3493_s20 }
  0xd1   : > { %p3051_p9 = pnand %p3050_p8, %p2239_p2  ;;  %p3056_p5 = por %p3055_p10, %p3054_p3 }
  0xd3   : > { %p3052_p1 = pneg %p3051_p9  ;;  %p3058_p11 = por %p3057_p6, %p3056_p5 }
  0xd5   : > { %p3059_p0 = pnand %p3058_p11, %p3052_p1 }
  0xd7   : > { %3062 = shalt.err (!%p3059_p0)
}
  0xd8   : > { %s3063_s17 = scalar_lea.vmem %s3495_s15, %s3482_s30  ;;  %s3174_s26 = smov [#allocation8]  }
  0xd9   : > { %p3064_p12 = scmp.ne.s32.totalorder %s3495_s15, %s3063_s17  ;;  %s3067_s7 = sshll.u32 %s3174_s26, 4  ;;  %s3068_s7 = int_to_ptr.vmem [resolvable:$false] %s3067_s7 }
  0xda   : > { %s3069_s12 = scalar_lea.vmem %s3068_s7, 3712  ;;  %p3070_p8 = scmp.lt.s32.totalorder %s3495_s15, %s3068_s7 }
  0xdb   : > { %p3065_p13 = pnand %p3064_p12, %p2239_p2  ;;  %p3071_p9 = scmp.lt.s32.totalorder %s3069_s12, %s3063_s17 }
  0xdd   : > { %p3066_p7 = pneg %p3065_p13  ;;  %p3072_p3 = por %p3071_p9, %p3070_p8 }
  0xdf   : > { %p3073_p10 = pnand %p3072_p3, %p3066_p7 }
  0xe1   : > { %3076 = shalt.err (!%p3073_p10)
}
  0xe2   : > { %s3175_s19 = smov 64   ;;  %s3176_s16 = smov 4  }
  0xe3   : > { %347 = dma.hbm_to_vmem [thread:$0]  (%p2239_p2), %s3493_s20, %s3482_s30, %s3495_s15, %s3485_s18, %s3175_s19, %s3175_s19, %s3176_s16  }
  0xe4 PF: > { %p4167_p1 = scmp.ne.s32.totalorder %s4161_s11, 0 }
  0xe5   : > { %s3525_s28 = sand.u32 (!%p4167_p1), 1, %s3151_s22   ;;  %p4168_p5 = scmp.ne.s32.totalorder (!%p4167_p1), %s4158_s8, 0 }
  0xe6   : > { %353 = sbr.rel (%p4167_p1) target bundleno = 743 (0x2e7), region = 44  ;;  %s356_s14 = scalar_lea.sflag (!%p4167_p1), [#allocation3], %s3525_s28 }
  0xe7   : > { %s3528_s13 = smul.u32 (!%p4167_p1), 116, %s3525_s28 }
  0xe9   : > { %s3532_s27 = scalar_lea.vmem (!%p4167_p1), [#allocation2], %s3528_s13 }
  0xed   : > { %3122 = dma.done.wait (%p4168_p5), %s356_s14, 1856  }
  0xee   : > { %3124 = vsyncadd (%p4168_p5), %s356_s14, 4294965440  ;;  %s364_s11 = sand.u32 1, %s3239_s25   ;;  %s3540_s18 = scalar_lea.vmem [#allocation5], %s3528_s13 }
  0xef   : > { %s365_s30 = scalar_lea.sflag [#allocation6], %s364_s11 }
  0xf0   : > { %3126 = dma.done.wait (%p4168_p5), %s365_s30, 3712  }
  0xf1   : > { %3128 = vsyncadd (%p4168_p5), %s365_s30, 4294963584  ;;  %s3547_s15 = scalar_lea.vmem [#allocation7], %s3528_s13  ;;  %s383_s20 = scalar_lea.sflag [#allocation9], %s364_s11 }
  0xf2   : > { %s3550_s29 = scalar_lea.vmem [#allocation8], %s3528_s13 }
  0xf3   : > { %3130 = dma.done.wait (%p4168_p5), %s383_s20, 1856  }
  0xf4   : > { %3132 = vsyncadd (%p4168_p5), %s383_s20, 4294965440  ;;  %p4169_p2 = scmp.eq.s32.totalorder %s3239_s25, 0 }
  0xf6   : > { %3134 = dma.done.wait (%p4169_p2), [#allocation9], 256   ;;  %p4170_p6 = pmov %p4169_p2 }
  0xf7   : > { %p4171_p11 = pmov %p4169_p2 }
  0xf8   : > { %3136 = vsyncadd (%p4170_p6), [#allocation9], 4294967040 }
  0xf9   : > { %3138 = dma.done.wait (%p4171_p11), [#allocation12], 16   ;;  %p4172_p0 = pmov %p4169_p2 }
  0xfa   : > { %v3177_v0 = vmov 0.0   ;;  %vm634_vm0 = vcmask 1044480   ;;  %vm3178_vm1 = vmmov 0   ;;  %vm635_vm2 = vcmask 1045504   ;;  %v2846_v3 = vld [vmem:[#allocation10] sm:$0xff]   ;;  %v2853_v12 = vld [vmem:[%s3540_s18 + $0x10] sm:$0xff]  }
  0xfb   : > { %3140 = vsyncadd (%p4172_p0), [#allocation12], 4294967280  ;;  %2507 = vmatprep.subr.bf16.mxu0 %v3177_v0  ;;  %2571 = vmatprep.subr.bf16.mxu1 %v3177_v0  ;;  %v3179_v1 = vmov 65535   ;;  %v2847_v5 = vld [vmem:[#allocation10 + $0x8] sm:$0x3f]   ;;  %v2848_v7 = vld [vmem:[%s3532_s27] sm:$0xff]  }
  0xfc   : > { %2511 = vmatprep.mubr.msk.bf16.mxu0 %vm3178_vm1, %v3177_v0  ;;  %2575 = vmatprep.mubr.msk.bf16.mxu1 %vm3178_vm1, %v3177_v0  ;;  %v636_v2 = vsel %vm634_vm0, 4294967295, %v3179_v1  ;;  %v2849_v8 = vld [vmem:[%s3540_s18] sm:$0xff]   ;;  %vm588_vm3 = vcmask 220160   ;;  %v2851_v10 = vld [vmem:[%s3540_s18 + $0x8] sm:$0xff]   ;;  %v2854_v13 = vld [vmem:[%s3532_s27 + $0x18] sm:$0xff]   ;;  %vm2010_vm4 = vcmask 257024  }
  0xfd   : > { %v637_v4 = vsel %vm635_vm2, %v636_v2, 0  ;;  %2508 = vmatpush3.bf16.msra.mxu0 %v2846_v3  ;;  %2572 = vmatpush3.bf16.msra.mxu1 %v2846_v3  ;;  %v2850_v9 = vld [vmem:[%s3532_s27 + $0x8] sm:$0xff]   ;;  %v2852_v11 = vld [vmem:[%s3532_s27 + $0x10] sm:$0xff]   ;;  %v2855_v14 = vld [vmem:[%s3540_s18 + $0x18] sm:$0xff]   ;;  %s3939_s8 = scalar_lea.vmem [#allocation13], %s3528_s13  ;;  %s2041_s17 = scalar_lea.sflag [#allocation4], %s3525_s28 }
  0xfe   : > { %2509 = vmatprep.subr.bf16.mxu0 %v3177_v0  ;;  %2573 = vmatprep.subr.bf16.mxu1 %v3177_v0  ;;  %v639_v6 = vand.u32 %v2847_v5, %v637_v4  ;;  %v2856_v15 = vld [vmem:[%s3532_s27 + $0x20] sm:$0xff]   ;;  %v2857_v16 = vld [vmem:[%s3540_s18 + $0x20] sm:$0xff]   ;;  %v2859_v18 = vld [vmem:[%s3540_s18 + $0x28] sm:$0xff]   ;;  %p4173_p12 = scmp.ne.s32.totalorder %s4159_s9, 0 }
  0xff   : > { %v2858_v17 = vld [vmem:[%s3532_s27 + $0x28] sm:$0xff]   ;;  %v2860_v19 = vld [vmem:[%s3532_s27 + $0x30] sm:$0xff]   ;;  %v2861_v20 = vld [vmem:[%s3540_s18 + $0x30] sm:$0xff]   ;;  %s2048_s26 = smul.u32 (%p4173_p12), 29, %s3239_s25 }
 0x100   : > { %v2862_v21 = vld [vmem:[%s3532_s27 + $0x38] sm:$0xff]   ;;  %v2863_v22 = vld [vmem:[%s3540_s18 + $0x38] sm:$0xff]   ;;  %v2865_v24 = vld [vmem:[%s3540_s18 + $0x40] sm:$0xff]  }
 0x101   : > { %2510 = vmatpush3.bf16.msra.mxu0 %v639_v6  ;;  %2574 = vmatpush3.bf16.msra.mxu1 %v639_v6  ;;  %v2864_v23 = vld [vmem:[%s3532_s27 + $0x40] sm:$0xff]   ;;  %v2866_v25 = vld [vmem:[%s3532_s27 + $0x48] sm:$0xff]   ;;  %v2867_v26 = vld [vmem:[%s3540_s18 + $0x48] sm:$0xff]   ;;  %s2049_s7 = ssub.s32 (%p4173_p12), 57, %s2048_s26 }
 0x102   : > { %2635 = vmatprep.subr.bf16.mxu0 %v3177_v0  ;;  %2699 = vmatprep.subr.bf16.mxu1 %v3177_v0  ;;  %v2868_v27 = vld [vmem:[%s3532_s27 + $0x50] sm:$0xff]   ;;  %v2869_v28 = vld [vmem:[%s3540_s18 + $0x50] sm:$0xff]   ;;  %v2871_v30 = vld [vmem:[%s3540_s18 + $0x58] sm:$0xff]   ;;  %p2050_p13 = scmp.lt.s32.totalorder (%p4173_p12), %s2049_s7, 29 }
 0x103   : > { %v2870_v29 = vld [vmem:[%s3532_s27 + $0x58] sm:$0xff]   ;;  %v2872_v31 = vld [vmem:[%s3532_s27 + $0x60] sm:$0xff]   ;;  %v2873_v32 = vld [vmem:[%s3540_s18 + $0x60] sm:$0xff]  }
 0x104   : > { %2512 = vmatmul.mubr.msk.bf16.vlgmr.msra.gmra.mrb[0].mxu0 %vm588_vm3, %v2848_v7  ;;  %2576 = vmatmul.mubr.msk.bf16.vlgmr.msra.gmra.mrb[0].mxu1 %vm588_vm3, %v2849_v8  ;;  %v2874_v33 = vld [vmem:[%s3532_s27 + $0x68] sm:$0xff]   ;;  %v2875_v34 = vld [vmem:[%s3540_s18 + $0x68] sm:$0xff]   ;;  %v2877_v36 = vld [vmem:[%s3540_s18 + $0x70] ss:$0 sps:$4 sm:$0xff]  }
 0x105   : > { %2636 = vmatpush3.bf16.msra.mxu0 %v2846_v3  ;;  %2700 = vmatpush3.bf16.msra.mxu1 %v2846_v3  ;;  %v2876_v35 = vld [vmem:[%s3532_s27 + $0x70] ss:$0 sps:$4 sm:$0xff]   ;;  %v2879_v38 = vld [vmem:[%s3550_s29] sm:$0xff]   ;;  %v2881_v40 = vld [vmem:[%s3550_s29 + $0x8] sm:$0xff]  }
 0x106   : > { %2515 = vmatprep.mubr.msk.bf16.mxu0 %vm3178_vm1, %v3177_v0  ;;  %2579 = vmatprep.mubr.msk.bf16.mxu1 %vm3178_vm1, %v3177_v0  ;;  %v2878_v37 = vld [vmem:[%s3547_s15] sm:$0xff]   ;;  %v2880_v39 = vld [vmem:[%s3547_s15 + $0x8] sm:$0xff]   ;;  %v2882_v41 = vld [vmem:[%s3547_s15 + $0x10] sm:$0xff]  }
 0x107   : > { %2637 = vmatprep.subr.bf16.mxu0 %v3177_v0  ;;  %2701 = vmatprep.subr.bf16.mxu1 %v3177_v0  ;;  %v2883_v42 = vld [vmem:[%s3550_s29 + $0x10] sm:$0xff]   ;;  %v2885_v44 = vld [vmem:[%s3550_s29 + $0x18] sm:$0xff]   ;;  %v2887_v46 = vld [vmem:[%s3550_s29 + $0x20] sm:$0xff]  }
 0x108   : > { %v2884_v43 = vld [vmem:[%s3547_s15 + $0x18] sm:$0xff]   ;;  %v2886_v45 = vld [vmem:[%s3547_s15 + $0x20] sm:$0xff]   ;;  %v2888_v47 = vld [vmem:[%s3547_s15 + $0x28] sm:$0xff]  }
 0x109   : > { %2638 = vmatpush3.bf16.msra.mxu0 %v639_v6  ;;  %2702 = vmatpush3.bf16.msra.mxu1 %v639_v6  ;;  %v2889_v48 = vld [vmem:[%s3550_s29 + $0x28] sm:$0xff]   ;;  %v2891_v50 = vld [vmem:[%s3550_s29 + $0x30] sm:$0xff]   ;;  %v2893_v52 = vld [vmem:[%s3550_s29 + $0x38] sm:$0xff]  }
 0x10a   : > { %v2890_v49 = vld [vmem:[%s3547_s15 + $0x30] sm:$0xff]   ;;  %v2892_v51 = vld [vmem:[%s3547_s15 + $0x38] sm:$0xff]   ;;  %v2894_v53 = vld [vmem:[%s3547_s15 + $0x40] sm:$0xff]  }
 0x10b   : > { %v2895_v54 = vld [vmem:[%s3550_s29 + $0x40] sm:$0xff]   ;;  %v2897_v56 = vld [vmem:[%s3550_s29 + $0x48] sm:$0xff]   ;;  %v2899_v58 = vld [vmem:[%s3550_s29 + $0x50] sm:$0xff]  }
 0x10c   : > { %2516 = vmatmul.mubr.msk.bf16.gmra.mrb[4].mxu0 %vm588_vm3, %v2850_v9  ;;  %2580 = vmatmul.mubr.msk.bf16.gmra.mrb[4].mxu1 %vm588_vm3, %v2851_v10  ;;  %v2896_v55 = vld [vmem:[%s3547_s15 + $0x48] sm:$0xff]   ;;  %v2898_v57 = vld [vmem:[%s3547_s15 + $0x50] sm:$0xff]   ;;  %v2900_v59 = vld [vmem:[%s3547_s15 + $0x58] sm:$0xff]  }
 0x10d   : > { %2519 = vmatprep.mubr.msk.bf16.mxu0 %vm3178_vm1, %v3177_v0  ;;  %2583 = vmatprep.mubr.msk.bf16.mxu1 %vm3178_vm1, %v3177_v0  ;;  %v2901_v60 = vld [vmem:[%s3550_s29 + $0x58] sm:$0xff]   ;;  %v2903_v6 = vld [vmem:[%s3550_s29 + $0x60] sm:$0xff]  }
 0x10e   : > { %v3788_v61 = vld [vmem:[#allocation11] ss:$0 sm:$0xff] }
 0x10f   : > { %v2902_v5 = vld [vmem:[%s3547_s15 + $0x60] sm:$0xff]  }
 0x114   : > { %2520 = vmatmul.mubr.msk.bf16.gmra.mrb[8].mxu0 %vm588_vm3, %v2852_v11  ;;  %2584 = vmatmul.mubr.msk.bf16.gmra.mrb[8].mxu1 %vm588_vm3, %v2853_v12 }
 0x115   : > { %2523 = vmatprep.mubr.msk.bf16.mxu0 %vm3178_vm1, %v3177_v0  ;;  %2587 = vmatprep.mubr.msk.bf16.mxu1 %vm3178_vm1, %v3177_v0 }
 0x11c   : > { %2524 = vmatmul.mubr.msk.bf16.gmra.mrb[12].mxu0 %vm588_vm3, %v2854_v13  ;;  %2588 = vmatmul.mubr.msk.bf16.gmra.mrb[12].mxu1 %vm588_vm3, %v2855_v14 }
 0x11d   : > { %2527 = vmatprep.mubr.msk.bf16.mxu0 %vm3178_vm1, %v3177_v0  ;;  %2591 = vmatprep.mubr.msk.bf16.mxu1 %vm3178_vm1, %v3177_v0 }
 0x124   : > { %2528 = vmatmul.mubr.msk.bf16.gmra.mrb[16].mxu0 %vm588_vm3, %v2856_v15  ;;  %2592 = vmatmul.mubr.msk.bf16.gmra.mrb[16].mxu1 %vm588_vm3, %v2857_v16 }
 0x125   : > { %2531 = vmatprep.mubr.msk.bf16.mxu0 %vm3178_vm1, %v3177_v0  ;;  %2595 = vmatprep.mubr.msk.bf16.mxu1 %vm3178_vm1, %v3177_v0 }
 0x12c   : > { %2532 = vmatmul.mubr.msk.bf16.gmra.mrb[20].mxu0 %vm588_vm3, %v2858_v17  ;;  %2596 = vmatmul.mubr.msk.bf16.gmra.mrb[20].mxu1 %vm588_vm3, %v2859_v18 }
 0x12d   : > { %2535 = vmatprep.mubr.msk.bf16.mxu0 %vm3178_vm1, %v3177_v0  ;;  %2599 = vmatprep.mubr.msk.bf16.mxu1 %vm3178_vm1, %v3177_v0 }
 0x134   : > { %2536 = vmatmul.mubr.msk.bf16.gmra.mrb[24].mxu0 %vm588_vm3, %v2860_v19  ;;  %2600 = vmatmul.mubr.msk.bf16.gmra.mrb[24].mxu1 %vm588_vm3, %v2861_v20 }
 0x135   : > { %2539 = vmatprep.mubr.msk.bf16.mxu0 %vm3178_vm1, %v3177_v0  ;;  %2603 = vmatprep.mubr.msk.bf16.mxu1 %vm3178_vm1, %v3177_v0 }
 0x13c   : > { %2540 = vmatmul.mubr.msk.bf16.gmra.mrb[28].mxu0 %vm588_vm3, %v2862_v21  ;;  %2604 = vmatmul.mubr.msk.bf16.gmra.mrb[28].mxu1 %vm588_vm3, %v2863_v22 }
 0x13d   : > { %2543 = vmatprep.mubr.msk.bf16.mxu0 %vm3178_vm1, %v3177_v0  ;;  %2607 = vmatprep.mubr.msk.bf16.mxu1 %vm3178_vm1, %v3177_v0 }
 0x144   : > { %2544 = vmatmul.mubr.msk.bf16.gmra.mrb[32].mxu0 %vm588_vm3, %v2864_v23  ;;  %2608 = vmatmul.mubr.msk.bf16.gmra.mrb[32].mxu1 %vm588_vm3, %v2865_v24 }
 0x145   : > { %2547 = vmatprep.mubr.msk.bf16.mxu0 %vm3178_vm1, %v3177_v0  ;;  %2611 = vmatprep.mubr.msk.bf16.mxu1 %vm3178_vm1, %v3177_v0 }
 0x14c   : > { %2548 = vmatmul.mubr.msk.bf16.gmra.mrb[36].mxu0 %vm588_vm3, %v2866_v25  ;;  %2612 = vmatmul.mubr.msk.bf16.gmra.mrb[36].mxu1 %vm588_vm3, %v2867_v26  ;;  %v2904_v25 = vld [vmem:[%s3547_s15 + $0x68] sm:$0xff]   ;;  %v2905_v26 = vld [vmem:[%s3550_s29 + $0x68] sm:$0xff]  }
 0x14d   : > { %2551 = vmatprep.mubr.msk.bf16.mxu0 %vm3178_vm1, %v3177_v0  ;;  %2615 = vmatprep.mubr.msk.bf16.mxu1 %vm3178_vm1, %v3177_v0 }
 0x154   : > { %2552 = vmatmul.mubr.msk.bf16.gmra.mrb[40].mxu0 %vm588_vm3, %v2868_v27  ;;  %2616 = vmatmul.mubr.msk.bf16.gmra.mrb[40].mxu1 %vm588_vm3, %v2869_v28 }
 0x155   : > { %2555 = vmatprep.mubr.msk.bf16.mxu0 %vm3178_vm1, %v3177_v0  ;;  %2619 = vmatprep.mubr.msk.bf16.mxu1 %vm3178_vm1, %v3177_v0 }
 0x15c   : > { %2556 = vmatmul.mubr.msk.bf16.gmra.mrb[44].mxu0 %vm588_vm3, %v2870_v29  ;;  %2620 = vmatmul.mubr.msk.bf16.gmra.mrb[44].mxu1 %vm588_vm3, %v2871_v30 }
 0x15d   : > { %2559 = vmatprep.mubr.msk.bf16.mxu0 %vm3178_vm1, %v3177_v0  ;;  %2623 = vmatprep.mubr.msk.bf16.mxu1 %vm3178_vm1, %v3177_v0 }
 0x164   : > { %2560 = vmatmul.mubr.msk.bf16.gmra.mrb[48].mxu0 %vm588_vm3, %v2872_v31  ;;  %2624 = vmatmul.mubr.msk.bf16.gmra.mrb[48].mxu1 %vm588_vm3, %v2873_v32 }
 0x165   : > { %2563 = vmatprep.mubr.msk.bf16.mxu0 %vm3178_vm1, %v3177_v0  ;;  %2627 = vmatprep.mubr.msk.bf16.mxu1 %vm3178_vm1, %v3177_v0 }
 0x16c   : > { %2564 = vmatmul.mubr.msk.bf16.gmra.mrb[52].mxu0 %vm588_vm3, %v2874_v33  ;;  %2628 = vmatmul.mubr.msk.bf16.gmra.mrb[52].mxu1 %vm588_vm3, %v2875_v34 }
 0x16d   : > { %2567 = vmatprep.mubr.msk.bf16.mxu0 %vm3178_vm1, %v3177_v0  ;;  %2631 = vmatprep.mubr.msk.bf16.mxu1 %vm3178_vm1, %v3177_v0 }
 0x174   : > { %2568 = vmatmul.mubr.msk.bf16.gmra.mrb[56].mxu0 %vm588_vm3, %v2876_v35  ;;  %2632 = vmatmul.mubr.msk.bf16.gmra.mrb[56].mxu1 %vm588_vm3, %v2877_v36 }
 0x175   : > { %2639 = vmatprep.mubr.msk.bf16.mxu0 %vm3178_vm1, %v3177_v0  ;;  %2703 = vmatprep.mubr.msk.bf16.mxu1 %vm3178_vm1, %v3177_v0 }
 0x17c   : > { %2640 = vmatmul.mubr.msk.bf16.vlgmr.msra.gmra.mrb[60].mxu0 %vm588_vm3, %v2878_v37  ;;  %2704 = vmatmul.mubr.msk.bf16.vlgmr.msra.gmra.mrb[60].mxu1 %vm588_vm3, %v2879_v38 }
 0x17d   : > { %2643 = vmatprep.mubr.msk.bf16.mxu0 %vm3178_vm1, %v3177_v0  ;;  %2707 = vmatprep.mubr.msk.bf16.mxu1 %vm3178_vm1, %v3177_v0 }
 0x184   : > { %2644 = vmatmul.mubr.msk.bf16.gmra.mrb[64].mxu0 %vm588_vm3, %v2880_v39  ;;  %2708 = vmatmul.mubr.msk.bf16.gmra.mrb[64].mxu1 %vm588_vm3, %v2881_v40 }
 0x185   : > { %2647 = vmatprep.mubr.msk.bf16.mxu0 %vm3178_vm1, %v3177_v0  ;;  %2711 = vmatprep.mubr.msk.bf16.mxu1 %vm3178_vm1, %v3177_v0 }
 0x18c   : > { %2648 = vmatmul.mubr.msk.bf16.gmra.mrb[68].mxu0 %vm588_vm3, %v2882_v41  ;;  %2712 = vmatmul.mubr.msk.bf16.gmra.mrb[68].mxu1 %vm588_vm3, %v2883_v42 }
 0x18d   : > { %2651 = vmatprep.mubr.msk.bf16.mxu0 %vm3178_vm1, %v3177_v0  ;;  %2715 = vmatprep.mubr.msk.bf16.mxu1 %vm3178_vm1, %v3177_v0 }
 0x194   : > { %2652 = vmatmul.mubr.msk.bf16.gmra.mrb[72].mxu0 %vm588_vm3, %v2884_v43  ;;  %2716 = vmatmul.mubr.msk.bf16.gmra.mrb[72].mxu1 %vm588_vm3, %v2885_v44 }
 0x195   : > { %2655 = vmatprep.mubr.msk.bf16.mxu0 %vm3178_vm1, %v3177_v0  ;;  %2719 = vmatprep.mubr.msk.bf16.mxu1 %vm3178_vm1, %v3177_v0 }
 0x19c   : > { %2656 = vmatmul.mubr.msk.bf16.gmra.mrb[76].mxu0 %vm588_vm3, %v2886_v45  ;;  %2720 = vmatmul.mubr.msk.bf16.gmra.mrb[76].mxu1 %vm588_vm3, %v2887_v46  ;;  %v2906_v45 = vld [vmem:[%s3547_s15 + $0x70] ss:$0 sps:$4 sm:$0xff]   ;;  %v2907_v46 = vld [vmem:[%s3550_s29 + $0x70] ss:$0 sps:$4 sm:$0xff]  }
 0x19d   : > { %2659 = vmatprep.mubr.msk.bf16.mxu0 %vm3178_vm1, %v3177_v0  ;;  %2723 = vmatprep.mubr.msk.bf16.mxu1 %vm3178_vm1, %v3177_v0 }
 0x1a4   : > { %2660 = vmatmul.mubr.msk.bf16.gmra.mrb[80].mxu0 %vm588_vm3, %v2888_v47  ;;  %2724 = vmatmul.mubr.msk.bf16.gmra.mrb[80].mxu1 %vm588_vm3, %v2889_v48 }
 0x1a5   : > { %2663 = vmatprep.mubr.msk.bf16.mxu0 %vm3178_vm1, %v3177_v0  ;;  %2727 = vmatprep.mubr.msk.bf16.mxu1 %vm3178_vm1, %v3177_v0 }
 0x1ac   : > { %2664 = vmatmul.mubr.msk.bf16.gmra.mrb[84].mxu0 %vm588_vm3, %v2890_v49  ;;  %2728 = vmatmul.mubr.msk.bf16.gmra.mrb[84].mxu1 %vm588_vm3, %v2891_v50 }
 0x1ad   : > { %2667 = vmatprep.mubr.msk.bf16.mxu0 %vm3178_vm1, %v3177_v0  ;;  %2731 = vmatprep.mubr.msk.bf16.mxu1 %vm3178_vm1, %v3177_v0 }
 0x1b4   : > { %2668 = vmatmul.mubr.msk.bf16.gmra.mrb[88].mxu0 %vm588_vm3, %v2892_v51  ;;  %2732 = vmatmul.mubr.msk.bf16.gmra.mrb[88].mxu1 %vm588_vm3, %v2893_v52 }
 0x1b5   : > { %2671 = vmatprep.mubr.msk.bf16.mxu0 %vm3178_vm1, %v3177_v0  ;;  %2735 = vmatprep.mubr.msk.bf16.mxu1 %vm3178_vm1, %v3177_v0 }
 0x1bc   : > { %2672 = vmatmul.mubr.msk.bf16.gmra.mrb[92].mxu0 %vm588_vm3, %v2894_v53  ;;  %2736 = vmatmul.mubr.msk.bf16.gmra.mrb[92].mxu1 %vm588_vm3, %v2895_v54 }
 0x1bd   : > { %2675 = vmatprep.mubr.msk.bf16.mxu0 %vm3178_vm1, %v3177_v0  ;;  %2739 = vmatprep.mubr.msk.bf16.mxu1 %vm3178_vm1, %v3177_v0 }
 0x1c4   : > { %2676 = vmatmul.mubr.msk.bf16.gmra.mrb[96].mxu0 %vm588_vm3, %v2896_v55  ;;  %2740 = vmatmul.mubr.msk.bf16.gmra.mrb[96].mxu1 %vm588_vm3, %v2897_v56 }
 0x1c5   : > { %2679 = vmatprep.mubr.msk.bf16.mxu0 %vm3178_vm1, %v3177_v0  ;;  %2743 = vmatprep.mubr.msk.bf16.mxu1 %vm3178_vm1, %v3177_v0 }
 0x1cc   : > { %2680 = vmatmul.mubr.msk.bf16.gmra.mrb[100].mxu0 %vm588_vm3, %v2898_v57  ;;  %2744 = vmatmul.mubr.msk.bf16.gmra.mrb[100].mxu1 %vm588_vm3, %v2899_v58 }
 0x1cd   : > { %2683 = vmatprep.mubr.msk.bf16.mxu0 %vm3178_vm1, %v3177_v0  ;;  %2747 = vmatprep.mubr.msk.bf16.mxu1 %vm3178_vm1, %v3177_v0 }
 0x1d4   : > { %2684 = vmatmul.mubr.msk.bf16.gmra.mrb[104].mxu0 %vm588_vm3, %v2900_v59  ;;  %2748 = vmatmul.mubr.msk.bf16.gmra.mrb[104].mxu1 %vm588_vm3, %v2901_v60 }
 0x1d5   : > { %2687 = vmatprep.mubr.msk.bf16.mxu0 %vm3178_vm1, %v3177_v0  ;;  %2751 = vmatprep.mubr.msk.bf16.mxu1 %vm3178_vm1, %v3177_v0 }
 0x1d7   : > { %v675_v62 = vpop.f32.mrb[0].mxu0  ;;  %v1003_v63 = vpop.f32.mrb[0].mxu1 }
 0x1d8   : > { %v676_v1 = vadd.f32 %v3788_v61, %v675_v62  ;;  %v1004_v2 = vadd.f32 %v3788_v61, %v1003_v63  ;;  %v2513_v3 = vpop.f32.mrb[1].mxu0  ;;  %v2577_v4 = vpop.f32.mrb[1].mxu1 }
 0x1d9   : > { %v678_v7 = vpop.f32.mrb[2].mxu0  ;;  %v1006_v8 = vpop.f32.mrb[2].mxu1 }
 0x1da   : > { %v793_v9 = vmax.f32 %v676_v1, 0.0  ;;  %v1121_v10 = vmax.f32 %v1004_v2, 0.0  ;;  %v679_v11 = vadd.f32 %v3788_v61, %v678_v7  ;;  %v1007_v12 = vadd.f32 %v3788_v61, %v1006_v8  ;;  %v2514_v13 = vpop.f32.mrb[3].mxu0  ;;  %v2578_v14 = vpop.f32.mrb[3].mxu1 }
 0x1dc   : > { %v3800_v15 = vmax.f32 %v793_v9, %v1121_v10  ;;  %v794_v16 = vmax.f32 %v679_v11, 0.0  ;;  %v1122_v17 = vmax.f32 %v1007_v12, 0.0  ;;  %2688 = vmatmul.mubr.msk.bf16.gmra.mrb[108].mxu0 %vm588_vm3, %v2902_v5  ;;  %2752 = vmatmul.mubr.msk.bf16.gmra.mrb[108].mxu1 %vm588_vm3, %v2903_v6 }
 0x1dd   : > { %2691 = vmatprep.mubr.msk.bf16.mxu0 %vm3178_vm1, %v3177_v0  ;;  %2755 = vmatprep.mubr.msk.bf16.mxu1 %vm3178_vm1, %v3177_v0 }
 0x1de   : > { %v3808_v18 = vmax.f32 %v794_v16, %v1122_v17 }
 0x1df   : > { %v683_v19 = vpop.f32.mrb[4].mxu0  ;;  %v1011_v20 = vpop.f32.mrb[4].mxu1 }
 0x1e0   : > { %v684_v21 = vadd.f32 %v3788_v61, %v683_v19  ;;  %v1012_v22 = vadd.f32 %v3788_v61, %v1011_v20  ;;  %v2517_v23 = vpop.f32.mrb[5].mxu0  ;;  %v2581_v24 = vpop.f32.mrb[5].mxu1 }
 0x1e1   : > { %v686_v27 = vpop.f32.mrb[6].mxu0  ;;  %v1014_v28 = vpop.f32.mrb[6].mxu1 }
 0x1e2   : > { %v795_v29 = vmax.f32 %v684_v21, 0.0  ;;  %v1123_v30 = vmax.f32 %v1012_v22, 0.0  ;;  %v687_v31 = vadd.f32 %v3788_v61, %v686_v27  ;;  %v1015_v32 = vadd.f32 %v3788_v61, %v1014_v28  ;;  %v2518_v33 = vpop.f32.mrb[7].mxu0  ;;  %v2582_v34 = vpop.f32.mrb[7].mxu1 }
 0x1e4   : > { %v3816_v35 = vmax.f32 %v795_v29, %v1123_v30  ;;  %v796_v36 = vmax.f32 %v687_v31, 0.0  ;;  %v1124_v37 = vmax.f32 %v1015_v32, 0.0  ;;  %2692 = vmatmul.mubr.msk.bf16.gmra.mrb[112].mxu0 %vm588_vm3, %v2904_v25  ;;  %2756 = vmatmul.mubr.msk.bf16.gmra.mrb[112].mxu1 %vm588_vm3, %v2905_v26 }
 0x1e5   : > { %2695 = vmatprep.mubr.msk.bf16.mxu0 %vm3178_vm1, %v3177_v0  ;;  %2759 = vmatprep.mubr.msk.bf16.mxu1 %vm3178_vm1, %v3177_v0 }
 0x1e6   : > { %v3824_v38 = vmax.f32 %v796_v36, %v1124_v37 }
 0x1e7   : > { %v691_v39 = vpop.f32.mrb[8].mxu0  ;;  %v1019_v40 = vpop.f32.mrb[8].mxu1 }
 0x1e8   : > { %v692_v41 = vadd.f32 %v3788_v61, %v691_v39  ;;  %v1020_v42 = vadd.f32 %v3788_v61, %v1019_v40  ;;  %v2521_v43 = vpop.f32.mrb[9].mxu0  ;;  %v2585_v44 = vpop.f32.mrb[9].mxu1 }
 0x1e9   : > { %v694_v47 = vpop.f32.mrb[10].mxu0  ;;  %v1022_v48 = vpop.f32.mrb[10].mxu1 }
 0x1ea   : > { %v797_v49 = vmax.f32 %v692_v41, 0.0  ;;  %v1125_v50 = vmax.f32 %v1020_v42, 0.0  ;;  %v695_v51 = vadd.f32 %v3788_v61, %v694_v47  ;;  %v1023_v0 = vadd.f32 %v3788_v61, %v1022_v48  ;;  %v2522_v52 = vpop.f32.mrb[11].mxu0  ;;  %v2586_v53 = vpop.f32.mrb[11].mxu1 }
 0x1ec   : > { %v3832_v54 = vmax.f32 %v797_v49, %v1125_v50  ;;  %v798_v55 = vmax.f32 %v695_v51, 0.0  ;;  %v1126_v56 = vmax.f32 %v1023_v0, 0.0  ;;  %2696 = vmatmul.mubr.msk.bf16.gmra.mrb[116].mxu0 %vm588_vm3, %v2906_v45  ;;  %2760 = vmatmul.mubr.msk.bf16.gmra.mrb[116].mxu1 %vm588_vm3, %v2907_v46 }
 0x1ee   : > { %v3836_v57 = vmax.f32 %v798_v55, %v1126_v56 }
 0x1ef   : > { %v699_v58 = vpop.f32.mrb[12].mxu0  ;;  %v1027_v59 = vpop.f32.mrb[12].mxu1 }
 0x1f0   : > { %v700_v60 = vadd.f32 %v3788_v61, %v699_v58  ;;  %v1028_v62 = vadd.f32 %v3788_v61, %v1027_v59  ;;  %v2525_v63 = vpop.f32.mrb[13].mxu0  ;;  %v2589_v1 = vpop.f32.mrb[13].mxu1 }
 0x1f1   : > { %v702_v2 = vpop.f32.mrb[14].mxu0  ;;  %v1030_v3 = vpop.f32.mrb[14].mxu1 }
 0x1f2   : > { %v799_v4 = vmax.f32 %v700_v60, 0.0  ;;  %v1127_v5 = vmax.f32 %v1028_v62, 0.0  ;;  %v703_v6 = vadd.f32 %v3788_v61, %v702_v2  ;;  %v1031_v7 = vadd.f32 %v3788_v61, %v1030_v3  ;;  %v2526_v8 = vpop.f32.mrb[15].mxu0  ;;  %v2590_v9 = vpop.f32.mrb[15].mxu1 }
 0x1f4   : > { %v3842_v10 = vmax.f32 %v799_v4, %v1127_v5  ;;  %v800_v11 = vmax.f32 %v703_v6, 0.0  ;;  %v1128_v12 = vmax.f32 %v1031_v7, 0.0 }
 0x1f6   : > { %v3844_v13 = vmax.f32 %v800_v11, %v1128_v12 }
 0x1f7   : > { %v707_v14 = vpop.f32.mrb[16].mxu0  ;;  %v1035_v16 = vpop.f32.mrb[16].mxu1 }
 0x1f8   : > { %v708_v17 = vadd.f32 %v3788_v61, %v707_v14  ;;  %v1036_v19 = vadd.f32 %v3788_v61, %v1035_v16  ;;  %v2529_v20 = vpop.f32.mrb[17].mxu0  ;;  %v2593_v21 = vpop.f32.mrb[17].mxu1 }
 0x1f9   : > { %v710_v22 = vpop.f32.mrb[18].mxu0  ;;  %v1038_v23 = vpop.f32.mrb[18].mxu1 }
 0x1fa   : > { %v801_v24 = vmax.f32 %v708_v17, 0.0  ;;  %v1129_v25 = vmax.f32 %v1036_v19, 0.0  ;;  %v711_v26 = vadd.f32 %v3788_v61, %v710_v22  ;;  %v1039_v27 = vadd.f32 %v3788_v61, %v1038_v23  ;;  %v2530_v28 = vpop.f32.mrb[19].mxu0  ;;  %v2594_v29 = vpop.f32.mrb[19].mxu1 }
 0x1fc   : > { %v3850_v30 = vmax.f32 %v801_v24, %v1129_v25  ;;  %v802_v31 = vmax.f32 %v711_v26, 0.0  ;;  %v1130_v32 = vmax.f32 %v1039_v27, 0.0 }
 0x1fe   : > { %v3852_v33 = vmax.f32 %v802_v31, %v1130_v32 }
 0x1ff   : > { %v715_v34 = vpop.f32.mrb[20].mxu0  ;;  %v1043_v36 = vpop.f32.mrb[20].mxu1 }
 0x200   : > { %v716_v37 = vadd.f32 %v3788_v61, %v715_v34  ;;  %v1044_v39 = vadd.f32 %v3788_v61, %v1043_v36  ;;  %v2533_v40 = vpop.f32.mrb[21].mxu0  ;;  %v2597_v41 = vpop.f32.mrb[21].mxu1 }
 0x201   : > { %v718_v42 = vpop.f32.mrb[22].mxu0  ;;  %v1046_v43 = vpop.f32.mrb[22].mxu1 }
 0x202   : > { %v803_v44 = vmax.f32 %v716_v37, 0.0  ;;  %v1131_v45 = vmax.f32 %v1044_v39, 0.0  ;;  %v719_v46 = vadd.f32 %v3788_v61, %v718_v42  ;;  %v1047_v47 = vadd.f32 %v3788_v61, %v1046_v43  ;;  %v2534_v48 = vpop.f32.mrb[23].mxu0  ;;  %v2598_v49 = vpop.f32.mrb[23].mxu1 }
 0x204   : > { %v3858_v50 = vmax.f32 %v803_v44, %v1131_v45  ;;  %v804_v51 = vmax.f32 %v719_v46, 0.0  ;;  %v1132_v0 = vmax.f32 %v1047_v47, 0.0 }
 0x206   : > { %v3860_v52 = vmax.f32 %v804_v51, %v1132_v0 }
 0x207   : > { %v723_v53 = vpop.f32.mrb[24].mxu0  ;;  %v1051_v55 = vpop.f32.mrb[24].mxu1 }
 0x208   : > { %v724_v56 = vadd.f32 %v3788_v61, %v723_v53  ;;  %v1052_v58 = vadd.f32 %v3788_v61, %v1051_v55  ;;  %v2537_v59 = vpop.f32.mrb[25].mxu0  ;;  %v2601_v60 = vpop.f32.mrb[25].mxu1 }
 0x209   : > { %v726_v62 = vpop.f32.mrb[26].mxu0  ;;  %v1054_v63 = vpop.f32.mrb[26].mxu1 }
 0x20a   : > { %v805_v1 = vmax.f32 %v724_v56, 0.0  ;;  %v1133_v2 = vmax.f32 %v1052_v58, 0.0  ;;  %v727_v3 = vadd.f32 %v3788_v61, %v726_v62  ;;  %v1055_v4 = vadd.f32 %v3788_v61, %v1054_v63  ;;  %v2538_v5 = vpop.f32.mrb[27].mxu0  ;;  %v2602_v6 = vpop.f32.mrb[27].mxu1 }
 0x20c   : > { %v3866_v7 = vmax.f32 %v805_v1, %v1133_v2  ;;  %v806_v8 = vmax.f32 %v727_v3, 0.0  ;;  %v1134_v9 = vmax.f32 %v1055_v4, 0.0 }
 0x20e   : > { %v3868_v11 = vmax.f32 %v806_v8, %v1134_v9 }
 0x20f   : > { %v731_v12 = vpop.f32.mrb[28].mxu0  ;;  %v1059_v14 = vpop.f32.mrb[28].mxu1 }
 0x210   : > { %v732_v16 = vadd.f32 %v3788_v61, %v731_v12  ;;  %v1060_v17 = vadd.f32 %v3788_v61, %v1059_v14  ;;  %v2541_v19 = vpop.f32.mrb[29].mxu0  ;;  %v2605_v20 = vpop.f32.mrb[29].mxu1 }
 0x211   : > { %v734_v21 = vpop.f32.mrb[30].mxu0  ;;  %v1062_v22 = vpop.f32.mrb[30].mxu1 }
 0x212   : > { %v807_v23 = vmax.f32 %v732_v16, 0.0  ;;  %v1135_v24 = vmax.f32 %v1060_v17, 0.0  ;;  %v735_v25 = vadd.f32 %v3788_v61, %v734_v21  ;;  %v1063_v26 = vadd.f32 %v3788_v61, %v1062_v22  ;;  %v2542_v27 = vpop.f32.mrb[31].mxu0  ;;  %v2606_v28 = vpop.f32.mrb[31].mxu1 }
 0x214   : > { %v3874_v29 = vmax.f32 %v807_v23, %v1135_v24  ;;  %v808_v31 = vmax.f32 %v735_v25, 0.0  ;;  %v1136_v32 = vmax.f32 %v1063_v26, 0.0 }
 0x216   : > { %v3876_v34 = vmax.f32 %v808_v31, %v1136_v32 }
 0x217   : > { %v739_v36 = vpop.f32.mrb[32].mxu0  ;;  %v1067_v37 = vpop.f32.mrb[32].mxu1 }
 0x218   : > { %v740_v39 = vadd.f32 %v3788_v61, %v739_v36  ;;  %v1068_v40 = vadd.f32 %v3788_v61, %v1067_v37  ;;  %v2545_v41 = vpop.f32.mrb[33].mxu0  ;;  %v2609_v42 = vpop.f32.mrb[33].mxu1 }
 0x219   : > { %v742_v43 = vpop.f32.mrb[34].mxu0  ;;  %v1070_v44 = vpop.f32.mrb[34].mxu1 }
 0x21a   : > { %v809_v45 = vmax.f32 %v740_v39, 0.0  ;;  %v1137_v46 = vmax.f32 %v1068_v40, 0.0  ;;  %v743_v47 = vadd.f32 %v3788_v61, %v742_v43  ;;  %v1071_v48 = vadd.f32 %v3788_v61, %v1070_v44  ;;  %v2546_v49 = vpop.f32.mrb[35].mxu0  ;;  %v2610_v51 = vpop.f32.mrb[35].mxu1 }
 0x21c   : > { %v3882_v0 = vmax.f32 %v809_v45, %v1137_v46  ;;  %v810_v53 = vmax.f32 %v743_v47, 0.0  ;;  %v1138_v55 = vmax.f32 %v1071_v48, 0.0 }
 0x21e   : > { %v3884_v56 = vmax.f32 %v810_v53, %v1138_v55 }
 0x21f   : > { %v747_v58 = vpop.f32.mrb[36].mxu0  ;;  %v1075_v59 = vpop.f32.mrb[36].mxu1 }
 0x220   : > { %v748_v60 = vadd.f32 %v3788_v61, %v747_v58  ;;  %v1076_v62 = vadd.f32 %v3788_v61, %v1075_v59  ;;  %v2549_v63 = vpop.f32.mrb[37].mxu0  ;;  %v2613_v1 = vpop.f32.mrb[37].mxu1 }
 0x221   : > { %v750_v2 = vpop.f32.mrb[38].mxu0  ;;  %v1078_v3 = vpop.f32.mrb[38].mxu1 }
 0x222   : > { %v811_v4 = vmax.f32 %v748_v60, 0.0  ;;  %v1139_v5 = vmax.f32 %v1076_v62, 0.0  ;;  %v751_v6 = vadd.f32 %v3788_v61, %v750_v2  ;;  %v1079_v8 = vadd.f32 %v3788_v61, %v1078_v3  ;;  %v2550_v9 = vpop.f32.mrb[39].mxu0  ;;  %v2614_v12 = vpop.f32.mrb[39].mxu1 }
 0x224   : > { %v3890_v14 = vmax.f32 %v811_v4, %v1139_v5  ;;  %v812_v16 = vmax.f32 %v751_v6, 0.0  ;;  %v1140_v17 = vmax.f32 %v1079_v8, 0.0 }
 0x226   : > { %v3892_v19 = vmax.f32 %v812_v16, %v1140_v17 }
 0x227   : > { %v755_v20 = vpop.f32.mrb[40].mxu0  ;;  %v1083_v21 = vpop.f32.mrb[40].mxu1 }
 0x228   : > { %v756_v22 = vadd.f32 %v3788_v61, %v755_v20  ;;  %v1084_v23 = vadd.f32 %v3788_v61, %v1083_v21  ;;  %v2553_v24 = vpop.f32.mrb[41].mxu0  ;;  %v2617_v25 = vpop.f32.mrb[41].mxu1 }
 0x229   : > { %v758_v26 = vpop.f32.mrb[42].mxu0  ;;  %v1086_v27 = vpop.f32.mrb[42].mxu1 }
 0x22a   : > { %v813_v28 = vmax.f32 %v756_v22, 0.0  ;;  %v1141_v31 = vmax.f32 %v1084_v23, 0.0  ;;  %v759_v32 = vadd.f32 %v3788_v61, %v758_v26  ;;  %v1087_v36 = vadd.f32 %v3788_v61, %v1086_v27  ;;  %v2554_v37 = vpop.f32.mrb[43].mxu0  ;;  %v2618_v39 = vpop.f32.mrb[43].mxu1 }
 0x22c   : > { %v3898_v40 = vmax.f32 %v813_v28, %v1141_v31  ;;  %v814_v41 = vmax.f32 %v759_v32, 0.0  ;;  %v1142_v42 = vmax.f32 %v1087_v36, 0.0 }
 0x22e   : > { %v3900_v43 = vmax.f32 %v814_v41, %v1142_v42 }
 0x22f   : > { %v763_v44 = vpop.f32.mrb[44].mxu0  ;;  %v1091_v45 = vpop.f32.mrb[44].mxu1 }
 0x230   : > { %v764_v46 = vadd.f32 %v3788_v61, %v763_v44  ;;  %v1092_v47 = vadd.f32 %v3788_v61, %v1091_v45  ;;  %v2557_v48 = vpop.f32.mrb[45].mxu0  ;;  %v2621_v49 = vpop.f32.mrb[45].mxu1 }
 0x231   : > { %v766_v51 = vpop.f32.mrb[46].mxu0  ;;  %v1094_v53 = vpop.f32.mrb[46].mxu1 }
 0x232   : > { %v815_v55 = vmax.f32 %v764_v46, 0.0  ;;  %v1143_v58 = vmax.f32 %v1092_v47, 0.0  ;;  %v767_v59 = vadd.f32 %v3788_v61, %v766_v51  ;;  %v1095_v60 = vadd.f32 %v3788_v61, %v1094_v53  ;;  %v2558_v62 = vpop.f32.mrb[47].mxu0  ;;  %v2622_v63 = vpop.f32.mrb[47].mxu1 }
 0x234   : > { %v3906_v1 = vmax.f32 %v815_v55, %v1143_v58  ;;  %v816_v2 = vmax.f32 %v767_v59, 0.0  ;;  %v1144_v3 = vmax.f32 %v1095_v60, 0.0 }
 0x236   : > { %v3908_v4 = vmax.f32 %v816_v2, %v1144_v3 }
 0x237   : > { %v771_v5 = vpop.f32.mrb[48].mxu0  ;;  %v1099_v6 = vpop.f32.mrb[48].mxu1 }
 0x238   : > { %v772_v8 = vadd.f32 %v3788_v61, %v771_v5  ;;  %v1100_v9 = vadd.f32 %v3788_v61, %v1099_v6  ;;  %v2561_v12 = vpop.f32.mrb[49].mxu0  ;;  %v2625_v16 = vpop.f32.mrb[49].mxu1 }
 0x239   : > { %v774_v17 = vpop.f32.mrb[50].mxu0  ;;  %v1102_v20 = vpop.f32.mrb[50].mxu1 }
 0x23a   : > { %v817_v21 = vmax.f32 %v772_v8, 0.0  ;;  %v1145_v22 = vmax.f32 %v1100_v9, 0.0  ;;  %v775_v23 = vadd.f32 %v3788_v61, %v774_v17  ;;  %v1103_v24 = vadd.f32 %v3788_v61, %v1102_v20  ;;  %v2562_v25 = vpop.f32.mrb[51].mxu0  ;;  %v2626_v26 = vpop.f32.mrb[51].mxu1 }
 0x23c   : > { %v3914_v27 = vmax.f32 %v817_v21, %v1145_v22  ;;  %v818_v28 = vmax.f32 %v775_v23, 0.0  ;;  %v1146_v31 = vmax.f32 %v1103_v24, 0.0 }
 0x23e   : > { %v3916_v32 = vmax.f32 %v818_v28, %v1146_v31 }
 0x23f   : > { %v779_v36 = vpop.f32.mrb[52].mxu0  ;;  %v1107_v37 = vpop.f32.mrb[52].mxu1 }
 0x240   : > { %v780_v39 = vadd.f32 %v3788_v61, %v779_v36  ;;  %v1108_v41 = vadd.f32 %v3788_v61, %v1107_v37  ;;  %v2565_v42 = vpop.f32.mrb[53].mxu0  ;;  %v2629_v44 = vpop.f32.mrb[53].mxu1 }
 0x241   : > { %v782_v45 = vpop.f32.mrb[54].mxu0  ;;  %v1110_v46 = vpop.f32.mrb[54].mxu1 }
 0x242   : > { %v819_v47 = vmax.f32 %v780_v39, 0.0  ;;  %v1147_v48 = vmax.f32 %v1108_v41, 0.0  ;;  %v783_v49 = vadd.f32 %v3788_v61, %v782_v45  ;;  %v1111_v51 = vadd.f32 %v3788_v61, %v1110_v46  ;;  %v2566_v53 = vpop.f32.mrb[55].mxu0  ;;  %v2630_v55 = vpop.f32.mrb[55].mxu1 }
 0x244   : > { %v3922_v58 = vmax.f32 %v819_v47, %v1147_v48  ;;  %v820_v59 = vmax.f32 %v783_v49, 0.0  ;;  %v1148_v60 = vmax.f32 %v1111_v51, 0.0 }
 0x246   : > { %v3924_v62 = vmax.f32 %v820_v59, %v1148_v60 }
 0x247   : > { %v787_v63 = vpop.f32.mrb[56].mxu0  ;;  %v1115_v2 = vpop.f32.mrb[56].mxu1 }
 0x248   : > { %v788_v3 = vadd.f32 %v3788_v61, %v787_v63  ;;  %v1116_v5 = vadd.f32 %v3788_v61, %v1115_v2  ;;  %v2569_v6 = vpop.f32.mrb[57].mxu0  ;;  %v2633_v8 = vpop.f32.mrb[57].mxu1 }
 0x249   : > { %v790_v9 = vpop.f32.mrb[58].mxu0  ;;  %v1118_v12 = vpop.f32.mrb[58].mxu1 }
 0x24a   : > { %v821_v16 = vmax.f32 %v788_v3, 0.0  ;;  %v1149_v17 = vmax.f32 %v1116_v5, 0.0  ;;  %v2570_v20 = vpop.f32.mrb[59].mxu0  ;;  %v2634_v21 = vpop.f32.mrb[59].mxu1 }
 0x24c   : > { %v3928_v22 = vmax.f32 %v821_v16, %v1149_v17 }
 0x24f   : > { %v1360_v23 = vpop.f32.mrb[60].mxu0  ;;  %v1688_v24 = vpop.f32.mrb[60].mxu1 }
 0x250   : > { %v1361_v25 = vadd.f32 %v3788_v61, %v1360_v23  ;;  %v1689_v26 = vadd.f32 %v3788_v61, %v1688_v24  ;;  %v2641_v28 = vpop.f32.mrb[61].mxu0  ;;  %v2705_v31 = vpop.f32.mrb[61].mxu1 }
 0x251   : > { %v1363_v36 = vpop.f32.mrb[62].mxu0  ;;  %v1691_v37 = vpop.f32.mrb[62].mxu1 }
 0x252   : > { %v1478_v39 = vmax.f32 %v1361_v25, 0.0  ;;  %v1806_v41 = vmax.f32 %v1689_v26, 0.0  ;;  %v1364_v42 = vadd.f32 %v3788_v61, %v1363_v36  ;;  %v1692_v44 = vadd.f32 %v3788_v61, %v1691_v37  ;;  %v2642_v45 = vpop.f32.mrb[63].mxu0  ;;  %v2706_v46 = vpop.f32.mrb[63].mxu1 }
 0x254   : > { %v1835_v47 = vmax.f32 %v1478_v39, %v1806_v41  ;;  %v1479_v48 = vmax.f32 %v1364_v42, 0.0  ;;  %v1807_v49 = vmax.f32 %v1692_v44, 0.0 }
 0x256   : > { %v1864_v51 = vmax.f32 %v3800_v15, %v1835_v47  ;;  %v1836_v53 = vmax.f32 %v1479_v48, %v1807_v49 }
 0x257   : > { %v1368_v55 = vpop.f32.mrb[64].mxu0  ;;  %v1696_v59 = vpop.f32.mrb[64].mxu1 }
 0x258   : > { %v2409_v60 = vpack.c.bf16 %v1864_v51, %v1864_v51  ;;  %v1865_v63 = vmax.f32 %v3808_v18, %v1836_v53  ;;  %v1369_v2 = vadd.f32 %v3788_v61, %v1368_v55  ;;  %v1697_v3 = vadd.f32 %v3788_v61, %v1696_v59  ;;  %v2645_v5 = vpop.f32.mrb[65].mxu0  ;;  %v2709_v6 = vpop.f32.mrb[65].mxu1 }
 0x259   : > { %v1371_v8 = vpop.f32.mrb[66].mxu0  ;;  %v1699_v9 = vpop.f32.mrb[66].mxu1 }
 0x25a   : > { %2011 = vst.msk [vmem:[%s3939_s8] sm:$0xf] %vm2010_vm4, %v2409_v60  ;;  %v2410_v15 = vpack.c.bf16 %v1865_v63, %v1865_v63  ;;  %v1480_v12 = vmax.f32 %v1369_v2, 0.0  ;;  %v1808_v16 = vmax.f32 %v1697_v3, 0.0  ;;  %v1372_v17 = vadd.f32 %v3788_v61, %v1371_v8  ;;  %v2646_v18 = vpop.f32.mrb[67].mxu0  ;;  %v2710_v20 = vpop.f32.mrb[67].mxu1 }
 0x25b   : > { %v1700_v21 = vadd.f32 %v3788_v61, %v1699_v9 }
 0x25c   : > { %2012 = vst.msk [vmem:[%s3939_s8 + $0x4] sm:$0xf] %vm2010_vm4, %v2410_v15  ;;  %v1837_v23 = vmax.f32 %v1480_v12, %v1808_v16  ;;  %v1481_v24 = vmax.f32 %v1372_v17, 0.0 }
 0x25d   : > { %v1809_v25 = vmax.f32 %v1700_v21, 0.0 }
 0x25e   : > { %v1866_v26 = vmax.f32 %v3816_v35, %v1837_v23 }
 0x25f   : > { %v1838_v28 = vmax.f32 %v1481_v24, %v1809_v25  ;;  %v1376_v31 = vpop.f32.mrb[68].mxu0  ;;  %v1704_v36 = vpop.f32.mrb[68].mxu1 }
 0x260   : > { %v2411_v37 = vpack.c.bf16 %v1866_v26, %v1866_v26  ;;  %v1377_v39 = vadd.f32 %v3788_v61, %v1376_v31  ;;  %v1705_v41 = vadd.f32 %v3788_v61, %v1704_v36  ;;  %v2649_v42 = vpop.f32.mrb[69].mxu0  ;;  %v2713_v44 = vpop.f32.mrb[69].mxu1 }
 0x261   : > { %v1867_v45 = vmax.f32 %v3824_v38, %v1838_v28  ;;  %v1379_v46 = vpop.f32.mrb[70].mxu0  ;;  %v1707_v47 = vpop.f32.mrb[70].mxu1 }
 0x262   : > { %2013 = vst.msk [vmem:[%s3939_s8 + $0x8] sm:$0xf] %vm2010_vm4, %v2411_v37  ;;  %v1482_v48 = vmax.f32 %v1377_v39, 0.0  ;;  %v1810_v49 = vmax.f32 %v1705_v41, 0.0  ;;  %v1380_v35 = vadd.f32 %v3788_v61, %v1379_v46  ;;  %v1708_v51 = vadd.f32 %v3788_v61, %v1707_v47  ;;  %v2650_v53 = vpop.f32.mrb[71].mxu0  ;;  %v2714_v55 = vpop.f32.mrb[71].mxu1 }
 0x263   : > { %v2412_v59 = vpack.c.bf16 %v1867_v45, %v1867_v45 }
 0x264   : > { %v1839_v60 = vmax.f32 %v1482_v48, %v1810_v49  ;;  %v1483_v63 = vmax.f32 %v1380_v35, 0.0  ;;  %v1811_v2 = vmax.f32 %v1708_v51, 0.0 }
 0x265   : > { %2014 = vst.msk [vmem:[%s3939_s8 + $0xc] sm:$0xf] %vm2010_vm4, %v2412_v59 }
 0x266   : > { %v1868_v38 = vmax.f32 %v3832_v54, %v1839_v60  ;;  %v1840_v3 = vmax.f32 %v1483_v63, %v1811_v2 }
 0x267   : > { %v1384_v5 = vpop.f32.mrb[72].mxu0  ;;  %v1712_v6 = vpop.f32.mrb[72].mxu1 }
 0x268   : > { %v2413_v8 = vpack.c.bf16 %v1868_v38, %v1868_v38  ;;  %v1869_v9 = vmax.f32 %v3836_v57, %v1840_v3  ;;  %v1385_v15 = vadd.f32 %v3788_v61, %v1384_v5  ;;  %v1713_v12 = vadd.f32 %v3788_v61, %v1712_v6  ;;  %v2653_v16 = vpop.f32.mrb[73].mxu0  ;;  %v2717_v17 = vpop.f32.mrb[73].mxu1 }
 0x269   : > { %v1387_v18 = vpop.f32.mrb[74].mxu0  ;;  %v1715_v20 = vpop.f32.mrb[74].mxu1 }
 0x26a   : > { %2015 = vst.msk [vmem:[%s3939_s8 + $0x10] sm:$0xf] %vm2010_vm4, %v2413_v8  ;;  %v2414_v21 = vpack.c.bf16 %v1869_v9, %v1869_v9  ;;  %v1484_v23 = vmax.f32 %v1385_v15, 0.0  ;;  %v1812_v54 = vmax.f32 %v1713_v12, 0.0  ;;  %v1388_v24 = vadd.f32 %v3788_v61, %v1387_v18  ;;  %v2654_v25 = vpop.f32.mrb[75].mxu0  ;;  %v2718_v26 = vpop.f32.mrb[75].mxu1 }
 0x26b   : > { %v1716_v28 = vadd.f32 %v3788_v61, %v1715_v20 }
 0x26c   : > { %2016 = vst.msk [vmem:[%s3939_s8 + $0x14] sm:$0xf] %vm2010_vm4, %v2414_v21  ;;  %v1841_v57 = vmax.f32 %v1484_v23, %v1812_v54  ;;  %v1485_v31 = vmax.f32 %v1388_v24, 0.0 }
 0x26d   : > { %v1813_v36 = vmax.f32 %v1716_v28, 0.0 }
 0x26e   : > { %v1870_v37 = vmax.f32 %v3842_v10, %v1841_v57 }
 0x26f   : > { %v1842_v39 = vmax.f32 %v1485_v31, %v1813_v36  ;;  %v1392_v41 = vpop.f32.mrb[76].mxu0  ;;  %v1720_v42 = vpop.f32.mrb[76].mxu1 }
 0x270   : > { %v2415_v44 = vpack.c.bf16 %v1870_v37, %v1870_v37  ;;  %v1393_v45 = vadd.f32 %v3788_v61, %v1392_v41  ;;  %v1721_v46 = vadd.f32 %v3788_v61, %v1720_v42  ;;  %v2657_v47 = vpop.f32.mrb[77].mxu0  ;;  %v2721_v48 = vpop.f32.mrb[77].mxu1 }
 0x271   : > { %v1871_v49 = vmax.f32 %v3844_v13, %v1842_v39  ;;  %v1395_v35 = vpop.f32.mrb[78].mxu0  ;;  %v1723_v51 = vpop.f32.mrb[78].mxu1 }
 0x272   : > { %2017 = vst.msk [vmem:[%s3939_s8 + $0x18] sm:$0xf] %vm2010_vm4, %v2415_v44  ;;  %v1486_v53 = vmax.f32 %v1393_v45, 0.0  ;;  %v1814_v55 = vmax.f32 %v1721_v46, 0.0  ;;  %v1396_v10 = vadd.f32 %v3788_v61, %v1395_v35  ;;  %v1724_v59 = vadd.f32 %v3788_v61, %v1723_v51  ;;  %v2658_v60 = vpop.f32.mrb[79].mxu0  ;;  %v2722_v63 = vpop.f32.mrb[79].mxu1 }
 0x273   : > { %v2416_v2 = vpack.c.bf16 %v1871_v49, %v1871_v49 }
 0x274   : > { %v1843_v38 = vmax.f32 %v1486_v53, %v1814_v55  ;;  %v1487_v3 = vmax.f32 %v1396_v10, 0.0  ;;  %v1815_v5 = vmax.f32 %v1724_v59, 0.0 }
 0x275   : > { %2018 = vst.msk [vmem:[%s3939_s8 + $0x1c] sm:$0xf] %vm2010_vm4, %v2416_v2 }
 0x276   : > { %v1872_v13 = vmax.f32 %v3850_v30, %v1843_v38  ;;  %v1844_v6 = vmax.f32 %v1487_v3, %v1815_v5 }
 0x277   : > { %v1400_v8 = vpop.f32.mrb[80].mxu0  ;;  %v1728_v9 = vpop.f32.mrb[80].mxu1 }
 0x278   : > { %v2417_v15 = vpack.c.bf16 %v1872_v13, %v1872_v13  ;;  %v1873_v12 = vmax.f32 %v3852_v33, %v1844_v6  ;;  %v1401_v16 = vadd.f32 %v3788_v61, %v1400_v8  ;;  %v1729_v17 = vadd.f32 %v3788_v61, %v1728_v9  ;;  %v2661_v18 = vpop.f32.mrb[81].mxu0  ;;  %v2725_v20 = vpop.f32.mrb[81].mxu1 }
 0x279   : > { %v1403_v21 = vpop.f32.mrb[82].mxu0  ;;  %v1731_v23 = vpop.f32.mrb[82].mxu1 }
 0x27a   : > { %2019 = vst.msk [vmem:[%s3939_s8 + $0x20] sm:$0xf] %vm2010_vm4, %v2417_v15  ;;  %v2418_v54 = vpack.c.bf16 %v1873_v12, %v1873_v12  ;;  %v1488_v24 = vmax.f32 %v1401_v16, 0.0  ;;  %v1816_v30 = vmax.f32 %v1729_v17, 0.0  ;;  %v1404_v25 = vadd.f32 %v3788_v61, %v1403_v21  ;;  %v2662_v26 = vpop.f32.mrb[83].mxu0  ;;  %v2726_v28 = vpop.f32.mrb[83].mxu1 }
 0x27b   : > { %v1732_v57 = vadd.f32 %v3788_v61, %v1731_v23 }
 0x27c   : > { %2020 = vst.msk [vmem:[%s3939_s8 + $0x24] sm:$0xf] %vm2010_vm4, %v2418_v54  ;;  %v1845_v33 = vmax.f32 %v1488_v24, %v1816_v30  ;;  %v1489_v31 = vmax.f32 %v1404_v25, 0.0 }
 0x27d   : > { %v1817_v36 = vmax.f32 %v1732_v57, 0.0 }
 0x27e   : > { %v1874_v37 = vmax.f32 %v3858_v50, %v1845_v33 }
 0x27f   : > { %v1846_v39 = vmax.f32 %v1489_v31, %v1817_v36  ;;  %v1408_v41 = vpop.f32.mrb[84].mxu0  ;;  %v1736_v42 = vpop.f32.mrb[84].mxu1 }
 0x280   : > { %v2419_v44 = vpack.c.bf16 %v1874_v37, %v1874_v37  ;;  %v1409_v45 = vadd.f32 %v3788_v61, %v1408_v41  ;;  %v1737_v46 = vadd.f32 %v3788_v61, %v1736_v42  ;;  %v2665_v47 = vpop.f32.mrb[85].mxu0  ;;  %v2729_v48 = vpop.f32.mrb[85].mxu1 }
 0x281   : > { %v1875_v49 = vmax.f32 %v3860_v52, %v1846_v39  ;;  %v1411_v35 = vpop.f32.mrb[86].mxu0  ;;  %v1739_v51 = vpop.f32.mrb[86].mxu1 }
 0x282   : > { %2021 = vst.msk [vmem:[%s3939_s8 + $0x28] sm:$0xf] %vm2010_vm4, %v2419_v44  ;;  %v1490_v53 = vmax.f32 %v1409_v45, 0.0  ;;  %v1818_v55 = vmax.f32 %v1737_v46, 0.0  ;;  %v1412_v50 = vadd.f32 %v3788_v61, %v1411_v35  ;;  %v1740_v10 = vadd.f32 %v3788_v61, %v1739_v51  ;;  %v2666_v59 = vpop.f32.mrb[87].mxu0  ;;  %v2730_v60 = vpop.f32.mrb[87].mxu1 }
 0x283   : > { %v2420_v63 = vpack.c.bf16 %v1875_v49, %v1875_v49 }
 0x284   : > { %v1847_v2 = vmax.f32 %v1490_v53, %v1818_v55  ;;  %v1491_v38 = vmax.f32 %v1412_v50, 0.0  ;;  %v1819_v3 = vmax.f32 %v1740_v10, 0.0 }
 0x285   : > { %2022 = vst.msk [vmem:[%s3939_s8 + $0x2c] sm:$0xf] %vm2010_vm4, %v2420_v63 }
 0x286   : > { %v1876_v52 = vmax.f32 %v3866_v7, %v1847_v2  ;;  %v1848_v5 = vmax.f32 %v1491_v38, %v1819_v3 }
 0x287   : > { %v1416_v13 = vpop.f32.mrb[88].mxu0  ;;  %v1744_v6 = vpop.f32.mrb[88].mxu1 }
 0x288   : > { %v2421_v8 = vpack.c.bf16 %v1876_v52, %v1876_v52  ;;  %v1877_v9 = vmax.f32 %v3868_v11, %v1848_v5  ;;  %v1417_v15 = vadd.f32 %v3788_v61, %v1416_v13  ;;  %v1745_v12 = vadd.f32 %v3788_v61, %v1744_v6  ;;  %v2669_v16 = vpop.f32.mrb[89].mxu0  ;;  %v2733_v17 = vpop.f32.mrb[89].mxu1 }
 0x289   : > { %v1419_v18 = vpop.f32.mrb[90].mxu0  ;;  %v1747_v20 = vpop.f32.mrb[90].mxu1 }
 0x28a   : > { %2023 = vst.msk [vmem:[%s3939_s8 + $0x30] sm:$0xf] %vm2010_vm4, %v2421_v8  ;;  %v2422_v21 = vpack.c.bf16 %v1877_v9, %v1877_v9  ;;  %v1492_v23 = vmax.f32 %v1417_v15, 0.0  ;;  %v1820_v7 = vmax.f32 %v1745_v12, 0.0  ;;  %v1420_v54 = vadd.f32 %v3788_v61, %v1419_v18  ;;  %v2670_v24 = vpop.f32.mrb[91].mxu0  ;;  %v2734_v30 = vpop.f32.mrb[91].mxu1 }
 0x28b   : > { %v1748_v25 = vadd.f32 %v3788_v61, %v1747_v20  ;;  %v4024_v20 = vld [vmem:[#allocation11] ss:$0 sm:$0xff] }
 0x28c   : > { %2024 = vst.msk [vmem:[%s3939_s8 + $0x34] sm:$0xf] %vm2010_vm4, %v2422_v21  ;;  %v1849_v11 = vmax.f32 %v1492_v23, %v1820_v7  ;;  %v1493_v26 = vmax.f32 %v1420_v54, 0.0 }
 0x28d   : > { %v1821_v28 = vmax.f32 %v1748_v25, 0.0 }
 0x28e   : > { %v1878_v57 = vmax.f32 %v3874_v29, %v1849_v11 }
 0x28f   : > { %v1850_v33 = vmax.f32 %v1493_v26, %v1821_v28  ;;  %v1424_v31 = vpop.f32.mrb[92].mxu0  ;;  %v1752_v36 = vpop.f32.mrb[92].mxu1 }
 0x290   : > { %v2423_v37 = vpack.c.bf16 %v1878_v57, %v1878_v57  ;;  %v1425_v39 = vadd.f32 %v3788_v61, %v1424_v31  ;;  %v1753_v41 = vadd.f32 %v3788_v61, %v1752_v36  ;;  %v2673_v42 = vpop.f32.mrb[93].mxu0  ;;  %v2737_v44 = vpop.f32.mrb[93].mxu1 }
 0x291   : > { %v1879_v45 = vmax.f32 %v3876_v34, %v1850_v33  ;;  %v1427_v46 = vpop.f32.mrb[94].mxu0  ;;  %v1755_v47 = vpop.f32.mrb[94].mxu1 }
 0x292   : > { %2025 = vst.msk [vmem:[%s3939_s8 + $0x38] sm:$0xf] %vm2010_vm4, %v2423_v37  ;;  %v1494_v48 = vmax.f32 %v1425_v39, 0.0  ;;  %v1822_v49 = vmax.f32 %v1753_v41, 0.0  ;;  %v1428_v29 = vadd.f32 %v3788_v61, %v1427_v46  ;;  %v1756_v35 = vadd.f32 %v3788_v61, %v1755_v47  ;;  %v2674_v51 = vpop.f32.mrb[95].mxu0  ;;  %v2738_v53 = vpop.f32.mrb[95].mxu1 }
 0x293   : > { %v2424_v55 = vpack.c.bf16 %v1879_v45, %v1879_v45 }
 0x294   : > { %v1851_v50 = vmax.f32 %v1494_v48, %v1822_v49  ;;  %v1495_v10 = vmax.f32 %v1428_v29, 0.0  ;;  %v1823_v59 = vmax.f32 %v1756_v35, 0.0 }
 0x295   : > { %2026 = vst.msk [vmem:[%s3939_s8 + $0x3c] sm:$0xf] %vm2010_vm4, %v2424_v55 }
 0x296   : > { %v1880_v34 = vmax.f32 %v3882_v0, %v1851_v50  ;;  %v1852_v60 = vmax.f32 %v1495_v10, %v1823_v59 }
 0x297   : > { %v1432_v63 = vpop.f32.mrb[96].mxu0  ;;  %v1760_v2 = vpop.f32.mrb[96].mxu1 }
 0x298   : > { %v2425_v38 = vpack.c.bf16 %v1880_v34, %v1880_v34  ;;  %v1881_v3 = vmax.f32 %v3884_v56, %v1852_v60  ;;  %v1433_v52 = vadd.f32 %v3788_v61, %v1432_v63  ;;  %v1761_v5 = vadd.f32 %v3788_v61, %v1760_v2  ;;  %v2677_v13 = vpop.f32.mrb[97].mxu0  ;;  %v2741_v6 = vpop.f32.mrb[97].mxu1 }
 0x299   : > { %v1435_v8 = vpop.f32.mrb[98].mxu0  ;;  %v1763_v9 = vpop.f32.mrb[98].mxu1 }
 0x29a   : > { %2027 = vst.msk [vmem:[%s3939_s8 + $0x40] sm:$0xf] %vm2010_vm4, %v2425_v38  ;;  %v2426_v15 = vpack.c.bf16 %v1881_v3, %v1881_v3  ;;  %v1496_v12 = vmax.f32 %v1433_v52, 0.0  ;;  %v1824_v0 = vmax.f32 %v1761_v5, 0.0  ;;  %v1436_v16 = vadd.f32 %v3788_v61, %v1435_v8  ;;  %v2678_v17 = vpop.f32.mrb[99].mxu0  ;;  %v2742_v18 = vpop.f32.mrb[99].mxu1 }
 0x29b   : > { %v1764_v56 = vadd.f32 %v4024_v20, %v1763_v9 }
 0x29c   : > { %2028 = vst.msk [vmem:[%s3939_s8 + $0x44] sm:$0xf] %vm2010_vm4, %v2426_v15  ;;  %v1853_v21 = vmax.f32 %v1496_v12, %v1824_v0  ;;  %v1497_v23 = vmax.f32 %v1436_v16, 0.0 }
 0x29d   : > { %v1825_v7 = vmax.f32 %v1764_v56, 0.0 }
 0x29e   : > { %v1882_v54 = vmax.f32 %v3890_v14, %v1853_v21 }
 0x29f   : > { %v1854_v24 = vmax.f32 %v1497_v23, %v1825_v7  ;;  %v1440_v30 = vpop.f32.mrb[100].mxu0  ;;  %v1768_v25 = vpop.f32.mrb[100].mxu1 }
 0x2a0   : > { %v2427_v11 = vpack.c.bf16 %v1882_v54, %v1882_v54  ;;  %v1441_v61 = vadd.f32 %v4024_v20, %v1440_v30  ;;  %v1769_v26 = vadd.f32 %v4024_v20, %v1768_v25  ;;  %v2681_v28 = vpop.f32.mrb[101].mxu0  ;;  %v2745_v57 = vpop.f32.mrb[101].mxu1 }
 0x2a1   : > { %v1883_v33 = vmax.f32 %v3892_v19, %v1854_v24  ;;  %v1443_v31 = vpop.f32.mrb[102].mxu0  ;;  %v1771_v36 = vpop.f32.mrb[102].mxu1 }
 0x2a2   : > { %2029 = vst.msk [vmem:[%s3939_s8 + $0x48] sm:$0xf] %vm2010_vm4, %v2427_v11  ;;  %v1498_v37 = vmax.f32 %v1441_v61, 0.0  ;;  %v1826_v39 = vmax.f32 %v1769_v26, 0.0  ;;  %v1444_v14 = vadd.f32 %v4024_v20, %v1443_v31  ;;  %v1772_v41 = vadd.f32 %v4024_v20, %v1771_v36  ;;  %v2682_v42 = vpop.f32.mrb[103].mxu0  ;;  %v2746_v44 = vpop.f32.mrb[103].mxu1 }
 0x2a3   : > { %v2428_v45 = vpack.c.bf16 %v1883_v33, %v1883_v33 }
 0x2a4   : > { %v1855_v46 = vmax.f32 %v1498_v37, %v1826_v39  ;;  %v1499_v47 = vmax.f32 %v1444_v14, 0.0  ;;  %v1827_v48 = vmax.f32 %v1772_v41, 0.0 }
 0x2a5   : > { %2030 = vst.msk [vmem:[%s3939_s8 + $0x4c] sm:$0xf] %vm2010_vm4, %v2428_v45 }
 0x2a6   : > { %v1884_v19 = vmax.f32 %v3898_v40, %v1855_v46  ;;  %v1856_v49 = vmax.f32 %v1499_v47, %v1827_v48 }
 0x2a7   : > { %v1448_v29 = vpop.f32.mrb[104].mxu0  ;;  %v1776_v35 = vpop.f32.mrb[104].mxu1 }
 0x2a8   : > { %v2429_v51 = vpack.c.bf16 %v1884_v19, %v1884_v19  ;;  %v1885_v53 = vmax.f32 %v3900_v43, %v1856_v49  ;;  %v1449_v55 = vadd.f32 %v4024_v20, %v1448_v29  ;;  %v1777_v50 = vadd.f32 %v4024_v20, %v1776_v35  ;;  %v2685_v10 = vpop.f32.mrb[105].mxu0  ;;  %v2749_v59 = vpop.f32.mrb[105].mxu1 }
 0x2a9   : > { %v1451_v34 = vpop.f32.mrb[106].mxu0  ;;  %v1779_v60 = vpop.f32.mrb[106].mxu1 }
 0x2aa   : > { %2031 = vst.msk [vmem:[%s3939_s8 + $0x50] sm:$0xf] %vm2010_vm4, %v2429_v51  ;;  %v2430_v63 = vpack.c.bf16 %v1885_v53, %v1885_v53  ;;  %v1500_v2 = vmax.f32 %v1449_v55, 0.0  ;;  %v1828_v40 = vmax.f32 %v1777_v50, 0.0  ;;  %v1452_v38 = vadd.f32 %v4024_v20, %v1451_v34  ;;  %v2686_v3 = vpop.f32.mrb[107].mxu0  ;;  %v2750_v52 = vpop.f32.mrb[107].mxu1 }
 0x2ab   : > { %v1780_v5 = vadd.f32 %v4024_v20, %v1779_v60 }
 0x2ac   : > { %2032 = vst.msk [vmem:[%s3939_s8 + $0x54] sm:$0xf] %vm2010_vm4, %v2430_v63  ;;  %v1857_v43 = vmax.f32 %v1500_v2, %v1828_v40  ;;  %v1501_v13 = vmax.f32 %v1452_v38, 0.0 }
 0x2ad   : > { %v1829_v6 = vmax.f32 %v1780_v5, 0.0 }
 0x2ae   : > { %v1886_v8 = vmax.f32 %v3906_v1, %v1857_v43 }
 0x2af   : > { %v1858_v9 = vmax.f32 %v1501_v13, %v1829_v6  ;;  %v1456_v15 = vpop.f32.mrb[108].mxu0  ;;  %v1784_v12 = vpop.f32.mrb[108].mxu1 }
 0x2b0   : > { %v2431_v0 = vpack.c.bf16 %v1886_v8, %v1886_v8  ;;  %v1457_v16 = vadd.f32 %v4024_v20, %v1456_v15  ;;  %v1785_v17 = vadd.f32 %v4024_v20, %v1784_v12  ;;  %v2689_v18 = vpop.f32.mrb[109].mxu0  ;;  %v2753_v56 = vpop.f32.mrb[109].mxu1 }
 0x2b1   : > { %v1887_v21 = vmax.f32 %v3908_v4, %v1858_v9  ;;  %v1459_v23 = vpop.f32.mrb[110].mxu0  ;;  %v1787_v7 = vpop.f32.mrb[110].mxu1 }
 0x2b2   : > { %2033 = vst.msk [vmem:[%s3939_s8 + $0x58] sm:$0xf] %vm2010_vm4, %v2431_v0  ;;  %v1502_v54 = vmax.f32 %v1457_v16, 0.0  ;;  %v1830_v24 = vmax.f32 %v1785_v17, 0.0  ;;  %v1460_v1 = vadd.f32 %v4024_v20, %v1459_v23  ;;  %v1788_v30 = vadd.f32 %v4024_v20, %v1787_v7  ;;  %v2690_v25 = vpop.f32.mrb[111].mxu0  ;;  %v2754_v11 = vpop.f32.mrb[111].mxu1 }
 0x2b3   : > { %v2432_v61 = vpack.c.bf16 %v1887_v21, %v1887_v21 }
 0x2b4   : > { %v1859_v26 = vmax.f32 %v1502_v54, %v1830_v24  ;;  %v1503_v28 = vmax.f32 %v1460_v1, 0.0  ;;  %v1831_v57 = vmax.f32 %v1788_v30, 0.0 }
 0x2b5   : > { %2034 = vst.msk [vmem:[%s3939_s8 + $0x5c] sm:$0xf] %vm2010_vm4, %v2432_v61 }
 0x2b6   : > { %v1888_v4 = vmax.f32 %v3914_v27, %v1859_v26  ;;  %v1860_v33 = vmax.f32 %v1503_v28, %v1831_v57 }
 0x2b7   : > { %v1464_v31 = vpop.f32.mrb[112].mxu0  ;;  %v1792_v36 = vpop.f32.mrb[112].mxu1 }
 0x2b8   : > { %v2433_v37 = vpack.c.bf16 %v1888_v4, %v1888_v4  ;;  %v1889_v39 = vmax.f32 %v3916_v32, %v1860_v33  ;;  %v1465_v14 = vadd.f32 %v4024_v20, %v1464_v31  ;;  %v1793_v41 = vadd.f32 %v4024_v20, %v1792_v36  ;;  %v2693_v42 = vpop.f32.mrb[113].mxu0  ;;  %v2757_v44 = vpop.f32.mrb[113].mxu1 }
 0x2b9   : > { %v1467_v45 = vpop.f32.mrb[114].mxu0  ;;  %v1795_v46 = vpop.f32.mrb[114].mxu1 }
 0x2ba   : > { %2035 = vst.msk [vmem:[%s3939_s8 + $0x60] sm:$0xf] %vm2010_vm4, %v2433_v37  ;;  %v2434_v47 = vpack.c.bf16 %v1889_v39, %v1889_v39  ;;  %v1504_v48 = vmax.f32 %v1465_v14, 0.0  ;;  %v1832_v27 = vmax.f32 %v1793_v41, 0.0  ;;  %v1468_v19 = vadd.f32 %v4024_v20, %v1467_v45  ;;  %v2694_v49 = vpop.f32.mrb[115].mxu0  ;;  %v2758_v29 = vpop.f32.mrb[115].mxu1 }
 0x2bb   : > { %v1796_v35 = vadd.f32 %v4024_v20, %v1795_v46 }
 0x2bc   : > { %2036 = vst.msk [vmem:[%s3939_s8 + $0x64] sm:$0xf] %vm2010_vm4, %v2434_v47  ;;  %v1861_v32 = vmax.f32 %v1504_v48, %v1832_v27  ;;  %v1505_v51 = vmax.f32 %v1468_v19, 0.0 }
 0x2bd   : > { %v1833_v53 = vmax.f32 %v1796_v35, 0.0 }
 0x2be   : > { %v1890_v55 = vmax.f32 %v3922_v58, %v1861_v32 }
 0x2bf   : > { %v1862_v50 = vmax.f32 %v1505_v51, %v1833_v53  ;;  %v1472_v10 = vpop.f32.mrb[116].mxu0  ;;  %v1800_v59 = vpop.f32.mrb[116].mxu1 }
 0x2c0   : > { %v2435_v34 = vpack.c.bf16 %v1890_v55, %v1890_v55  ;;  %v1473_v60 = vadd.f32 %v4024_v20, %v1472_v10  ;;  %v1801_v63 = vadd.f32 %v4024_v20, %v1800_v59  ;;  %v2697_v2 = vpop.f32.mrb[117].mxu0  ;;  %v2761_v40 = vpop.f32.mrb[117].mxu1 }
 0x2c1   : > { %v1891_v38 = vmax.f32 %v3924_v62, %v1862_v50  ;;  %v1475_v3 = vpop.f32.mrb[118].mxu0  ;;  %v1803_v52 = vpop.f32.mrb[118].mxu1 }
 0x2c2   : > { %2037 = vst.msk [vmem:[%s3939_s8 + $0x68] sm:$0xf] %vm2010_vm4, %v2435_v34  ;;  %v1506_v58 = vmax.f32 %v1473_v60, 0.0  ;;  %v1834_v5 = vmax.f32 %v1801_v63, 0.0  ;;  %v2698_v43 = vpop.f32.mrb[119].mxu0  ;;  %v2762_v13 = vpop.f32.mrb[119].mxu1 }
 0x2c3   : > { %v2436_v6 = vpack.c.bf16 %v1891_v38, %v1891_v38 }
 0x2c4   : > { %v1863_v8 = vmax.f32 %v1506_v58, %v1834_v5  ;;  %2047 = sbr.rel (!%p4173_p12) target bundleno = 743 (0x2e7), region = 72 }
 0x2c5   : > { %2038 = vst.msk [vmem:[%s3939_s8 + $0x6c] sm:$0xf] %vm2010_vm4, %v2436_v6 }
 0x2c6   : > { %v1892_v20 = vmax.f32 %v3928_v22, %v1863_v8 }
 0x2c8   : > { %v2437_v9 = vpack.c.bf16 %v1892_v20, %v1892_v20 }
 0x2ca   : > { %2039 = vst.msk [vmem:[%s3939_s8 + $0x70] sm:$0xf] %vm2010_vm4, %v2437_v9 }
 0x2cb   : > { %s4189_s7 = smov (!%p2050_p13, %s2049_s7), 29 }
 0x2cc   : > { %s4084_s12 = sshll.u32 %s4189_s7, 6 }
 0x2cd   : > { %s2054_s19 = ssub.s32 1856, %s4084_s12 }
 0x2ce   : > { %2055 = vsyncadd %s2041_s17, %s2054_s19  ;;  %p2399_p7 = scmp.ne.s32.totalorder %s4084_s12, 0  ;;  %s2438_s9 = smul.u32 1856, %s3239_s25 }
 0x2cf   : > { %s2060_s16 = sshll.u32 %s3939_s8, 4  ;;  %s3180_s30 = smov [#allocation13]   ;;  %s4097_s16 = int_to_ptr.vmem [resolvable:$true] %s2060_s16 }
 0x2d0   : > { %s4095_s27 = scalar_lea.hbm %s4149_s6, %s2438_s9  ;;  %s3077_s11 = scalar_lea.vmem %s4097_s16, %s4084_s12 }
 0x2d1   : > { %p3078_p8 = scmp.ne.s32.totalorder %s4097_s16, %s3077_s11  ;;  %s3081_s18 = sshll.u32 %s3180_s30, 4  ;;  %s3082_s18 = int_to_ptr.vmem [resolvable:$false] %s3081_s18 }
 0x2d2   : > { %s3083_s25 = scalar_lea.vmem %s3082_s18, 3712  ;;  %p3084_p10 = scmp.lt.s32.totalorder %s4097_s16, %s3082_s18 }
 0x2d3   : > { %p3079_p9 = pnand %p3078_p8, %p2399_p7  ;;  %p3085_p1 = scmp.lt.s32.totalorder %s3083_s25, %s3077_s11 }
 0x2d5   : > { %p3080_p3 = pneg %p3079_p9  ;;  %p3086_p5 = por %p3085_p1, %p3084_p10 }
 0x2d7   : > { %p3087_p2 = pnand %p3086_p5, %p3080_p3 }
 0x2d9   : > { %3090 = shalt.err (!%p3087_p2)
}
 0x2da   : > { %s3091_s15 = scalar_lea.hbm %s4095_s27, %s4084_s12  ;;  %s3095_s8 = scalar_lea.hbm %s4149_s6, 3648 }
 0x2db   : > { %p3092_p6 = scmp.ne.s32.totalorder %s4095_s27, %s3091_s15  ;;  %p3096_p12 = scmp.lt.u32.totalorder %s4095_s27, %s4149_s6 }
 0x2dc   : > { %p3097_p13 = scmp.lt.u32.totalorder %s3095_s8, %s3091_s15  ;;  %p3099_p9 = scmp.lt.u32.totalorder %s3091_s15, %s4095_s27 }
 0x2dd   : > { %p3093_p11 = pnand %p3092_p6, %p2399_p7 }
 0x2de   : > { %p3098_p8 = por %p3097_p13, %p3096_p12 }
 0x2df   : > { %p3094_p0 = pneg %p3093_p11 }
 0x2e0   : > { %p3100_p3 = por %p3099_p9, %p3098_p8 }
 0x2e2   : > { %p3101_p10 = pnand %p3100_p3, %p3094_p0 }
 0x2e4   : > { %3104 = shalt.err (!%p3101_p10)
}
 0x2e5   : > { %s3181_s19 = smov 64   ;;  %s3182_s9 = smov 4  }
 0x2e6   : > { %2066 = dma.vmem_to_hbm [thread:$0]  (%p2399_p7), %s4097_s16, %s4084_s12, %s4095_s27, %s2041_s17, %s3181_s19, %s3181_s19, %s3182_s9  }
 0x2e7 PF: > { %s2075_s13 = sand.u32 1, %s3147_s21   ;;  %p4174_p1 = scmp.ne.s32.totalorder %s4160_s10, 0 }
 0x2e8   : > { %s2076_s14 = scalar_lea.sflag [#allocation4], %s2075_s13 }
 0x2e9   : > { %p2789_p5 = pnand %p2222_p4, %p4174_p1 }
 0x2eb   : > { %3142 = dma.done.wait (!%p2789_p5), %s2076_s14, 1856  }
 0x2ec   : > { %3144 = vsyncadd (!%p2789_p5), %s2076_s14, 4294965440  ;;  %s4175_s24 = sld [smem:[#allocation20_spill]]  ;;  %s4176_s11 = sld [smem:[#allocation21_spill]] }
 0x2ed   : > { %s4177_s21 = smov %s3151_s22  ;;  %s4178_s22 = smov %s3155_s23 }
 0x2f2   : > { %p26_p2 = scmp.ge.s32.totalorder %s4175_s24, 4   ;;  %s4179_s23 = smov %s4176_s11 }
 0x2f4   :  { %28 = sbr.rel (!%p26_p2) target bundleno = 10 (0xa), region = 134 }
 0x2fb   :  { %2081 = vsyncpa [#allocation3], 1 }
 0x2fc   :  { %2083 = vsyncpa [#allocation3 + $0x1], 1 }
 0x2fd   :  { %2084 = vsyncpa [#allocation6], 1 }
 0x2fe   :  { %2086 = vsyncpa [#allocation6 + $0x1], 1 }
 0x2ff   :  { %2087 = vsyncpa [#allocation9], 1 }
 0x300   :  { %2089 = vsyncpa [#allocation9 + $0x1], 1 }
 0x301   :  { %2090 = vsyncpa [#allocation12], 1 }
 0x302   :  { %2091 = vsyncpa [#allocation4], 1 }
 0x303   :  { %2093 = vsyncpa [#allocation4 + $0x1], 1 }

// kernel: forward.4
= control target key start
LH: loop header
LB: loop body
LE: loop exit
PB: predicated region body
PF: predicated region fallthrough
CT: control target
= control target key end

     0   :  { %11 = vsyncpa [#allocation3], 0  ;;  %s2992_s0 = inlined_call_operand.hbm [shape: bf16[72,288], index: 0, kind: input, shape index: {}]   ;;  %s2993_s1 = inlined_call_operand.hbm [shape: bf16[72,288], index: 1, kind: input, shape index: {}]   ;;  %s2994_s2 = inlined_call_operand.hbm [shape: bf16[72,288], index: 2, kind: input, shape index: {}]   ;;  %s2995_s3 = inlined_call_operand.hbm [shape: bf16[72,288], index: 3, kind: input, shape index: {}]   ;;  %s2996_s4 = inlined_call_operand.hbm [shape: bf16[288,64], index: 4, kind: input, shape index: {}]   ;;  %s2997_s5 = inlined_call_operand.hbm [shape: f32[1,64], index: 5, kind: input, shape index: {}]   ;;  %s2998_s6 = inlined_call_operand.hbm [shape: bf16[72,64], index: 6, kind: output, shape index: {}]  }
   0x1   :  { %13 = vsyncpa [#allocation3 + $0x1], 0 }
   0x2   :  { %14 = vsyncpa [#allocation6], 0 }
   0x3   :  { %16 = vsyncpa [#allocation6 + $0x1], 0 }
   0x4   :  { %17 = vsyncpa [#allocation9], 0 }
   0x5   :  { %19 = vsyncpa [#allocation9 + $0x1], 0 }
   0x6   :  { %20 = vsyncpa [#allocation12], 0 }
   0x7   :  { %21 = vsyncpa [#allocation4], 0 }
   0x8   :  { %23 = vsyncpa [#allocation4 + $0x1], 0  ;;  %s2346_s21 = smov 0   ;;  %s2348_s22 = smov 0  }
   0x9   :  { %s2350_s23 = smov 0   ;;  %s2352_s24 = smov 0  }
   0xa LB: > { %s2367_s25 = sadd.s32 4294967295, %s2288_s24   ;;  %s1552_s26 = sadd.s32 4294967294, %s2288_s24   ;;  %s2288_s24 = sphi %s2352_s24, %s3024_s24   ;;  %s2284_s23 = sphi %s2350_s23, %s3028_s23   ;;  %s2280_s22 = sphi %s2348_s22, %s3027_s22   ;;  %s2276_s21 = sphi %s2346_s21, %s3026_s21  }
   0xb   : > { %s2371_s27 = sadd.s32 1, %s2288_s24   ;;  %s36_s28 = sadd.s32 1, %s2284_s23 }
   0xc   : > { %3004 = sst [smem:[#allocation20_spill]] %s2371_s27  ;;  %s33_s29 = ssub.s32 %s2288_s24, %s2371_s27 }
   0xd   : > { %p43_p0 = scmp.ne.s32.totalorder %s2284_s23, %s2280_s22  ;;  %p34_p1 = scmp.eq.s32.totalorder %s33_s29, 0 }
   0xe   : > { %p44_p2 = scmp.eq.s32.totalorder %s2288_s24, 0  ;;  %p49_p3 = scmp.ne.s32.totalorder %s2280_s22, %s2276_s21 }
   0xf   : > { %p2999_p4 = scmp.eq.s32.totalorder %s2367_s25, 0  ;;  %p193_p7 = scmp.eq.s32.totalorder %s2367_s25, 1 }
  0x10   : > { %s2383_s30 = scalar_select %p34_p1, %s2284_s23, %s36_s28  }
  0x11   : > { %p2385_p5 = por %p44_p2, %p43_p0  ;;  %p2391_p6 = por %p2999_p4, %p49_p3 }
  0x12   : > { %3005 = sst [smem:[#allocation21_spill]] %s2383_s30  ;;  %p199_p8 = scmp.eq.s32.totalorder %s1552_s26, 1 }
  0x13   : > { %s3006_s7 = scalar_select %p2385_p5, 1, 0 }
  0x14   : > { %s3007_s8 = scalar_select %p2391_p6, 1, 0 }
  0x15   : > { %p1553_p9 = scmp.ge.s32.totalorder %s2288_s24, 1  ;;  %p206_p10 = scmp.lt.s32.totalorder %s2288_s24, 3 }
  0x16   : > { %p2398_p11 = por %p193_p7, %p43_p0  ;;  %p2402_p12 = por %p199_p8, %p49_p3 }
  0x17   : > { %p2406_p13 = pnand %p1553_p9, %p206_p10  ;;  %s2290_s12 = smov [#allocation10]  }
  0x18   : > { %s3008_s9 = scalar_select %p2398_p11, 1, 0 }
  0x19   : > { %s3009_s10 = scalar_select %p2402_p12, 1, 0 }
  0x1a   : > { %s3010_s11 = scalar_select %p2406_p13, 1, 0 }
  0x1b   : > { %p1908_p1 = pneg %p2406_p13  ;;  %s218_s13 = sshll.u32 %s2290_s12, 4  ;;  %s219_s13 = int_to_ptr.vmem [resolvable:$true] %s218_s13 }
  0x1c   : > { %s2291_s15 = smov [#allocation11]   ;;  %s2038_s19 = scalar_lea.hbm %s2996_s4, 2304 }
  0x1d   : > { %p2414_p2 = pnand %p1908_p1, %p2999_p4  ;;  %s232_s16 = sshll.u32 %s2291_s15, 4  ;;  %s2418_s16 = int_to_ptr.vmem [resolvable:$true] %s232_s16 }
  0x1e   : > { %p2039_p0 = scmp.ne.s32.totalorder %s2996_s4, %s2038_s19  ;;  %p2045_p9 = scmp.lt.u32.totalorder %s2038_s19, %s2996_s4 }
  0x1f   : > { %p2040_p3 = pneg %p2414_p2 }
  0x21   : > { %p2041_p7 = pnand %p2040_p3, %p2039_p0 }
  0x23   : > { %p2042_p8 = pneg %p2041_p7 }
  0x25   : > { %p2047_p10 = pnand %p2045_p9, %p2042_p8 }
  0x27   : > { %2050 = shalt.err (!%p2047_p10)
}
  0x28   : > { %s2051_s12 = scalar_lea.vmem %s219_s13, 2304  ;;  %p2059_p11 = scmp.lt.s32.totalorder %s219_s13, %s219_s13 }
  0x29   : > { %p2052_p1 = scmp.ne.s32.totalorder %s219_s13, %s2051_s12  ;;  %p2060_p6 = scmp.lt.s32.totalorder %s2051_s12, %s2051_s12 }
  0x2b   : > { %p2054_p4 = pnand %p2052_p1, %p2040_p3  ;;  %p2061_p13 = por %p2060_p6, %p2059_p11 }
  0x2d   : > { %p2055_p12 = pneg %p2054_p4 }
  0x2f   : > { %p2062_p5 = pnand %p2061_p13, %p2055_p12 }
  0x31   : > { %2065 = shalt.err (!%p2062_p5)
}
  0x32   : > { %s2292_s15 = smov 64   ;;  %s2293_s17 = smov 4  }
  0x33   : > { %1911 = dma.hbm_to_vmem [thread:$0]  (!%p2414_p2), %s2996_s4, 2304, %s219_s13, [#allocation9], %s2292_s15, %s2292_s15, %s2293_s17  }
  0x34   : > { %s2066_s28 = scalar_lea.hbm %s2997_s5, 16 }
  0x35   : > { %p2067_p4 = scmp.ne.s32.totalorder %s2997_s5, %s2066_s28  ;;  %p2073_p11 = scmp.lt.u32.totalorder %s2066_s28, %s2997_s5 }
  0x37   : > { %p2069_p5 = pnand %p2067_p4, %p2040_p3 }
  0x39   : > { %p2070_p6 = pneg %p2069_p5 }
  0x3b   : > { %p2075_p12 = pnand %p2073_p11, %p2070_p6 }
  0x3d   : > { %2078 = shalt.err (!%p2075_p12)
}
  0x3e   : > { %s2079_s13 = scalar_lea.vmem %s2418_s16, 16  ;;  %s2086_s30 = scalar_lea.vmem %s2418_s16, 32 }
  0x3f   : > { %p2080_p13 = scmp.ne.s32.totalorder %s2418_s16, %s2079_s13  ;;  %p2087_p8 = scmp.lt.s32.totalorder %s2418_s16, %s2418_s16 }
  0x40   : > { %p2088_p9 = scmp.lt.s32.totalorder %s2086_s30, %s2079_s13 }
  0x41   : > { %p2082_p0 = pnand %p2080_p13, %p2040_p3 }
  0x42   : > { %p2089_p10 = por %p2088_p9, %p2087_p8 }
  0x43   : > { %p2083_p7 = pneg %p2082_p0 }
  0x45   : > { %p2090_p1 = pnand %p2089_p10, %p2083_p7 }
  0x47   : > { %2093 = shalt.err (!%p2090_p1)
}
  0x48   : > { %1914 = dma.hbm_to_vmem [thread:$0]  (!%p2414_p2), %s2997_s5, 16, %s2418_s16, [#allocation12]  }
  0x49   : > { %p1556_p4 = scmp.ge.s32.totalorder %s2288_s24, 2 }
  0x4a   : > { %p3012_p3 = scmp.ne.s32.totalorder (!%p1556_p4), %s3006_s7, 0 }
  0x4b   : > { %239 = sbr.rel (%p1556_p4) target bundleno = 232 (0xe8), region = 24 }
  0x52   : > { %242 = sbr.rel (!%p3012_p3) target bundleno = 118 (0x76), region = 28  ;;  %s243_s17 = sand.u32 (%p3012_p3), 1, %s2284_s23  }
  0x53   : > { %s248_s18 = smul.u32 (%p3012_p3), 5, %s2288_s24  ;;  %s2478_s26 = scalar_lea.sflag (%p3012_p3), [#allocation3], %s243_s17 }
  0x54   : > { %s1885_s19 = smul.u32 (%p3012_p3), 60, %s243_s17 }
  0x55   : > { %s249_s20 = ssub.s32 (%p3012_p3), 9, %s248_s18 }
  0x56   : > { %p250_p5 = scmp.lt.s32.totalorder (%p3012_p3), %s249_s20, 5  ;;  %s247_s28 = scalar_lea.vmem (%p3012_p3), [#allocation2], %s1885_s19 }
  0x59   : > { %s3030_s20 = smov (!%p250_p5, %s249_s20), 5 }
  0x5a   : > { %s2475_s14 = smul.u32 192, %s3030_s20 }
  0x5c   : > { %s255_s16 = ssub.s32 960, %s2475_s14 }
  0x5d   : > { %256 = vsyncadd %s2478_s26, %s255_s16  ;;  %p1559_p2 = scmp.ne.s32.totalorder %s2475_s14, 0  ;;  %s1921_s29 = smul.u32 960, %s2288_s24 }
  0x5e   : > { %s262_s12 = sshll.u32 %s247_s28, 4  ;;  %s2098_s19 = scalar_lea.hbm %s2992_s0, 1728  ;;  %s2488_s12 = int_to_ptr.vmem [resolvable:$true] %s262_s12 }
  0x5f   : > { %s2486_s27 = scalar_lea.hbm %s2992_s0, %s1921_s29 }
  0x60   : > { %s2094_s15 = scalar_lea.hbm %s2486_s27, %s2475_s14  ;;  %p2099_p13 = scmp.lt.u32.totalorder %s2486_s27, %s2992_s0 }
  0x61   : > { %p2095_p6 = scmp.ne.s32.totalorder %s2486_s27, %s2094_s15  ;;  %p2100_p0 = scmp.lt.u32.totalorder %s2098_s19, %s2094_s15 }
  0x62   : > { %p2102_p8 = scmp.lt.u32.totalorder %s2094_s15, %s2486_s27 }
  0x63   : > { %p2096_p11 = pnand %p2095_p6, %p1559_p2  ;;  %p2101_p7 = por %p2100_p0, %p2099_p13 }
  0x65   : > { %p2097_p12 = pneg %p2096_p11  ;;  %p2103_p9 = por %p2102_p8, %p2101_p7 }
  0x67   : > { %p2104_p10 = pnand %p2103_p9, %p2097_p12 }
  0x69   : > { %2107 = shalt.err (!%p2104_p10)
}
  0x6a   : > { %s2108_s28 = scalar_lea.vmem %s2488_s12, %s2475_s14  ;;  %s2294_s29 = smov [#allocation2]  }
  0x6b   : > { %p2109_p1 = scmp.ne.s32.totalorder %s2488_s12, %s2108_s28  ;;  %s2112_s13 = sshll.u32 %s2294_s29, 4  ;;  %s2113_s13 = int_to_ptr.vmem [resolvable:$false] %s2112_s13 }
  0x6c   : > { %s2114_s30 = scalar_lea.vmem %s2113_s13, 1920  ;;  %p2115_p6 = scmp.lt.s32.totalorder %s2488_s12, %s2113_s13 }
  0x6d   : > { %p2110_p3 = pnand %p2109_p1, %p1559_p2  ;;  %p2116_p11 = scmp.lt.s32.totalorder %s2114_s30, %s2108_s28 }
  0x6f   : > { %p2111_p5 = pneg %p2110_p3  ;;  %p2117_p13 = por %p2116_p11, %p2115_p6 }
  0x71   : > { %p2118_p0 = pnand %p2117_p13, %p2111_p5 }
  0x73   : > { %2121 = shalt.err (!%p2118_p0)
}
  0x74   : > { %s2295_s15 = smov 192   ;;  %s2296_s17 = smov 12  }
  0x75   : > { %268 = dma.hbm_to_vmem [thread:$0]  (%p1559_p2), %s2486_s27, %s2475_s14, %s2488_s12, %s2478_s26, %s2295_s15, %s2295_s15, %s2296_s17  }
  0x76 PF: > { %p3013_p12 = scmp.ne.s32.totalorder %s3006_s7, 0 }
  0x77   : > { %s272_s18 = sand.u32 (%p3013_p12), 1, %s2288_s24   ;;  %s274_s19 = sand.u32 (%p3013_p12), 1, %s2284_s23  }
  0x78   : > { %271 = sbr.rel (!%p3013_p12) target bundleno = 156 (0x9c), region = 32  ;;  %s2523_s30 = scalar_lea.sflag (%p3013_p12), [#allocation6], %s272_s18 }
  0x79   : > { %s1887_s20 = smul.u32 (%p3013_p12), 60, %s274_s19 }
  0x7a   : > { %s277_s16 = smul.u32 (%p3013_p12), 5, %s2288_s24 }
  0x7b   : > { %s276_s14 = scalar_lea.vmem (%p3013_p12), [#allocation5], %s1887_s20 }
  0x7c   : > { %s278_s28 = ssub.s32 (%p3013_p12), 9, %s277_s16 }
  0x7d   : > { %p279_p7 = scmp.lt.s32.totalorder (%p3013_p12), %s278_s28, 5 }
  0x7f   : > { %s3032_s28 = smov (!%p279_p7, %s278_s28), 5 }
  0x80   : > { %s2520_s29 = smul.u32 192, %s3032_s28 }
  0x82   : > { %s284_s13 = ssub.s32 960, %s2520_s29 }
  0x83   : > { %285 = vsyncadd %s2523_s30, %s284_s13  ;;  %p1564_p2 = scmp.ne.s32.totalorder %s2520_s29, 0  ;;  %s1922_s26 = smul.u32 960, %s2288_s24 }
  0x84   : > { %s291_s12 = sshll.u32 %s276_s14, 4  ;;  %s2126_s16 = scalar_lea.hbm %s2993_s1, 1728  ;;  %s2533_s12 = int_to_ptr.vmem [resolvable:$true] %s291_s12 }
  0x85   : > { %s2531_s17 = scalar_lea.hbm %s2993_s1, %s1922_s26 }
  0x86   : > { %s2122_s18 = scalar_lea.hbm %s2531_s17, %s2520_s29  ;;  %p2127_p1 = scmp.lt.u32.totalorder %s2531_s17, %s2993_s1 }
  0x87   : > { %p2123_p8 = scmp.ne.s32.totalorder %s2531_s17, %s2122_s18  ;;  %p2128_p3 = scmp.lt.u32.totalorder %s2126_s16, %s2122_s18 }
  0x88   : > { %p2130_p6 = scmp.lt.u32.totalorder %s2122_s18, %s2531_s17 }
  0x89   : > { %p2124_p9 = pnand %p2123_p8, %p1564_p2  ;;  %p2129_p5 = por %p2128_p3, %p2127_p1 }
  0x8b   : > { %p2125_p10 = pneg %p2124_p9  ;;  %p2131_p11 = por %p2130_p6, %p2129_p5 }
  0x8d   : > { %p2132_p13 = pnand %p2131_p11, %p2125_p10 }
  0x8f   : > { %2135 = shalt.err (!%p2132_p13)
}
  0x90   : > { %s2136_s14 = scalar_lea.vmem %s2533_s12, %s2520_s29  ;;  %s2297_s26 = smov [#allocation5]  }
  0x91   : > { %p2137_p0 = scmp.ne.s32.totalorder %s2533_s12, %s2136_s14  ;;  %s2140_s27 = sshll.u32 %s2297_s26, 4  ;;  %s2141_s27 = int_to_ptr.vmem [resolvable:$false] %s2140_s27 }
  0x92   : > { %s2142_s15 = scalar_lea.vmem %s2141_s27, 1920  ;;  %p2143_p8 = scmp.lt.s32.totalorder %s2533_s12, %s2141_s27 }
  0x93   : > { %p2138_p12 = pnand %p2137_p0, %p1564_p2  ;;  %p2144_p9 = scmp.lt.s32.totalorder %s2142_s15, %s2136_s14 }
  0x95   : > { %p2139_p7 = pneg %p2138_p12  ;;  %p2145_p1 = por %p2144_p9, %p2143_p8 }
  0x97   : > { %p2146_p3 = pnand %p2145_p1, %p2139_p7 }
  0x99   : > { %2149 = shalt.err (!%p2146_p3)
}
  0x9a   : > { %s2298_s18 = smov 192   ;;  %s2299_s19 = smov 12  }
  0x9b   : > { %297 = dma.hbm_to_vmem [thread:$0]  (%p1564_p2), %s2531_s17, %s2520_s29, %s2533_s12, %s2523_s30, %s2298_s18, %s2298_s18, %s2299_s19  }
  0x9c PF: > { %p3014_p10 = scmp.ne.s32.totalorder %s3006_s7, 0 }
  0x9d   : > { %s301_s20 = sand.u32 (%p3014_p10), 1, %s2288_s24   ;;  %s303_s16 = sand.u32 (%p3014_p10), 1, %s2284_s23  }
  0x9e   : > { %300 = sbr.rel (!%p3014_p10) target bundleno = 194 (0xc2), region = 36  ;;  %s2568_s15 = scalar_lea.sflag (%p3014_p10), [#allocation6], %s301_s20 }
  0x9f   : > { %s1889_s28 = smul.u32 (%p3014_p10), 60, %s303_s16 }
  0xa0   : > { %s306_s13 = smul.u32 (%p3014_p10), 5, %s2288_s24 }
  0xa1   : > { %s305_s29 = scalar_lea.vmem (%p3014_p10), [#allocation7], %s1889_s28 }
  0xa2   : > { %s307_s14 = ssub.s32 (%p3014_p10), 9, %s306_s13 }
  0xa3   : > { %p308_p5 = scmp.lt.s32.totalorder (%p3014_p10), %s307_s14, 5 }
  0xa5   : > { %s3034_s14 = smov (!%p308_p5, %s307_s14), 5 }
  0xa6   : > { %s2565_s26 = smul.u32 192, %s3034_s14 }
  0xa8   : > { %s313_s27 = ssub.s32 960, %s2565_s26 }
  0xa9   : > { %314 = vsyncadd %s2568_s15, %s313_s27  ;;  %p1569_p2 = scmp.ne.s32.totalorder %s2565_s26, 0  ;;  %s1923_s30 = smul.u32 960, %s2288_s24 }
  0xaa   : > { %s320_s12 = sshll.u32 %s305_s29, 4  ;;  %s2154_s13 = scalar_lea.hbm %s2994_s2, 1728  ;;  %s2578_s12 = int_to_ptr.vmem [resolvable:$true] %s320_s12 }
  0xab   : > { %s2576_s19 = scalar_lea.hbm %s2994_s2, %s1923_s30 }
  0xac   : > { %s2150_s20 = scalar_lea.hbm %s2576_s19, %s2565_s26  ;;  %p2155_p0 = scmp.lt.u32.totalorder %s2576_s19, %s2994_s2 }
  0xad   : > { %p2151_p6 = scmp.ne.s32.totalorder %s2576_s19, %s2150_s20  ;;  %p2156_p12 = scmp.lt.u32.totalorder %s2154_s13, %s2150_s20 }
  0xae   : > { %p2158_p8 = scmp.lt.u32.totalorder %s2150_s20, %s2576_s19 }
  0xaf   : > { %p2152_p11 = pnand %p2151_p6, %p1569_p2  ;;  %p2157_p7 = por %p2156_p12, %p2155_p0 }
  0xb1   : > { %p2153_p13 = pneg %p2152_p11  ;;  %p2159_p9 = por %p2158_p8, %p2157_p7 }
  0xb3   : > { %p2160_p1 = pnand %p2159_p9, %p2153_p13 }
  0xb5   : > { %2163 = shalt.err (!%p2160_p1)
}
  0xb6   : > { %s2164_s29 = scalar_lea.vmem %s2578_s12, %s2565_s26  ;;  %s2300_s30 = smov [#allocation7]  }
  0xb7   : > { %p2165_p3 = scmp.ne.s32.totalorder %s2578_s12, %s2164_s29  ;;  %s2168_s17 = sshll.u32 %s2300_s30, 4  ;;  %s2169_s17 = int_to_ptr.vmem [resolvable:$false] %s2168_s17 }
  0xb8   : > { %s2170_s18 = scalar_lea.vmem %s2169_s17, 1920  ;;  %p2171_p6 = scmp.lt.s32.totalorder %s2578_s12, %s2169_s17 }
  0xb9   : > { %p2166_p10 = pnand %p2165_p3, %p1569_p2  ;;  %p2172_p11 = scmp.lt.s32.totalorder %s2170_s18, %s2164_s29 }
  0xbb   : > { %p2167_p5 = pneg %p2166_p10  ;;  %p2173_p0 = por %p2172_p11, %p2171_p6 }
  0xbd   : > { %p2174_p12 = pnand %p2173_p0, %p2167_p5 }
  0xbf   : > { %2177 = shalt.err (!%p2174_p12)
}
  0xc0   : > { %s2301_s20 = smov 192   ;;  %s2302_s16 = smov 12  }
  0xc1   : > { %326 = dma.hbm_to_vmem [thread:$0]  (%p1569_p2), %s2576_s19, %s2565_s26, %s2578_s12, %s2568_s15, %s2301_s20, %s2301_s20, %s2302_s16  }
  0xc2 PF: > { %p3015_p13 = scmp.ne.s32.totalorder %s3006_s7, 0 }
  0xc3   : > { %s330_s28 = sand.u32 (%p3015_p13), 1, %s2288_s24   ;;  %s332_s13 = sand.u32 (%p3015_p13), 1, %s2284_s23  }
  0xc4   : > { %329 = sbr.rel (!%p3015_p13) target bundleno = 232 (0xe8), region = 40  ;;  %s2613_s18 = scalar_lea.sflag (%p3015_p13), [#allocation9], %s330_s28 }
  0xc5   : > { %s1891_s14 = smul.u32 (%p3015_p13), 60, %s332_s13 }
  0xc6   : > { %s335_s27 = smul.u32 (%p3015_p13), 5, %s2288_s24 }
  0xc7   : > { %s334_s26 = scalar_lea.vmem (%p3015_p13), [#allocation8], %s1891_s14 }
  0xc8   : > { %s336_s29 = ssub.s32 (%p3015_p13), 9, %s335_s27 }
  0xc9   : > { %p337_p7 = scmp.lt.s32.totalorder (%p3015_p13), %s336_s29, 5 }
  0xcb   : > { %s3036_s29 = smov (!%p337_p7, %s336_s29), 5 }
  0xcc   : > { %s2610_s30 = smul.u32 192, %s3036_s29 }
  0xce   : > { %s342_s17 = ssub.s32 960, %s2610_s30 }
  0xcf   : > { %343 = vsyncadd %s2613_s18, %s342_s17  ;;  %p1574_p2 = scmp.ne.s32.totalorder %s2610_s30, 0  ;;  %s1924_s7 = smul.u32 960, %s2288_s24 }
  0xd0   : > { %s349_s15 = sshll.u32 %s334_s26, 4  ;;  %s2182_s14 = scalar_lea.hbm %s2995_s3, 1728  ;;  %s2623_s15 = int_to_ptr.vmem [resolvable:$true] %s349_s15 }
  0xd1   : > { %s2621_s20 = scalar_lea.hbm %s2995_s3, %s1924_s7 }
  0xd2   : > { %s2178_s16 = scalar_lea.hbm %s2621_s20, %s2610_s30  ;;  %p2183_p3 = scmp.lt.u32.totalorder %s2621_s20, %s2995_s3 }
  0xd3   : > { %p2179_p8 = scmp.ne.s32.totalorder %s2621_s20, %s2178_s16  ;;  %p2184_p10 = scmp.lt.u32.totalorder %s2182_s14, %s2178_s16 }
  0xd4   : > { %p2186_p6 = scmp.lt.u32.totalorder %s2178_s16, %s2621_s20 }
  0xd5   : > { %p2180_p9 = pnand %p2179_p8, %p1574_p2  ;;  %p2185_p5 = por %p2184_p10, %p2183_p3 }
  0xd7   : > { %p2181_p1 = pneg %p2180_p9  ;;  %p2187_p11 = por %p2186_p6, %p2185_p5 }
  0xd9   : > { %p2188_p0 = pnand %p2187_p11, %p2181_p1 }
  0xdb   : > { %2191 = shalt.err (!%p2188_p0)
}
  0xdc   : > { %s2192_s17 = scalar_lea.vmem %s2623_s15, %s2610_s30  ;;  %s2303_s26 = smov [#allocation8]  }
  0xdd   : > { %p2193_p12 = scmp.ne.s32.totalorder %s2623_s15, %s2192_s17  ;;  %s2196_s7 = sshll.u32 %s2303_s26, 4  ;;  %s2197_s7 = int_to_ptr.vmem [resolvable:$false] %s2196_s7 }
  0xde   : > { %s2198_s12 = scalar_lea.vmem %s2197_s7, 1920  ;;  %p2199_p8 = scmp.lt.s32.totalorder %s2623_s15, %s2197_s7 }
  0xdf   : > { %p2194_p13 = pnand %p2193_p12, %p1574_p2  ;;  %p2200_p9 = scmp.lt.s32.totalorder %s2198_s12, %s2192_s17 }
  0xe1   : > { %p2195_p7 = pneg %p2194_p13  ;;  %p2201_p3 = por %p2200_p9, %p2199_p8 }
  0xe3   : > { %p2202_p10 = pnand %p2201_p3, %p2195_p7 }
  0xe5   : > { %2205 = shalt.err (!%p2202_p10)
}
  0xe6   : > { %s2304_s19 = smov 192   ;;  %s2305_s16 = smov 12  }
  0xe7   : > { %355 = dma.hbm_to_vmem [thread:$0]  (%p1574_p2), %s2621_s20, %s2610_s30, %s2623_s15, %s2613_s18, %s2304_s19, %s2304_s19, %s2305_s16  }
  0xe8 PF: > { %p3016_p1 = scmp.ne.s32.totalorder %s3010_s11, 0 }
  0xe9   : > { %s2653_s28 = sand.u32 (!%p3016_p1), 1, %s2280_s22   ;;  %p3017_p5 = scmp.ne.s32.totalorder (!%p3016_p1), %s3007_s8, 0 }
  0xea   : > { %361 = sbr.rel (%p3016_p1) target bundleno = 631 (0x277), region = 44  ;;  %s364_s14 = scalar_lea.sflag (!%p3016_p1), [#allocation3], %s2653_s28 }
  0xeb   : > { %s1893_s13 = smul.u32 (!%p3016_p1), 60, %s2653_s28 }
  0xed   : > { %s2657_s27 = scalar_lea.vmem (!%p3016_p1), [#allocation2], %s1893_s13 }
  0xf1   : > { %2251 = dma.done.wait (%p3017_p5), %s364_s14, 960  }
  0xf2   : > { %2253 = vsyncadd (%p3017_p5), %s364_s14, 4294966336  ;;  %s372_s30 = sand.u32 1, %s2367_s25   ;;  %s2664_s18 = scalar_lea.vmem [#allocation5], %s1893_s13 }
  0xf3   : > { %s373_s11 = scalar_lea.sflag [#allocation6], %s372_s30 }
  0xf4   : > { %2255 = dma.done.wait (%p3017_p5), %s373_s11, 1920  }
  0xf5   : > { %2257 = vsyncadd (%p3017_p5), %s373_s11, 4294965376  ;;  %s2670_s15 = scalar_lea.vmem [#allocation7], %s1893_s13  ;;  %s391_s20 = scalar_lea.sflag [#allocation9], %s372_s30 }
  0xf6   : > { %s2672_s29 = scalar_lea.vmem [#allocation8], %s1893_s13 }
  0xf7   : > { %2259 = dma.done.wait (%p3017_p5), %s391_s20, 960  }
  0xf8   : > { %2261 = vsyncadd (%p3017_p5), %s391_s20, 4294966336  ;;  %p3018_p2 = scmp.eq.s32.totalorder %s2367_s25, 0 }
  0xfa   : > { %2263 = dma.done.wait (%p3018_p2), [#allocation9], 2304   ;;  %p3019_p6 = pmov %p3018_p2 }
  0xfb   : > { %p3020_p11 = pmov %p3018_p2 }
  0xfc   : > { %2265 = vsyncadd (%p3019_p6), [#allocation9], 4294964992 }
  0xfd   : > { %2267 = dma.done.wait (%p3020_p11), [#allocation12], 16   ;;  %p3021_p0 = pmov %p3018_p2 }
  0xfe   : > { %v2306_v0 = vmov 0.0   ;;  %vm2307_vm0 = vmmov 0   ;;  %v2689_v1 = vld [vmem:[#allocation10 + $0x40] sm:$0xff]   ;;  %v2697_v4 = vld [vmem:[#allocation10 + $0x48] sm:$0xff]   ;;  %vm677_vm1 = vcmask 261120   ;;  %v2708_v8 = vld [vmem:[#allocation10 + $0x50] sm:$0xff]  }
  0xff   : > { %2269 = vsyncadd (%p3021_p0), [#allocation12], 4294967280  ;;  %1821 = vmatprep.subr.bf16.mxu1 %v2306_v0  ;;  %1825 = vmatprep.mubr.msk.bf16.mxu1 %vm2307_vm0, %v2306_v0  ;;  %v2691_v2 = vld [vmem:[#allocation10 + $0x80] sm:$0xff]   ;;  %v2701_v5 = vld [vmem:[#allocation10 + $0x88] sm:$0xff]   ;;  %s1894_s8 = smul.u32 20, %s2653_s28  ;;  %vm1368_vm2 = vcmask 519168  }
 0x100   : > { %1665 = vmatprep.subr.bf16.mxu0 %v2689_v1  ;;  %v2694_v3 = vld [vmem:[#allocation10] sm:$0xff]   ;;  %1822 = vmatpush3.bf16.msra.mxu1 %v2691_v2  ;;  %v2704_v6 = vld [vmem:[#allocation10 + $0x8] sm:$0xff]   ;;  %v2712_v9 = vld [vmem:[#allocation10 + $0x10] sm:$0xff]   ;;  %s1375_s26 = scalar_lea.sflag [#allocation4], %s2653_s28  ;;  %p3022_p12 = scmp.ne.s32.totalorder %s3008_s9, 0 }
 0x101   : > { %1666 = vmatpush3.bf16.msra.mxu0 %v2694_v3  ;;  %1823 = vmatprep.subr.bf16.mxu1 %v2306_v0  ;;  %v1982_v7 = vld [vmem:[%s2657_s27 + $0x8] ss:$12 sps:$4 sm:$0xff]   ;;  %v2715_v10 = vld [vmem:[#allocation10 + $0x58] sm:$0xff]   ;;  %v1999_v18 = vld [vmem:[%s2657_s27 + $0x4] ss:$12 sps:$4 sm:$0xff]   ;;  %s2911_s17 = scalar_lea.vmem [#allocation13], %s1894_s8 }
 0x102   : > { %1667 = vmatprep.subr.bf16.mxu0 %v2697_v4  ;;  %v2723_v11 = vld [vmem:[#allocation10 + $0x18] sm:$0xff]   ;;  %v2726_v12 = vld [vmem:[#allocation10 + $0x60] sm:$0xff]   ;;  %v2735_v15 = vld [vmem:[#allocation10 + $0x68] sm:$0xff]   ;;  %719 = vmatprep.mubr.bf16.mxu0 %v1999_v18  ;;  %s1382_s7 = smul.u32 (%p3022_p12), 5, %s2367_s25 }
 0x103   : > { %v1991_v13 = vld [vmem:[%s2657_s27 + $0x20] ss:$12 sps:$4 sm:$0xff]   ;;  %v2746_v17 = vld [vmem:[#allocation10 + $0x70] sm:$0xff]   ;;  %v2002_v20 = vld [vmem:[%s2664_s18 + $0x4] ss:$12 sps:$4 sm:$0xff]  }
 0x104   : > { %1824 = vmatpush3.bf16.msra.mxu1 %v2701_v5  ;;  %v2732_v14 = vld [vmem:[#allocation10 + $0x20] sm:$0xff]   ;;  %v2743_v16 = vld [vmem:[#allocation10 + $0x28] sm:$0xff]   ;;  %v1996_v19 = vld [vmem:[%s2657_s27 + $0x38] ss:$0 sps:$4 sm:$0xff]   ;;  %s1383_s12 = ssub.s32 (%p3022_p12), 9, %s1382_s7 }
 0x105   : > { %1668 = vmatpush3.bf16.msra.mxu0 %v2704_v6  ;;  %1704 = vmatprep.subr.bf16.mxu1 %v2689_v1  ;;  %v2754_v21 = vld [vmem:[#allocation10 + $0x30] sm:$0xff]   ;;  %v2757_v22 = vld [vmem:[#allocation10 + $0x78] sm:$0xff]   ;;  %v812_v32 = vld [vmem:[%s2664_s18 + $0x30] sm:$0xff]  ;;  %p1384_p13 = scmp.lt.s32.totalorder (%p3022_p12), %s1383_s12, 5 }
 0x106   : > { %1669 = vmatprep.subr.bf16.mxu0 %v2708_v8  ;;  %v2763_v23 = vld [vmem:[#allocation10 + $0x38] sm:$0xff]   ;;  %v521_v26 = vld [vmem:[%s2657_s27 + $0x30] sm:$0xff]  ;;  %v1618_v34 = vcombine.high %v812_v32, %v812_v32  ;;  %v1617_v35 = vcombine.low %v812_v32, %v812_v32  ;;  %v2026_v49 = vld [vmem:[%s2670_s15 + $0x38] ss:$0 sps:$4 sm:$0xff]  }
 0x107   : > { %1826 = vmatmul.mubr.msk.bf16.vlgmr.msra.gmra.mrb[0].mxu1 %vm677_vm1, %v1982_v7  ;;  %v1997_v24 = vld [vmem:[%s2657_s27] ss:$12 sps:$4 sm:$0xff]   ;;  %v2003_v25 = vld [vmem:[%s2657_s27 + $0x1c] ss:$12 sps:$4 sm:$0xff]   ;;  %v2000_v27 = vld [vmem:[%s2664_s18] ss:$12 sps:$4 sm:$0xff]   ;;  %v1588_v29 = vcombine.high %v521_v26, %v521_v26  ;;  %v1587_v33 = vcombine.low %v521_v26, %v521_v26 }
 0x108   : > { %1705 = vmatpush3.bf16.msra.mxu1 %v2694_v3  ;;  %1829 = vmatprep.mubr.msk.bf16.mxu1 %vm2307_vm0, %v2306_v0  ;;  %v2005_v28 = vld [vmem:[%s2657_s27 + $0x18] ss:$12 sps:$4 sm:$0xff]   ;;  %v2008_v30 = vld [vmem:[%s2664_s18 + $0x1c] ss:$12 sps:$4 sm:$0xff]   ;;  %v2010_v31 = vld [vmem:[%s2664_s18 + $0x18] ss:$12 sps:$4 sm:$0xff]  }
 0x109   : > { %1670 = vmatpush3.bf16.msra.mxu0 %v2712_v9  ;;  %1706 = vmatprep.subr.bf16.mxu1 %v2697_v4  ;;  %v2011_v36 = vld [vmem:[%s2664_s18 + $0x8] ss:$12 sps:$4 sm:$0xff]   ;;  %v2014_v38 = vld [vmem:[%s2664_s18 + $0x20] ss:$12 sps:$4 sm:$0xff]   ;;  %v2015_v39 = vld [vmem:[%s2670_s15] ss:$12 sps:$4 sm:$0xff]  }
 0x10a   : > { %1671 = vmatprep.subr.bf16.mxu0 %v2715_v10  ;;  %v2017_v37 = vld [vmem:[%s2670_s15 + $0x4] ss:$12 sps:$4 sm:$0xff]   ;;  %v2018_v40 = vld [vmem:[%s2664_s18 + $0x38] ss:$0 sps:$4 sm:$0xff]   ;;  %v2020_v41 = vld [vmem:[%s2670_s15 + $0x1c] ss:$12 sps:$4 sm:$0xff]  }
 0x10b   : > { %v2022_v42 = vld [vmem:[%s2670_s15 + $0x18] ss:$12 sps:$4 sm:$0xff]   ;;  %v993_v43 = vld [vmem:[%s2670_s15 + $0x30] sm:$0xff]  ;;  %v2023_v47 = vld [vmem:[%s2670_s15 + $0x20] ss:$12 sps:$4 sm:$0xff]  }
 0x10c   : > { %1707 = vmatpush3.bf16.msra.mxu1 %v2704_v6  ;;  %v2019_v44 = vld [vmem:[%s2670_s15 + $0x8] ss:$12 sps:$4 sm:$0xff]   ;;  %v1630_v45 = vcombine.high %v993_v43, %v993_v43  ;;  %v1629_v46 = vcombine.low %v993_v43, %v993_v43  ;;  %v2027_v50 = vld [vmem:[%s2672_s29] ss:$12 sps:$4 sm:$0xff]   ;;  %v2030_v51 = vld [vmem:[%s2672_s29 + $0x8] ss:$12 sps:$4 sm:$0xff]  }
 0x10d   : > { %1672 = vmatpush3.bf16.msra.mxu0 %v2723_v11  ;;  %1708 = vmatprep.subr.bf16.mxu1 %v2708_v8  ;;  %v2029_v48 = vld [vmem:[%s2672_s29 + $0x4] ss:$12 sps:$4 sm:$0xff]   ;;  %v2031_v52 = vld [vmem:[%s2672_s29 + $0x1c] ss:$12 sps:$4 sm:$0xff]   ;;  %v2034_v55 = vld [vmem:[%s2672_s29 + $0x20] ss:$12 sps:$4 sm:$0xff]  }
 0x10e   : > { %1673 = vmatprep.subr.bf16.mxu0 %v2726_v12  ;;  %v1169_v53 = vld [vmem:[%s2672_s29 + $0x30] sm:$0xff]  ;;  %v2033_v54 = vld [vmem:[%s2672_s29 + $0x18] ss:$12 sps:$4 sm:$0xff]  }
 0x10f   : > { %1830 = vmatmul.mubr.msk.bf16.gmra.mrb[4].mxu1 %vm677_vm1, %v1991_v13  ;;  %v1642_v56 = vcombine.high %v1169_v53, %v1169_v53  ;;  %v1641_v57 = vcombine.low %v1169_v53, %v1169_v53  ;;  %v2037_v58 = vld [vmem:[%s2672_s29 + $0x38] ss:$0 sps:$4 sm:$0xff]  }
 0x110   : > { %1709 = vmatpush3.bf16.msra.mxu1 %v2712_v9  ;;  %1833 = vmatprep.mubr.msk.bf16.mxu1 %vm2307_vm0, %v2306_v0 }
 0x111   : > { %1674 = vmatpush3.bf16.msra.mxu0 %v2732_v14  ;;  %1710 = vmatprep.subr.bf16.mxu1 %v2715_v10 }
 0x112   : > { %1675 = vmatprep.subr.bf16.mxu0 %v2735_v15 }
 0x114   : > { %1711 = vmatpush3.bf16.msra.mxu1 %v2723_v11 }
 0x115   : > { %1676 = vmatpush3.bf16.msra.mxu0 %v2743_v16  ;;  %1712 = vmatprep.subr.bf16.mxu1 %v2726_v12 }
 0x116   : > { %1677 = vmatprep.subr.bf16.mxu0 %v2746_v17 }
 0x117   : > { %1834 = vmatmul.mubr.msk.bf16.gmra.mrb[8].mxu1 %vm677_vm1, %v1996_v19 }
 0x118   : > { %1713 = vmatpush3.bf16.msra.mxu1 %v2732_v14  ;;  %895 = vmatprep.mubr.bf16.mxu1 %v2002_v20 }
 0x119   : > { %1678 = vmatpush3.bf16.msra.mxu0 %v2754_v21  ;;  %1714 = vmatprep.subr.bf16.mxu1 %v2735_v15 }
 0x11a   : > { %1679 = vmatprep.subr.bf16.mxu0 %v2757_v22 }
 0x11c   : > { %1715 = vmatpush3.bf16.msra.mxu1 %v2743_v16 }
 0x11d   : > { %1680 = vmatpush3.bf16.msra.mxu0 %v2763_v23  ;;  %1716 = vmatprep.subr.bf16.mxu1 %v2746_v17 }
 0x11e   : > { %1837 = vmatprep.subr.bf16.mxu0 %v2306_v0 }
 0x120   : > { %720 = vmatmul.mubr.bf16.vlgmr.msra.gmra.mrb[0].mxu0 %v1997_v24  ;;  %1717 = vmatpush3.bf16.msra.mxu1 %v2754_v21 }
 0x121   : > { %1718 = vmatprep.subr.bf16.mxu1 %v2757_v22  ;;  %1838 = vmatpush3.bf16.msra.mxu0 %v2691_v2 }
 0x122   : > { %727 = vmatprep.mubr.bf16.mxu0 %v2003_v25  ;;  %1839 = vmatprep.subr.bf16.mxu0 %v2306_v0 }
 0x124   : > { %1719 = vmatpush3.bf16.msra.mxu1 %v2763_v23 }
 0x125   : > { %1743 = vmatprep.subr.bf16.mxu1 %v2689_v1  ;;  %1840 = vmatpush3.bf16.msra.mxu0 %v2701_v5 }
 0x126   : > { %1853 = vmatprep.subr.bf16.mxu0 %v2306_v0 }
 0x127   : > { %896 = vmatmul.mubr.bf16.vlgmr.msra.gmra.mrb[12].mxu1 %v2000_v27 }
 0x128   : > { %728 = vmatmul.mubr.bf16.gmra.mrb[4].mxu0 %v2005_v28  ;;  %1744 = vmatpush3.bf16.msra.mxu1 %v2694_v3 }
 0x129   : > { %1745 = vmatprep.subr.bf16.mxu1 %v2697_v4  ;;  %735 = vmatprep.mubr.bf16.mxu0 %v1588_v29 }
 0x12a   : > { %903 = vmatprep.mubr.bf16.mxu1 %v2008_v30 }
 0x12c   : > { %1746 = vmatpush3.bf16.msra.mxu1 %v2704_v6 }
 0x12d   : > { %1747 = vmatprep.subr.bf16.mxu1 %v2708_v8 }
 0x12f   : > { %904 = vmatmul.mubr.bf16.gmra.mrb[16].mxu1 %v2010_v31 }
 0x130   : > { %736 = vmatmul.mubr.bf16.gmra.mrb[8].mxu0 %v1587_v33  ;;  %1748 = vmatpush3.bf16.msra.mxu1 %v2712_v9 }
 0x131   : > { %1749 = vmatprep.subr.bf16.mxu1 %v2715_v10  ;;  %1841 = vmatprep.mubr.msk.bf16.mxu0 %vm2307_vm0, %v2306_v0 }
 0x132   : > { %911 = vmatprep.mubr.bf16.mxu1 %v1618_v34 }
 0x134   : > { %1750 = vmatpush3.bf16.msra.mxu1 %v2723_v11 }
 0x135   : > { %1751 = vmatprep.subr.bf16.mxu1 %v2726_v12 }
 0x137   : > { %912 = vmatmul.mubr.bf16.gmra.mrb[20].mxu1 %v1617_v35 }
 0x138   : > { %1842 = vmatmul.mubr.msk.bf16.vlgmr.msra.gmra.mrb[12].mxu0 %vm677_vm1, %v2011_v36  ;;  %1752 = vmatpush3.bf16.msra.mxu1 %v2732_v14 }
 0x139   : > { %1753 = vmatprep.subr.bf16.mxu1 %v2735_v15  ;;  %1854 = vmatpush3.bf16.msra.mxu0 %v2691_v2 }
 0x13a   : > { %1845 = vmatprep.mubr.msk.bf16.mxu0 %vm2307_vm0, %v2306_v0  ;;  %1076 = vmatprep.mubr.bf16.mxu1 %v2017_v37 }
 0x13b   : > { %1855 = vmatprep.subr.bf16.mxu0 %v2306_v0 }
 0x13c   : > { %1754 = vmatpush3.bf16.msra.mxu1 %v2743_v16 }
 0x13d   : > { %1755 = vmatprep.subr.bf16.mxu1 %v2746_v17  ;;  %1856 = vmatpush3.bf16.msra.mxu0 %v2701_v5 }
 0x13e   : > { %1869 = vmatprep.subr.bf16.mxu0 %v2306_v0 }
 0x140   : > { %1846 = vmatmul.mubr.msk.bf16.gmra.mrb[16].mxu0 %vm677_vm1, %v2014_v38  ;;  %1756 = vmatpush3.bf16.msra.mxu1 %v2754_v21 }
 0x141   : > { %1757 = vmatprep.subr.bf16.mxu1 %v2757_v22  ;;  %1849 = vmatprep.mubr.msk.bf16.mxu0 %vm2307_vm0, %v2306_v0 }
 0x144   : > { %1758 = vmatpush3.bf16.msra.mxu1 %v2763_v23 }
 0x145   : > { %1782 = vmatprep.subr.bf16.mxu1 %v2689_v1 }
 0x147   : > { %1077 = vmatmul.mubr.bf16.vlgmr.msra.gmra.mrb[24].mxu1 %v2015_v39 }
 0x148   : > { %1850 = vmatmul.mubr.msk.bf16.gmra.mrb[20].mxu0 %vm677_vm1, %v2018_v40  ;;  %1783 = vmatpush3.bf16.msra.mxu1 %v2694_v3 }
 0x149   : > { %1784 = vmatprep.subr.bf16.mxu1 %v2697_v4  ;;  %1857 = vmatprep.mubr.msk.bf16.mxu0 %vm2307_vm0, %v2306_v0 }
 0x14a   : > { %1084 = vmatprep.mubr.bf16.mxu1 %v2020_v41 }
 0x14c   : > { %1785 = vmatpush3.bf16.msra.mxu1 %v2704_v6 }
 0x14d   : > { %1786 = vmatprep.subr.bf16.mxu1 %v2708_v8 }
 0x14f   : > { %1085 = vmatmul.mubr.bf16.gmra.mrb[28].mxu1 %v2022_v42 }
 0x150   : > { %1858 = vmatmul.mubr.msk.bf16.vlgmr.msra.gmra.mrb[24].mxu0 %vm677_vm1, %v2019_v44  ;;  %1787 = vmatpush3.bf16.msra.mxu1 %v2712_v9  ;;  %v2870_v9 = vld [vmem:[#allocation11] ss:$0 sm:$0xff] }
 0x151   : > { %1788 = vmatprep.subr.bf16.mxu1 %v2715_v10  ;;  %1870 = vmatpush3.bf16.msra.mxu0 %v2691_v2 }
 0x152   : > { %1861 = vmatprep.mubr.msk.bf16.mxu0 %vm2307_vm0, %v2306_v0  ;;  %1092 = vmatprep.mubr.bf16.mxu1 %v1630_v45 }
 0x153   : > { %1871 = vmatprep.subr.bf16.mxu0 %v2306_v0 }
 0x154   : > { %1789 = vmatpush3.bf16.msra.mxu1 %v2723_v11 }
 0x155   : > { %1790 = vmatprep.subr.bf16.mxu1 %v2726_v12  ;;  %1872 = vmatpush3.bf16.msra.mxu0 %v2701_v5 }
 0x157   : > { %1093 = vmatmul.mubr.bf16.gmra.mrb[32].mxu1 %v1629_v46 }
 0x158   : > { %1791 = vmatpush3.bf16.msra.mxu1 %v2732_v14  ;;  %1862 = vmatmul.mubr.msk.bf16.gmra.mrb[28].mxu0 %vm677_vm1, %v2023_v47 }
 0x159   : > { %1792 = vmatprep.subr.bf16.mxu1 %v2735_v15  ;;  %1865 = vmatprep.mubr.msk.bf16.mxu0 %vm2307_vm0, %v2306_v0 }
 0x15a   : > { %1252 = vmatprep.mubr.bf16.mxu1 %v2029_v48 }
 0x15c   : > { %1793 = vmatpush3.bf16.msra.mxu1 %v2743_v16 }
 0x15d   : > { %1794 = vmatprep.subr.bf16.mxu1 %v2746_v17 }
 0x160   : > { %1795 = vmatpush3.bf16.msra.mxu1 %v2754_v21  ;;  %1866 = vmatmul.mubr.msk.bf16.gmra.mrb[32].mxu0 %vm677_vm1, %v2026_v49 }
 0x161   : > { %1796 = vmatprep.subr.bf16.mxu1 %v2757_v22  ;;  %1873 = vmatprep.mubr.msk.bf16.mxu0 %vm2307_vm0, %v2306_v0 }
 0x164   : > { %1797 = vmatpush3.bf16.msra.mxu1 %v2763_v23 }
 0x167   : > { %1253 = vmatmul.mubr.bf16.vlgmr.msra.gmra.mrb[36].mxu1 %v2027_v50 }
 0x168   : > { %1874 = vmatmul.mubr.msk.bf16.vlgmr.msra.gmra.mrb[36].mxu0 %vm677_vm1, %v2030_v51  ;;  %1260 = vmatprep.mubr.bf16.mxu1 %v2031_v52 }
 0x169   : > { %1877 = vmatprep.mubr.msk.bf16.mxu0 %vm2307_vm0, %v2306_v0 }
 0x16f   : > { %1261 = vmatmul.mubr.bf16.gmra.mrb[40].mxu1 %v2033_v54 }
 0x170   : > { %1878 = vmatmul.mubr.msk.bf16.gmra.mrb[40].mxu0 %vm677_vm1, %v2034_v55  ;;  %1268 = vmatprep.mubr.bf16.mxu1 %v1642_v56 }
 0x171   : > { %1881 = vmatprep.mubr.msk.bf16.mxu0 %vm2307_vm0, %v2306_v0 }
 0x177   : > { %1269 = vmatmul.mubr.bf16.gmra.mrb[44].mxu1 %v1641_v57 }
 0x178   : > { %1882 = vmatmul.mubr.msk.bf16.gmra.mrb[44].mxu0 %vm677_vm1, %v2037_v58 }
 0x1da   : > { %v777_v59 = vpop.f32.mrb[0].mxu1 }
 0x1db   : > { %v1827_v60 = vpop.f32.mrb[1].mxu1 }
 0x1dc   : > { %v780_v61 = vpop.f32.mrb[2].mxu1 }
 0x1dd   : > { %v1828_v62 = vpop.f32.mrb[3].mxu1 }
 0x1e2   : > { %v785_v63 = vpop.f32.mrb[4].mxu1 }
 0x1e3   : > { %v1831_v1 = vpop.f32.mrb[5].mxu1 }
 0x1e4   : > { %v788_v2 = vpop.f32.mrb[6].mxu1 }
 0x1e5   : > { %v1832_v3 = vpop.f32.mrb[7].mxu1 }
 0x1ea   : > { %v793_v4 = vpop.f32.mrb[8].mxu1 }
 0x1eb   : > { %v1835_v5 = vpop.f32.mrb[9].mxu1 }
 0x1ec   : > { %v796_v6 = vpop.f32.mrb[10].mxu1 }
 0x1ed   : > { %v1836_v7 = vpop.f32.mrb[11].mxu1 }
 0x1f3   : > { %v1681_v8 = vpop.f32.mrb[0].mxu0 }
 0x1f4   : > { %v1682_v0 = vpop.f32.mrb[1].mxu0 }
 0x1f5   : > { %v1683_v10 = vadd.f32 %v1682_v0, %v1681_v8  ;;  %v1684_v11 = vpop.f32.mrb[2].mxu0 }
 0x1f6   : > { %v1685_v12 = vpop.f32.mrb[3].mxu0 }
 0x1f7   : > { %v722_v13 = vadd.f32 %v1683_v10, %v2870_v9  ;;  %v1686_v14 = vadd.f32 %v1685_v12, %v1684_v11 }
 0x1f9   : > { %v778_v15 = vadd.f32 %v777_v59, %v722_v13  ;;  %v725_v16 = vadd.f32 %v1686_v14, %v2870_v9 }
 0x1fa   : > { %v1720_v17 = vpop.f32.mrb[12].mxu1 }
 0x1fb   : > { %v781_v18 = vadd.f32 %v780_v61, %v725_v16  ;;  %v1687_v19 = vpop.f32.mrb[4].mxu0  ;;  %v1721_v20 = vpop.f32.mrb[13].mxu1  ;;  %v799_v58 = vmax.f32 %v778_v15, 0.0 }
 0x1fc   : > { %v1722_v21 = vadd.f32 %v1721_v20, %v1720_v17  ;;  %v1688_v22 = vpop.f32.mrb[5].mxu0  ;;  %v1723_v23 = vpop.f32.mrb[14].mxu1 }
 0x1fd   : > { %v1689_v24 = vadd.f32 %v1688_v22, %v1687_v19  ;;  %v1690_v25 = vpop.f32.mrb[6].mxu0  ;;  %v1724_v26 = vpop.f32.mrb[15].mxu1 }
 0x1fe   : > { %v1725_v27 = vadd.f32 %v1724_v26, %v1723_v23  ;;  %v1691_v28 = vpop.f32.mrb[7].mxu0  ;;  %v898_v47 = vadd.f32 %v1722_v21, %v2870_v9 }
 0x1ff   : > { %v730_v29 = vadd.f32 %v1689_v24, %v2870_v9  ;;  %v1692_v30 = vadd.f32 %v1691_v28, %v1690_v25 }
 0x200   : > { %v901_v53 = vadd.f32 %v1725_v27, %v2870_v9 }
 0x201   : > { %v786_v31 = vadd.f32 %v785_v63, %v730_v29  ;;  %v733_v32 = vadd.f32 %v1692_v30, %v2870_v9  ;;  %v800_v63 = vmax.f32 %v781_v18, 0.0 }
 0x202   : > { %v1726_v33 = vpop.f32.mrb[16].mxu1 }
 0x203   : > { %v789_v34 = vadd.f32 %v788_v2, %v733_v32  ;;  %v1693_v35 = vpop.f32.mrb[8].mxu0  ;;  %v1727_v36 = vpop.f32.mrb[17].mxu1  ;;  %v801_v0 = vmax.f32 %v786_v31, 0.0 }
 0x204   : > { %v1694_v37 = vpop.f32.mrb[9].mxu0  ;;  %v1728_v38 = vadd.f32 %v1727_v36, %v1726_v33  ;;  %v1729_v39 = vpop.f32.mrb[18].mxu1 }
 0x205   : > { %v1695_v40 = vadd.f32 %v1694_v37, %v1693_v35  ;;  %v1696_v41 = vpop.f32.mrb[10].mxu0  ;;  %v1730_v42 = vpop.f32.mrb[19].mxu1  ;;  %v802_v14 = vmax.f32 %v789_v34, 0.0 }
 0x206   : > { %v1697_v43 = vpop.f32.mrb[11].mxu0  ;;  %v1731_v44 = vadd.f32 %v1730_v42, %v1729_v39  ;;  %v906_v3 = vadd.f32 %v1728_v38, %v2870_v9 }
 0x207   : > { %v738_v45 = vadd.f32 %v1695_v40, %v2870_v9 }
 0x208   : > { %v909_v7 = vadd.f32 %v1731_v44, %v2870_v9 }
 0x209   : > { %v794_v46 = vadd.f32 %v793_v4, %v738_v45 }
 0x20a   : > { %v1732_v48 = vpop.f32.mrb[20].mxu1 }
 0x20b   : > { %v953_v49 = vpop.f32.mrb[12].mxu0  ;;  %v1733_v50 = vpop.f32.mrb[21].mxu1  ;;  %v803_v27 = vmax.f32 %v794_v46, 0.0 }
 0x20c   : > { %v954_v51 = vadd.f32 %v953_v49, %v898_v47  ;;  %v1843_v52 = vpop.f32.mrb[13].mxu0  ;;  %v1734_v54 = vadd.f32 %v1733_v50, %v1732_v48  ;;  %v1735_v55 = vpop.f32.mrb[22].mxu1 }
 0x20d   : > { %v956_v56 = vpop.f32.mrb[14].mxu0  ;;  %v1736_v57 = vpop.f32.mrb[23].mxu1 }
 0x20e   : > { %v975_v59 = vmax.f32 %v954_v51, 0.0  ;;  %v957_v60 = vadd.f32 %v956_v56, %v901_v53  ;;  %v1844_v61 = vpop.f32.mrb[15].mxu0  ;;  %v914_v18 = vadd.f32 %v1734_v54, %v2870_v9 }
 0x210   : > { %v2879_v62 = vmax.f32 %v799_v58, %v975_v59  ;;  %v976_v1 = vmax.f32 %v957_v60, 0.0 }
 0x212   : > { %v2881_v2 = vmax.f32 %v800_v63, %v976_v1 }
 0x213   : > { %v961_v4 = vpop.f32.mrb[16].mxu0 }
 0x214   : > { %v962_v5 = vadd.f32 %v961_v4, %v906_v3  ;;  %v1847_v6 = vpop.f32.mrb[17].mxu0 }
 0x215   : > { %v964_v8 = vpop.f32.mrb[18].mxu0 }
 0x216   : > { %v977_v10 = vmax.f32 %v962_v5, 0.0  ;;  %v965_v11 = vadd.f32 %v964_v8, %v909_v7  ;;  %v1848_v12 = vpop.f32.mrb[19].mxu0 }
 0x218   : > { %v2885_v13 = vmax.f32 %v801_v0, %v977_v10  ;;  %v978_v15 = vmax.f32 %v965_v11, 0.0 }
 0x21a   : > { %v2887_v16 = vmax.f32 %v802_v14, %v978_v15  ;;  %v1759_v17 = vpop.f32.mrb[24].mxu1 }
 0x21b   : > { %v969_v19 = vpop.f32.mrb[20].mxu0  ;;  %v1760_v20 = vpop.f32.mrb[25].mxu1 }
 0x21c   : > { %v970_v21 = vadd.f32 %v969_v19, %v914_v18  ;;  %v1761_v22 = vadd.f32 %v1760_v20, %v1759_v17  ;;  %v1762_v23 = vpop.f32.mrb[26].mxu1  ;;  %v1851_v24 = vpop.f32.mrb[21].mxu0 }
 0x21d   : > { %v1763_v25 = vpop.f32.mrb[27].mxu1  ;;  %v972_v26 = vpop.f32.mrb[22].mxu0 }
 0x21e   : > { %v979_v28 = vmax.f32 %v970_v21, 0.0  ;;  %v1764_v29 = vadd.f32 %v1763_v25, %v1762_v23  ;;  %v1852_v30 = vpop.f32.mrb[23].mxu0  ;;  %v1079_v32 = vadd.f32 %v1761_v22, %v2870_v9 }
 0x220   : > { %v2890_v31 = vmax.f32 %v803_v27, %v979_v28  ;;  %v1082_v38 = vadd.f32 %v1764_v29, %v2870_v9 }
 0x222   : > { %v1765_v33 = vpop.f32.mrb[28].mxu1 }
 0x223   : > { %v1134_v34 = vpop.f32.mrb[24].mxu0  ;;  %v1766_v35 = vpop.f32.mrb[29].mxu1 }
 0x224   : > { %v1135_v36 = vadd.f32 %v1134_v34, %v1079_v32  ;;  %v1859_v37 = vpop.f32.mrb[25].mxu0  ;;  %v1767_v39 = vadd.f32 %v1766_v35, %v1765_v33  ;;  %v1768_v40 = vpop.f32.mrb[30].mxu1 }
 0x225   : > { %v1137_v41 = vpop.f32.mrb[26].mxu0  ;;  %v1769_v42 = vpop.f32.mrb[31].mxu1 }
 0x226   : > { %v1138_v43 = vadd.f32 %v1137_v41, %v1082_v38  ;;  %v1860_v44 = vpop.f32.mrb[27].mxu0  ;;  %v1770_v45 = vadd.f32 %v1769_v42, %v1768_v40  ;;  %v1087_v46 = vadd.f32 %v1767_v39, %v2870_v9  ;;  %v1156_v19 = vmax.f32 %v1135_v36, 0.0 }
 0x228   : > { %v1090_v47 = vadd.f32 %v1770_v45, %v2870_v9  ;;  %v1157_v25 = vmax.f32 %v1138_v43, 0.0 }
 0x22a   : > { %v1771_v48 = vpop.f32.mrb[32].mxu1 }
 0x22b   : > { %v1142_v49 = vpop.f32.mrb[28].mxu0  ;;  %v1772_v50 = vpop.f32.mrb[33].mxu1 }
 0x22c   : > { %v2896_v51 = vadd.f32 %v1142_v49, %v1087_v46  ;;  %v1863_v52 = vpop.f32.mrb[29].mxu0  ;;  %v1773_v53 = vadd.f32 %v1772_v50, %v1771_v48  ;;  %v1774_v54 = vpop.f32.mrb[34].mxu1 }
 0x22d   : > { %v1145_v55 = vpop.f32.mrb[30].mxu0  ;;  %v1775_v56 = vpop.f32.mrb[35].mxu1 }
 0x22e   : > { %v2898_v57 = vadd.f32 %v1145_v55, %v1090_v47  ;;  %v1864_v58 = vpop.f32.mrb[31].mxu0  ;;  %v1095_v59 = vadd.f32 %v1773_v53, %v2870_v9  ;;  %v1158_v43 = vmax.f32 %v2896_v51, 0.0 }
 0x230   : > { %v1159_v49 = vmax.f32 %v2898_v57, 0.0 }
 0x233   : > { %v1150_v60 = vpop.f32.mrb[32].mxu0 }
 0x234   : > { %v2901_v61 = vadd.f32 %v1150_v60, %v1095_v59  ;;  %v1867_v63 = vpop.f32.mrb[33].mxu0 }
 0x235   : > { %v1153_v1 = vpop.f32.mrb[34].mxu0 }
 0x236   : > { %v1868_v3 = vpop.f32.mrb[35].mxu0 }
 0x237   : > { %v1160_v3 = vmax.f32 %v2901_v61, 0.0 }
 0x23a   : > { %v1798_v4 = vpop.f32.mrb[36].mxu1 }
 0x23b   : > { %v1799_v5 = vpop.f32.mrb[37].mxu1  ;;  %v1310_v6 = vpop.f32.mrb[36].mxu0 }
 0x23c   : > { %v1800_v7 = vadd.f32 %v1799_v5, %v1798_v4  ;;  %v1801_v8 = vpop.f32.mrb[38].mxu1  ;;  %v1875_v0 = vpop.f32.mrb[37].mxu0 }
 0x23d   : > { %v1802_v10 = vpop.f32.mrb[39].mxu1  ;;  %v1313_v11 = vpop.f32.mrb[38].mxu0 }
 0x23e   : > { %v1255_v12 = vadd.f32 %v1800_v7, %v2870_v9  ;;  %v1803_v14 = vadd.f32 %v1802_v10, %v1801_v8  ;;  %v1876_v15 = vpop.f32.mrb[39].mxu0 }
 0x240   : > { %v1311_v17 = vadd.f32 %v1310_v6, %v1255_v12  ;;  %v1258_v18 = vadd.f32 %v1803_v14, %v2870_v9 }
 0x242   : > { %v1332_v20 = vmax.f32 %v1311_v17, 0.0  ;;  %v1314_v21 = vadd.f32 %v1313_v11, %v1258_v18  ;;  %v1804_v22 = vpop.f32.mrb[40].mxu1 }
 0x243   : > { %v1805_v23 = vpop.f32.mrb[41].mxu1  ;;  %v1318_v24 = vpop.f32.mrb[40].mxu0 }
 0x244   : > { %v1337_v26 = vmax.f32 %v1156_v19, %v1332_v20  ;;  %v1333_v27 = vmax.f32 %v1314_v21, 0.0  ;;  %v1806_v28 = vadd.f32 %v1805_v23, %v1804_v22  ;;  %v1807_v29 = vpop.f32.mrb[42].mxu1  ;;  %v1879_v30 = vpop.f32.mrb[41].mxu0 }
 0x245   : > { %v1808_v32 = vpop.f32.mrb[43].mxu1  ;;  %v1321_v33 = vpop.f32.mrb[42].mxu0 }
 0x246   : > { %v1342_v34 = vmax.f32 %v2879_v62, %v1337_v26  ;;  %v1338_v35 = vmax.f32 %v1157_v25, %v1333_v27  ;;  %v1263_v37 = vadd.f32 %v1806_v28, %v2870_v9  ;;  %v1809_v36 = vadd.f32 %v1808_v32, %v1807_v29  ;;  %v1880_v38 = vpop.f32.mrb[43].mxu0 }
 0x248   : > { %v1659_v39 = vpack.c.bf16 %v1342_v34, %v1342_v34  ;;  %v1343_v40 = vmax.f32 %v2881_v2, %v1338_v35  ;;  %v1319_v41 = vadd.f32 %v1318_v24, %v1263_v37  ;;  %v1266_v42 = vadd.f32 %v1809_v36, %v2870_v9 }
 0x24a   : > { %1369 = vst.msk [vmem:[%s2911_s17] sm:$0xf] %vm1368_vm2, %v1659_v39  ;;  %v1660_v62 = vpack.c.bf16 %v1343_v40, %v1343_v40  ;;  %v1334_v44 = vmax.f32 %v1319_v41, 0.0  ;;  %v1322_v45 = vadd.f32 %v1321_v33, %v1266_v42  ;;  %v1810_v46 = vpop.f32.mrb[44].mxu1 }
 0x24b   : > { %v1811_v47 = vpop.f32.mrb[45].mxu1  ;;  %v1326_v48 = vpop.f32.mrb[44].mxu0 }
 0x24c   : > { %1370 = vst.msk [vmem:[%s2911_s17 + $0x4] sm:$0xf] %vm1368_vm2, %v1660_v62  ;;  %v1339_v2 = vmax.f32 %v1158_v43, %v1334_v44  ;;  %v1335_v50 = vmax.f32 %v1322_v45, 0.0  ;;  %v1812_v51 = vadd.f32 %v1811_v47, %v1810_v46  ;;  %v1813_v52 = vpop.f32.mrb[46].mxu1  ;;  %v1883_v53 = vpop.f32.mrb[45].mxu0 }
 0x24d   : > { %v1814_v54 = vpop.f32.mrb[47].mxu1  ;;  %v1329_v55 = vpop.f32.mrb[46].mxu0 }
 0x24e   : > { %v1344_v56 = vmax.f32 %v2885_v13, %v1339_v2  ;;  %v1340_v58 = vmax.f32 %v1159_v49, %v1335_v50  ;;  %v1271_v59 = vadd.f32 %v1812_v51, %v2870_v9  ;;  %v1884_v60 = vpop.f32.mrb[47].mxu0 }
 0x250   : > { %v1661_v57 = vpack.c.bf16 %v1344_v56, %v1344_v56  ;;  %v1345_v63 = vmax.f32 %v2887_v16, %v1340_v58  ;;  %v1327_v1 = vadd.f32 %v1326_v48, %v1271_v59 }
 0x252   : > { %1371 = vst.msk [vmem:[%s2911_s17 + $0x8] sm:$0xf] %vm1368_vm2, %v1661_v57  ;;  %v1662_v4 = vpack.c.bf16 %v1345_v63, %v1345_v63  ;;  %v1336_v5 = vmax.f32 %v1327_v1, 0.0 }
 0x254   : > { %1372 = vst.msk [vmem:[%s2911_s17 + $0xc] sm:$0xf] %vm1368_vm2, %v1662_v4  ;;  %v1341_v6 = vmax.f32 %v1160_v3, %v1336_v5  ;;  %1381 = sbr.rel (!%p3022_p12) target bundleno = 631 (0x277), region = 72 }
 0x256   : > { %v1346_v13 = vmax.f32 %v2890_v31, %v1341_v6 }
 0x258   : > { %v1663_v7 = vpack.c.bf16 %v1346_v13, %v1346_v13 }
 0x25a   : > { %1373 = vst.msk [vmem:[%s2911_s17 + $0x10] sm:$0xf] %vm1368_vm2, %v1663_v7 }
 0x25b   : > { %s3038_s12 = smov (!%p1384_p13, %s1383_s12), 5 }
 0x25c   : > { %s2933_s19 = sshll.u32 %s3038_s12, 6 }
 0x25d   : > { %s1388_s16 = ssub.s32 320, %s2933_s19 }
 0x25e   : > { %1389 = vsyncadd %s1375_s26, %s1388_s16  ;;  %p1653_p7 = scmp.ne.s32.totalorder %s2933_s19, 0  ;;  %s1664_s9 = smul.u32 320, %s2367_s25 }
 0x25f   : > { %s1394_s13 = sshll.u32 %s2911_s17, 4  ;;  %s2308_s18 = smov [#allocation13]   ;;  %s2946_s13 = int_to_ptr.vmem [resolvable:$true] %s1394_s13 }
 0x260   : > { %s2944_s30 = scalar_lea.hbm %s2998_s6, %s1664_s9  ;;  %s2206_s11 = scalar_lea.vmem %s2946_s13, %s2933_s19 }
 0x261   : > { %p2207_p8 = scmp.ne.s32.totalorder %s2946_s13, %s2206_s11  ;;  %s2210_s15 = sshll.u32 %s2308_s18, 4  ;;  %s2211_s15 = int_to_ptr.vmem [resolvable:$false] %s2210_s15 }
 0x262   : > { %s2212_s25 = scalar_lea.vmem %s2211_s15, 640  ;;  %p2213_p10 = scmp.lt.s32.totalorder %s2946_s13, %s2211_s15 }
 0x263   : > { %p2208_p9 = pnand %p2207_p8, %p1653_p7  ;;  %p2214_p1 = scmp.lt.s32.totalorder %s2212_s25, %s2206_s11 }
 0x265   : > { %p2209_p3 = pneg %p2208_p9  ;;  %p2215_p5 = por %p2214_p1, %p2213_p10 }
 0x267   : > { %p2216_p2 = pnand %p2215_p5, %p2209_p3 }
 0x269   : > { %2219 = shalt.err (!%p2216_p2)
}
 0x26a   : > { %s2220_s20 = scalar_lea.hbm %s2944_s30, %s2933_s19  ;;  %s2224_s17 = scalar_lea.hbm %s2998_s6, 576 }
 0x26b   : > { %p2221_p6 = scmp.ne.s32.totalorder %s2944_s30, %s2220_s20  ;;  %p2225_p12 = scmp.lt.u32.totalorder %s2944_s30, %s2998_s6 }
 0x26c   : > { %p2226_p13 = scmp.lt.u32.totalorder %s2224_s17, %s2220_s20  ;;  %p2228_p9 = scmp.lt.u32.totalorder %s2220_s20, %s2944_s30 }
 0x26d   : > { %p2222_p11 = pnand %p2221_p6, %p1653_p7 }
 0x26e   : > { %p2227_p8 = por %p2226_p13, %p2225_p12 }
 0x26f   : > { %p2223_p0 = pneg %p2222_p11 }
 0x270   : > { %p2229_p3 = por %p2228_p9, %p2227_p8 }
 0x272   : > { %p2230_p10 = pnand %p2229_p3, %p2223_p0 }
 0x274   : > { %2233 = shalt.err (!%p2230_p10)
}
 0x275   : > { %s2309_s16 = smov 64   ;;  %s2310_s9 = smov 4  }
 0x276   : > { %1400 = dma.vmem_to_hbm [thread:$0]  (%p1653_p7), %s2946_s13, %s2933_s19, %s2944_s30, %s1375_s26, %s2309_s16, %s2309_s16, %s2310_s9  }
 0x277 PF: > { %s1409_s14 = sand.u32 1, %s2276_s21   ;;  %p3023_p1 = scmp.ne.s32.totalorder %s3009_s10, 0 }
 0x278   : > { %s1410_s27 = scalar_lea.sflag [#allocation4], %s1409_s14 }
 0x279   : > { %p1916_p5 = pnand %p1556_p4, %p3023_p1 }
 0x27b   : > { %2271 = dma.done.wait (!%p1916_p5), %s1410_s27, 320  }
 0x27c   : > { %2273 = vsyncadd (!%p1916_p5), %s1410_s27, 4294966976  ;;  %s3024_s24 = sld [smem:[#allocation20_spill]]  ;;  %s3025_s11 = sld [smem:[#allocation21_spill]] }
 0x27d   : > { %s3026_s21 = smov %s2280_s22  ;;  %s3027_s22 = smov %s2284_s23 }
 0x282   : > { %p26_p2 = scmp.ge.s32.totalorder %s3024_s24, 4   ;;  %s3028_s23 = smov %s3025_s11 }
 0x284   :  { %28 = sbr.rel (!%p26_p2) target bundleno = 10 (0xa), region = 134 }
 0x28b   :  { %1415 = vsyncpa [#allocation3], 1 }
 0x28c   :  { %1417 = vsyncpa [#allocation3 + $0x1], 1 }
 0x28d   :  { %1418 = vsyncpa [#allocation6], 1 }
 0x28e   :  { %1420 = vsyncpa [#allocation6 + $0x1], 1 }
 0x28f   :  { %1421 = vsyncpa [#allocation9], 1 }
 0x290   :  { %1423 = vsyncpa [#allocation9 + $0x1], 1 }
 0x291   :  { %1424 = vsyncpa [#allocation12], 1 }
 0x292   :  { %1425 = vsyncpa [#allocation4], 1 }
 0x293   :  { %1427 = vsyncpa [#allocation4 + $0x1], 1 }

// kernel: forward.5
= control target key start
LH: loop header
LB: loop body
LE: loop exit
PB: predicated region body
PF: predicated region fallthrough
CT: control target
= control target key end

     0   :  { %10 = vsyncpa [#allocation3], 0  ;;  %s2658_s0 = inlined_call_operand.hbm [shape: bf16[2,2304], index: 0, kind: input, shape index: {}]   ;;  %s2659_s1 = inlined_call_operand.hbm [shape: bf16[2304,64], index: 1, kind: input, shape index: {}]   ;;  %s2660_s2 = inlined_call_operand.hbm [shape: f32[1,64], index: 2, kind: input, shape index: {}]   ;;  %s2661_s3 = inlined_call_operand.hbm [shape: bf16[64,10], index: 3, kind: input, shape index: {}]   ;;  %s2662_s4 = inlined_call_operand.hbm [shape: f32[1,10], index: 4, kind: input, shape index: {}]   ;;  %s2663_s5 = inlined_call_operand.hbm [shape: f32[2,10], index: 5, kind: output, shape index: {}]  }
   0x1   :  { %11 = vsyncpa [#allocation6], 0 }
   0x2   :  { %12 = vsyncpa [#allocation9], 0 }
   0x3   :  { %13 = vsyncpa [#allocation4], 0  ;;  %s2519_s18 = smov [#allocation5]   ;;  %s2379_s22 = scalar_lea.hbm %s2659_s1, 18432 }
   0x4   :  { %s29_s19 = sshll.u32 %s2519_s18, 4  ;;  %p2380_p0 = scmp.ne.s32.totalorder %s2659_s1, %s2379_s22  ;;  %s30_s19 = int_to_ptr.vmem [resolvable:$true] %s29_s19 }
   0x5   :  { %p2383_p1 = scmp.lt.u32.totalorder %s2379_s22, %s2659_s1 }
   0x7   :  { %p2385_p2 = pnand %p2383_p1, %p2380_p0 }
   0x9   :  { %2388 = shalt.err (!%p2385_p2)
}
   0xa   :  { %s2389_s27 = scalar_lea.vmem %s30_s19, 18432  ;;  %p2394_p4 = scmp.lt.s32.totalorder %s30_s19, %s30_s19 }
   0xb   :  { %p2390_p3 = scmp.ne.s32.totalorder %s30_s19, %s2389_s27  ;;  %p2395_p5 = scmp.lt.s32.totalorder %s2389_s27, %s2389_s27 }
   0xd   :  { %p2396_p6 = por %p2395_p5, %p2394_p4 }
   0xf   :  { %p2397_p7 = pnand %p2396_p6, %p2390_p3 }
  0x11   :  { %2400 = shalt.err (!%p2397_p7)
}
  0x12   :  { %s2520_s28 = smov 64   ;;  %s2521_s29 = smov 4  }
  0x13   :  { %35 = dma.hbm_to_vmem [thread:$0]  %s2659_s1, 18432, %s30_s19, [#allocation6], %s2520_s28, %s2520_s28, %s2521_s29  }
  0x14   :  { %s2522_s7 = smov [#allocation8]   ;;  %s2523_s9 = smov [#allocation2]  }
  0x15   :  { %s51_s8 = sshll.u32 %s2522_s7, 4  ;;  %s20_s10 = sshll.u32 %s2523_s9, 4  ;;  %s52_s8 = int_to_ptr.vmem [resolvable:$true] %s51_s8  ;;  %s21_s10 = int_to_ptr.vmem [resolvable:$true] %s20_s10 }
  0x16   :  { %s2401_s13 = scalar_lea.hbm %s2661_s3, 512 }
  0x17   :  { %p2402_p8 = scmp.ne.s32.totalorder %s2661_s3, %s2401_s13  ;;  %p2405_p9 = scmp.lt.u32.totalorder %s2401_s13, %s2661_s3 }
  0x19   :  { %p2407_p10 = pnand %p2405_p9, %p2402_p8 }
  0x1b   :  { %2410 = shalt.err (!%p2407_p10)
}
  0x1c   :  { %s2411_s1 = scalar_lea.vmem %s52_s8, 512  ;;  %p2416_p12 = scmp.lt.s32.totalorder %s52_s8, %s52_s8 }
  0x1d   :  { %p2412_p11 = scmp.ne.s32.totalorder %s52_s8, %s2411_s1  ;;  %p2417_p13 = scmp.lt.s32.totalorder %s2411_s1, %s2411_s1 }
  0x1f   :  { %p2418_p0 = por %p2417_p13, %p2416_p12 }
  0x21   :  { %p2419_p1 = pnand %p2418_p0, %p2412_p11 }
  0x23   :  { %2422 = shalt.err (!%p2419_p1)
}
  0x24   :  { %57 = dma.hbm_to_vmem [thread:$0]  %s2661_s3, 512, %s52_s8, [#allocation9], %s2520_s28, %s2520_s28, %s2521_s29  }
  0x25   :  { %s2423_s22 = scalar_lea.hbm %s2658_s0, 288 }
  0x26   :  { %p2424_p2 = scmp.ne.s32.totalorder %s2658_s0, %s2423_s22  ;;  %p2427_p3 = scmp.lt.u32.totalorder %s2423_s22, %s2658_s0 }
  0x28   :  { %p2429_p4 = pnand %p2427_p3, %p2424_p2 }
  0x2a   :  { %2432 = shalt.err (!%p2429_p4)
}
  0x2b   :  { %s2433_s27 = scalar_lea.vmem %s21_s10, 288  ;;  %p2438_p6 = scmp.lt.s32.totalorder %s21_s10, %s21_s10 }
  0x2c   :  { %p2434_p5 = scmp.ne.s32.totalorder %s21_s10, %s2433_s27  ;;  %p2439_p7 = scmp.lt.s32.totalorder %s2433_s27, %s2433_s27 }
  0x2e   :  { %p2440_p8 = por %p2439_p7, %p2438_p6 }
  0x30   :  { %p2441_p9 = pnand %p2440_p8, %p2434_p5 }
  0x32   :  { %2444 = shalt.err (!%p2441_p9)
}
  0x33   :  { %23 = dma.hbm_to_vmem [thread:$0]  %s2658_s0, 288, %s21_s10, [#allocation3]  }
  0x34   :  { %s2524_s29 = smov [#allocation7]   ;;  %s2525_s6 = smov [#allocation10]  }
  0x35   :  { %s42_s30 = sshll.u32 %s2524_s29, 4  ;;  %s64_s7 = sshll.u32 %s2525_s6, 4  ;;  %s43_s30 = int_to_ptr.vmem [resolvable:$true] %s42_s30  ;;  %s65_s7 = int_to_ptr.vmem [resolvable:$true] %s64_s7 }
  0x36   :  { %s2445_s11 = scalar_lea.hbm %s2660_s2, 16 }
  0x37   :  { %p2446_p10 = scmp.ne.s32.totalorder %s2660_s2, %s2445_s11  ;;  %p2449_p11 = scmp.lt.u32.totalorder %s2445_s11, %s2660_s2 }
  0x39   :  { %p2451_p12 = pnand %p2449_p11, %p2446_p10 }
  0x3b   :  { %2454 = shalt.err (!%p2451_p12)
}
  0x3c   :  { %s2455_s0 = scalar_lea.vmem %s43_s30, 16  ;;  %s2459_s10 = scalar_lea.vmem %s43_s30, 32 }
  0x3d   :  { %p2456_p13 = scmp.ne.s32.totalorder %s43_s30, %s2455_s0  ;;  %p2460_p0 = scmp.lt.s32.totalorder %s43_s30, %s43_s30 }
  0x3e   :  { %p2461_p1 = scmp.lt.s32.totalorder %s2459_s10, %s2455_s0 }
  0x40   :  { %p2462_p2 = por %p2461_p1, %p2460_p0 }
  0x42   :  { %p2463_p3 = pnand %p2462_p2, %p2456_p13 }
  0x44   :  { %2466 = shalt.err (!%p2463_p3)
}
  0x45   :  { %45 = dma.hbm_to_vmem [thread:$0]  %s2660_s2, 16, %s43_s30, [#allocation6]  }
  0x46   :  { %s2467_s19 = scalar_lea.hbm %s2662_s4, 16 }
  0x47   :  { %p2468_p4 = scmp.ne.s32.totalorder %s2662_s4, %s2467_s19  ;;  %p2471_p5 = scmp.lt.u32.totalorder %s2467_s19, %s2662_s4 }
  0x49   :  { %p2473_p6 = pnand %p2471_p5, %p2468_p4 }
  0x4b   :  { %2476 = shalt.err (!%p2473_p6)
}
  0x4c   :  { %s2477_s24 = scalar_lea.vmem %s65_s7, 16  ;;  %s2481_s25 = scalar_lea.vmem %s65_s7, 32 }
  0x4d   :  { %p2478_p7 = scmp.ne.s32.totalorder %s65_s7, %s2477_s24  ;;  %p2482_p8 = scmp.lt.s32.totalorder %s65_s7, %s65_s7 }
  0x4e   :  { %p2483_p9 = scmp.lt.s32.totalorder %s2481_s25, %s2477_s24 }
  0x50   :  { %p2484_p10 = por %p2483_p9, %p2482_p8 }
  0x52   :  { %p2485_p11 = pnand %p2484_p10, %p2478_p7 }
  0x54   :  { %2488 = shalt.err (!%p2485_p11)
}
  0x55   :  { %67 = dma.hbm_to_vmem [thread:$0]  %s2662_s4, 16, %s65_s7, [#allocation9]  }
  0x56   :  { %2511 = dma.done.wait [#allocation3], 288  }
  0x57   :  { %2512 = vsyncadd [#allocation3], 4294967008 }
  0x58   :  { %2513 = dma.done.wait [#allocation6], 18448  }
  0x59   :  { %2514 = vsyncadd [#allocation6], 4294948848 }
  0x5a   :  { %2515 = dma.done.wait [#allocation9], 528  }
  0x5b   :  { %2516 = vsyncadd [#allocation9], 4294966768  ;;  %v2229_v0 = vld [vmem:[#allocation5 + $0x40] sm:$0xff]   ;;  %v2233_v4 = vld [vmem:[#allocation5 + $0x48] sm:$0xff]   ;;  %v2526_v21 = vmov 1966171168   ;;  %v389_v23 = vlaneseq }
  0x5c   :  { %v2230_v1 = vld [vmem:[#allocation5] sm:$0xff]   ;;  %2003 = vmatprep.subr.bf16.mxu0 %v2229_v0  ;;  %v2234_v5 = vld [vmem:[#allocation5 + $0x8] sm:$0xff]   ;;  %v2237_v8 = vld [vmem:[#allocation5 + $0x50] sm:$0xff]   ;;  %v387_v22 = vunpack.c.l.s4 %v2526_v21  ;;  %vm2528_vm0 = vmmov 0   ;;  %vm1788_vm1 = vcmask 523264   ;;  %s2529_s4 = smov [#allocation11]  }
  0x5d   :  { %v2231_v2 = vld [vmem:[#allocation5 + $0xc0] sm:$0xff]   ;;  %2004 = vmatpush3.bf16.msra.mxu0 %v2230_v1  ;;  %v2235_v6 = vld [vmem:[#allocation5 + $0xc8] sm:$0xff]   ;;  %v2238_v9 = vld [vmem:[#allocation5 + $0x10] sm:$0xff]   ;;  %v390_v29 = vshrl.u32 %v389_v23, 7  ;;  %s1840_s27 = sshll.u32 %s2529_s4, 4  ;;  %vm1832_vm2 = vcmask 74752   ;;  %s1841_s27 = int_to_ptr.vmem [resolvable:$true] %s1840_s27 }
  0x5e   :  { %v2232_v3 = vld [vmem:[#allocation5 + $0x80] sm:$0xff]   ;;  %2025 = vmatprep.subr.bf16.mxu1 %v2231_v2  ;;  %2005 = vmatprep.subr.bf16.mxu0 %v2233_v4  ;;  %v2236_v7 = vld [vmem:[#allocation5 + $0x88] sm:$0xff]   ;;  %v2239_v10 = vld [vmem:[#allocation5 + $0xd0] sm:$0xff]   ;;  %v388_v28 = vunpack.c.0.s8 %v387_v22  ;;  %s2489_s3 = scalar_lea.vmem %s1841_s27, 32  ;;  %p2494_p13 = scmp.lt.s32.totalorder %s1841_s27, %s1841_s27 }
  0x5f   :  { %2026 = vmatpush3.bf16.msra.mxu1 %v2232_v3  ;;  %v2240_v11 = vld [vmem:[#allocation5 + $0x90] sm:$0xff]   ;;  %v2241_v12 = vld [vmem:[#allocation5 + $0x58] sm:$0xff]   ;;  %v2245_v16 = vld [vmem:[#allocation5 + $0x60] sm:$0xff]   ;;  %p2490_p12 = scmp.ne.s32.totalorder %s1841_s27, %s2489_s3  ;;  %p2495_p0 = scmp.lt.s32.totalorder %s2489_s3, %s2489_s3 }
  0x60   :  { %2027 = vmatprep.subr.bf16.mxu1 %v2235_v6  ;;  %v2242_v13 = vld [vmem:[#allocation5 + $0x18] sm:$0xff]   ;;  %v2246_v17 = vld [vmem:[#allocation5 + $0x20] sm:$0xff]   ;;  %v2249_v20 = vld [vmem:[#allocation5 + $0x68] sm:$0xff]   ;;  %v2620_v34 = vsub.s32 %v388_v28, %v390_v29 }
  0x61   :  { %2006 = vmatpush3.bf16.msra.mxu0 %v2234_v5  ;;  %v2243_v14 = vld [vmem:[#allocation5 + $0xd8] sm:$0xff]   ;;  %v2247_v18 = vld [vmem:[#allocation5 + $0xe0] sm:$0xff]   ;;  %v2250_v24 = vld [vmem:[#allocation5 + $0x28] sm:$0xff]   ;;  %p2496_p1 = por %p2495_p0, %p2494_p13 }
  0x62   :  { %2007 = vmatprep.subr.bf16.mxu0 %v2237_v8  ;;  %v2244_v15 = vld [vmem:[#allocation5 + $0x98] sm:$0xff]   ;;  %v2248_v19 = vld [vmem:[#allocation5 + $0xa0] sm:$0xff]   ;;  %v2251_v25 = vld [vmem:[#allocation5 + $0xe8] sm:$0xff]  }
  0x63   :  { %2028 = vmatpush3.bf16.msra.mxu1 %v2236_v7  ;;  %v2252_v26 = vld [vmem:[#allocation5 + $0xa8] sm:$0xff]   ;;  %v2253_v27 = vld [vmem:[#allocation5 + $0x70] sm:$0xff]   ;;  %v2257_v33 = vld [vmem:[#allocation5 + $0x78] sm:$0xff]   ;;  %p2497_p2 = pnand %p2496_p1, %p2490_p12 }
  0x64   :  { %2029 = vmatprep.subr.bf16.mxu1 %v2239_v10  ;;  %v2254_v30 = vld [vmem:[#allocation5 + $0x30] sm:$0xff]   ;;  %v2258_v35 = vld [vmem:[#allocation5 + $0x38] sm:$0xff]   ;;  %v2262_v41 = vld [vmem:[#allocation5 + $0x140] sm:$0xff]  }
  0x65   :  { %2008 = vmatpush3.bf16.msra.mxu0 %v2238_v9  ;;  %v2255_v31 = vld [vmem:[#allocation5 + $0xf0] sm:$0xff]   ;;  %v2259_v36 = vld [vmem:[#allocation5 + $0xf8] sm:$0xff]   ;;  %v2264_v45 = vld [vmem:[#allocation5 + $0x1c0] sm:$0xff]  }
  0x66   :  { %2009 = vmatprep.subr.bf16.mxu0 %v2241_v12  ;;  %v2256_v32 = vld [vmem:[#allocation5 + $0xb0] sm:$0xff]   ;;  %v2261_v40 = vld [vmem:[#allocation5 + $0xb8] sm:$0xff]   ;;  %v2263_v47 = vld [vmem:[#allocation5 + $0x100] sm:$0xff]  }
  0x67   :  { %2030 = vmatpush3.bf16.msra.mxu1 %v2240_v11  ;;  %v84_v37 = vld [vmem:[#allocation2] sm:$0xff]  ;;  %v2265_v52 = vld [vmem:[#allocation5 + $0x180] sm:$0xff]   ;;  %v2274_v61 = vld [vmem:[#allocation5 + $0x158] sm:$0xff]  }
  0x68   :  { %2031 = vmatprep.subr.bf16.mxu1 %v2243_v14  ;;  %v385_v38 = vcombine.high %v84_v37, %v84_v37  ;;  %v392_v39 = vrot.slane %v84_v37, %v2620_v34  ;;  %v2266_v50 = vld [vmem:[#allocation5 + $0x148] sm:$0xff]   ;;  %v2270_v57 = vld [vmem:[#allocation5 + $0x150] sm:$0xff]   ;;  %v2276_v63 = vld [vmem:[#allocation5 + $0x1d8] sm:$0xff]  }
  0x69   :  { %2010 = vmatpush3.bf16.msra.mxu0 %v2242_v13  ;;  %v2268_v54 = vld [vmem:[#allocation5 + $0x1c8] sm:$0xff]   ;;  %v2272_v59 = vld [vmem:[#allocation5 + $0x1d0] sm:$0xff]   ;;  %v2275_v0 = vld [vmem:[#allocation5 + $0x118] sm:$0xff]  }
  0x6a   :  { %2011 = vmatprep.subr.bf16.mxu0 %v2245_v16  ;;  %v400_v42 = vcombine.high %v392_v39, %v392_v39  ;;  %v408_v43 = vrot.slane %v392_v39, %v2620_v34  ;;  %v2625_v44 = vrot.slane %v385_v38, %v2620_v34  ;;  %v2267_v55 = vld [vmem:[#allocation5 + $0x108] sm:$0xff]   ;;  %v2271_v60 = vld [vmem:[#allocation5 + $0x110] sm:$0xff]   ;;  %v2278_v1 = vld [vmem:[#allocation5 + $0x160] sm:$0xff]  }
  0x6b   :  { %2032 = vmatpush3.bf16.msra.mxu1 %v2244_v15  ;;  %v2269_v58 = vld [vmem:[#allocation5 + $0x188] sm:$0xff]   ;;  %v2273_v62 = vld [vmem:[#allocation5 + $0x190] sm:$0xff]   ;;  %v2277_v2 = vld [vmem:[#allocation5 + $0x198] sm:$0xff]  }
  0x6c   :  { %2033 = vmatprep.subr.bf16.mxu1 %v2247_v18  ;;  %v422_v46 = vrot.slane %v400_v42, %v2620_v34  ;;  %v401_v48 = vcombine.high %v2625_v44, %v2625_v44  ;;  %v430_v49 = vcombine.high %v408_v43, %v408_v43  ;;  %v2280_v3 = vld [vmem:[#allocation5 + $0x1e0] sm:$0xff]   ;;  %v2282_v5 = vld [vmem:[#allocation5 + $0x168] sm:$0xff]   ;;  %v2286_v9 = vld [vmem:[#allocation5 + $0x170] sm:$0xff]  }
  0x6d   :  { %2012 = vmatpush3.bf16.msra.mxu0 %v2246_v17  ;;  %v2279_v4 = vld [vmem:[#allocation5 + $0x120] sm:$0xff]   ;;  %v2284_v7 = vld [vmem:[#allocation5 + $0x1e8] sm:$0xff]   ;;  %v2288_v11 = vld [vmem:[#allocation5 + $0x1f0] sm:$0xff]   ;;  %v415_v17 = vrot.slane %v2625_v44, %v2620_v34 }
  0x6e   :  { %2013 = vmatprep.subr.bf16.mxu0 %v2249_v20  ;;  %1419 = vmatprep.mubr.bf16.mxu0 %v422_v46  ;;  %v432_v51 = vcombine.high %v422_v46, %v422_v46  ;;  %v429_v53 = vrot.slane %v401_v48, %v2620_v34  ;;  %v2281_v6 = vld [vmem:[#allocation5 + $0x1a0] sm:$0xff]   ;;  %v2283_v8 = vld [vmem:[#allocation5 + $0x128] sm:$0xff]   ;;  %v2287_v12 = vld [vmem:[#allocation5 + $0x130] sm:$0xff]  }
  0x6f   :  { %2034 = vmatpush3.bf16.msra.mxu1 %v2248_v19  ;;  %v2285_v10 = vld [vmem:[#allocation5 + $0x1a8] sm:$0xff]   ;;  %v2290_v13 = vld [vmem:[#allocation5 + $0x178] sm:$0xff]   ;;  %v2289_v14 = vld [vmem:[#allocation5 + $0x1b0] sm:$0xff]   ;;  %v431_v22 = vcombine.high %v415_v17, %v415_v17 }
  0x70   :  { %2035 = vmatprep.subr.bf16.mxu1 %v2251_v25  ;;  %1459 = vmatprep.mubr.bf16.mxu1 %v432_v51  ;;  %v433_v56 = vcombine.high %v429_v53, %v429_v53  ;;  %v2292_v15 = vld [vmem:[#allocation5 + $0x1f8] sm:$0xff]   ;;  %v2294_v18 = vld [vmem:[#allocation5 + $0x240] sm:$0xff]   ;;  %v2298_v23 = vld [vmem:[#allocation5 + $0x248] sm:$0xff]  }
  0x71   :  { %2014 = vmatpush3.bf16.msra.mxu0 %v2250_v24  ;;  %v2291_v16 = vld [vmem:[#allocation5 + $0x138] sm:$0xff]   ;;  %v2296_v20 = vld [vmem:[#allocation5 + $0x2c0] sm:$0xff]   ;;  %v2300_v25 = vld [vmem:[#allocation5 + $0x2c8] sm:$0xff]  }
  0x72   :  { %2015 = vmatprep.subr.bf16.mxu0 %v2253_v27  ;;  %v2293_v19 = vld [vmem:[#allocation5 + $0x1b8] sm:$0xff]   ;;  %v2295_v21 = vld [vmem:[#allocation5 + $0x200] sm:$0xff]   ;;  %v2302_v27 = vld [vmem:[#allocation5 + $0x250] sm:$0xff]  }
  0x73   :  { %2036 = vmatpush3.bf16.msra.mxu1 %v2252_v26  ;;  %v2297_v24 = vld [vmem:[#allocation5 + $0x280] sm:$0xff]   ;;  %v2299_v26 = vld [vmem:[#allocation5 + $0x208] sm:$0xff]   ;;  %v2304_v29 = vld [vmem:[#allocation5 + $0x2d0] sm:$0xff]  }
  0x74   :  { %2037 = vmatprep.subr.bf16.mxu1 %v2255_v31  ;;  %v2301_v28 = vld [vmem:[#allocation5 + $0x288] sm:$0xff]   ;;  %v2306_v31 = vld [vmem:[#allocation5 + $0x258] sm:$0xff]   ;;  %v2312_v38 = vld [vmem:[#allocation5 + $0x2e0] sm:$0xff]  }
  0x75   :  { %2016 = vmatpush3.bf16.msra.mxu0 %v2254_v30  ;;  %v2303_v30 = vld [vmem:[#allocation5 + $0x210] sm:$0xff]   ;;  %v2309_v37 = vld [vmem:[#allocation5 + $0x298] sm:$0xff]   ;;  %v2311_v39 = vld [vmem:[#allocation5 + $0x220] sm:$0xff]  }
  0x76   :  { %2017 = vmatprep.subr.bf16.mxu0 %v2257_v33  ;;  %v2308_v33 = vld [vmem:[#allocation5 + $0x2d8] sm:$0xff]   ;;  %v2316_v42 = vld [vmem:[#allocation5 + $0x2e8] sm:$0xff]   ;;  %v2318_v44 = vld [vmem:[#allocation5 + $0x270] sm:$0xff]  }
  0x77   :  { %2038 = vmatpush3.bf16.msra.mxu1 %v2256_v32  ;;  %v2305_v32 = vld [vmem:[#allocation5 + $0x290] sm:$0xff]   ;;  %v2322_v48 = vld [vmem:[#allocation5 + $0x278] sm:$0xff]  }
  0x78   :  { %2039 = vmatprep.subr.bf16.mxu1 %v2259_v36  ;;  %v2310_v36 = vld [vmem:[#allocation5 + $0x260] sm:$0xff]   ;;  %v2320_v46 = vld [vmem:[#allocation5 + $0x2f0] sm:$0xff]  }
  0x79   :  { %2018 = vmatpush3.bf16.msra.mxu0 %v2258_v35  ;;  %v2307_v35 = vld [vmem:[#allocation5 + $0x218] sm:$0xff]  }
  0x7a   :  { %2047 = vmatprep.subr.bf16.mxu0 %v2262_v41  ;;  %v2313_v41 = vld [vmem:[#allocation5 + $0x2a0] sm:$0xff]   ;;  %v85_v51 = vld [vmem:[#allocation2 + $0x8] sm:$0xff] }
  0x7b   :  { %2040 = vmatpush3.bf16.msra.mxu1 %v2261_v40  ;;  %v2314_v40 = vld [vmem:[#allocation5 + $0x268] sm:$0xff]  }
  0x7c   :  { %2069 = vmatprep.subr.bf16.mxu1 %v2264_v45  ;;  %1420 = vmatmul.mubr.bf16.vlgmr.msra.gmra.mrb[0].mxu0 %v408_v43  ;;  %v2315_v43 = vld [vmem:[#allocation5 + $0x228] sm:$0xff]  }
  0x7d   :  { %2048 = vmatpush3.bf16.msra.mxu0 %v2263_v47  ;;  %1499 = vmatprep.mubr.bf16.mxu0 %v429_v53  ;;  %v2317_v45 = vld [vmem:[#allocation5 + $0x2a8] sm:$0xff]   ;;  %v2319_v47 = vld [vmem:[#allocation5 + $0x230] sm:$0xff]   ;;  %v441_v53 = vrot.slane %v85_v51, %v2620_v34 }
  0x7e   :  { %1460 = vmatmul.mubr.bf16.vlgmr.msra.gmra.mrb[0].mxu1 %v430_v49  ;;  %2049 = vmatprep.subr.bf16.mxu0 %v2266_v50  ;;  %v2321_v49 = vld [vmem:[#allocation5 + $0x2b0] sm:$0xff]   ;;  %v2324_v50 = vld [vmem:[#allocation5 + $0x2f8] sm:$0xff]  }
  0x7f   :  { %2070 = vmatpush3.bf16.msra.mxu1 %v2265_v52  ;;  %1539 = vmatprep.mubr.bf16.mxu1 %v433_v56  ;;  %v2323_v52 = vld [vmem:[#allocation5 + $0x238] sm:$0xff]   ;;  %v449_v56 = vcombine.high %v441_v53, %v441_v53 }
  0x80   :  { %2071 = vmatprep.subr.bf16.mxu1 %v2268_v54  ;;  %v434_v54 = vcombine.high %v85_v51, %v85_v51  ;;  %v2371_v51 = vld [vmem:[#allocation5 + $0x470] sm:$0xff]  }
  0x81   :  { %2050 = vmatpush3.bf16.msra.mxu0 %v2267_v55  ;;  %v2326_v55 = vld [vmem:[#allocation5 + $0x340] sm:$0xff]  }
  0x82   :  { %2051 = vmatprep.subr.bf16.mxu0 %v2270_v57  ;;  %v2325_v57 = vld [vmem:[#allocation5 + $0x2b8] sm:$0xff]  }
  0x83   :  { %2072 = vmatpush3.bf16.msra.mxu1 %v2269_v58  ;;  %v457_v58 = vrot.slane %v441_v53, %v2620_v34  ;;  %v2373_v53 = vld [vmem:[#allocation5 + $0x478] sm:$0xff]  }
  0x84   :  { %2073 = vmatprep.subr.bf16.mxu1 %v2272_v59  ;;  %v2636_v59 = vrot.slane %v434_v54, %v2620_v34  ;;  %v2374_v54 = vld [vmem:[#allocation5 + $0x438] sm:$0xff]  }
  0x85   :  { %2052 = vmatpush3.bf16.msra.mxu0 %v2271_v60  ;;  %v2328_v60 = vld [vmem:[#allocation5 + $0x3c0] sm:$0xff]  }
  0x86   :  { %2053 = vmatprep.subr.bf16.mxu0 %v2274_v61  ;;  %v471_v61 = vrot.slane %v449_v56, %v2620_v34  ;;  %v2375_v56 = vld [vmem:[#allocation8] sm:$0xff]  }
  0x87   :  { %2074 = vmatpush3.bf16.msra.mxu1 %v2273_v62  ;;  %v2327_v62 = vld [vmem:[#allocation5 + $0x300] sm:$0xff]  }
  0x88   :  { %2075 = vmatprep.subr.bf16.mxu1 %v2276_v63  ;;  %v450_v63 = vcombine.high %v2636_v59, %v2636_v59 }
  0x89   :  { %2054 = vmatpush3.bf16.msra.mxu0 %v2275_v0  ;;  %v479_v0 = vcombine.high %v457_v58, %v457_v58 }
  0x8a   :  { %2055 = vmatprep.subr.bf16.mxu0 %v2278_v1  ;;  %v2330_v1 = vld [vmem:[#allocation5 + $0x348] sm:$0xff]  }
  0x8b   :  { %2076 = vmatpush3.bf16.msra.mxu1 %v2277_v2  ;;  %v481_v2 = vcombine.high %v471_v61, %v471_v61 }
  0x8c   :  { %2077 = vmatprep.subr.bf16.mxu1 %v2280_v3  ;;  %v2329_v3 = vld [vmem:[#allocation5 + $0x380] sm:$0xff]  }
  0x8d   :  { %2056 = vmatpush3.bf16.msra.mxu0 %v2279_v4  ;;  %v478_v4 = vrot.slane %v450_v63, %v2620_v34 }
  0x8e   :  { %2057 = vmatprep.subr.bf16.mxu0 %v2282_v5  ;;  %v2332_v5 = vld [vmem:[#allocation5 + $0x3c8] sm:$0xff]  }
  0x8f   :  { %2078 = vmatpush3.bf16.msra.mxu1 %v2281_v6  ;;  %v2331_v6 = vld [vmem:[#allocation5 + $0x308] sm:$0xff]  }
  0x90   :  { %2079 = vmatprep.subr.bf16.mxu1 %v2284_v7  ;;  %v482_v7 = vcombine.high %v478_v4, %v478_v4 }
  0x91   :  { %2058 = vmatpush3.bf16.msra.mxu0 %v2283_v8  ;;  %v2334_v8 = vld [vmem:[#allocation5 + $0x350] sm:$0xff]  }
  0x92   :  { %2059 = vmatprep.subr.bf16.mxu0 %v2286_v9  ;;  %v2333_v9 = vld [vmem:[#allocation5 + $0x388] sm:$0xff]  }
  0x93   :  { %2080 = vmatpush3.bf16.msra.mxu1 %v2285_v10  ;;  %v2336_v10 = vld [vmem:[#allocation5 + $0x3d0] sm:$0xff]  }
  0x94   :  { %2081 = vmatprep.subr.bf16.mxu1 %v2288_v11  ;;  %v2335_v11 = vld [vmem:[#allocation5 + $0x310] sm:$0xff]  }
  0x95   :  { %2060 = vmatpush3.bf16.msra.mxu0 %v2287_v12  ;;  %v2338_v12 = vld [vmem:[#allocation5 + $0x358] sm:$0xff]  }
  0x96   :  { %2061 = vmatprep.subr.bf16.mxu0 %v2290_v13  ;;  %v2337_v13 = vld [vmem:[#allocation5 + $0x390] sm:$0xff]  }
  0x97   :  { %2082 = vmatpush3.bf16.msra.mxu1 %v2289_v14  ;;  %v2340_v14 = vld [vmem:[#allocation5 + $0x3d8] sm:$0xff]  }
  0x98   :  { %2083 = vmatprep.subr.bf16.mxu1 %v2292_v15  ;;  %v2339_v15 = vld [vmem:[#allocation5 + $0x318] sm:$0xff]  }
  0x99   :  { %2062 = vmatpush3.bf16.msra.mxu0 %v2291_v16  ;;  %v2342_v16 = vld [vmem:[#allocation5 + $0x360] sm:$0xff]  }
  0x9a   :  { %2091 = vmatprep.subr.bf16.mxu0 %v2294_v18  ;;  %v2344_v18 = vld [vmem:[#allocation5 + $0x3e0] sm:$0xff]  }
  0x9b   :  { %2084 = vmatpush3.bf16.msra.mxu1 %v2293_v19  ;;  %v2343_v19 = vld [vmem:[#allocation5 + $0x320] sm:$0xff]  }
  0x9c   :  { %1500 = vmatmul.mubr.bf16.vlgmr.msra.gmra.mrb[4].mxu0 %v415_v17  ;;  %2113 = vmatprep.subr.bf16.mxu1 %v2296_v20  ;;  %v2341_v17 = vld [vmem:[#allocation5 + $0x398] sm:$0xff]   ;;  %v2346_v20 = vld [vmem:[#allocation5 + $0x368] sm:$0xff]  }
  0x9d   :  { %2092 = vmatpush3.bf16.msra.mxu0 %v2295_v21  ;;  %1579 = vmatprep.mubr.bf16.mxu0 %v471_v61  ;;  %v2345_v21 = vld [vmem:[#allocation5 + $0x3a0] sm:$0xff]  }
  0x9e   :  { %1540 = vmatmul.mubr.bf16.vlgmr.msra.gmra.mrb[4].mxu1 %v431_v22  ;;  %2093 = vmatprep.subr.bf16.mxu0 %v2298_v23  ;;  %v2348_v22 = vld [vmem:[#allocation5 + $0x3e8] sm:$0xff]  }
  0x9f   :  { %2114 = vmatpush3.bf16.msra.mxu1 %v2297_v24  ;;  %1619 = vmatprep.mubr.bf16.mxu1 %v481_v2  ;;  %v2347_v23 = vld [vmem:[#allocation5 + $0x328] sm:$0xff]   ;;  %v2350_v24 = vld [vmem:[#allocation5 + $0x370] sm:$0xff]  }
  0xa0   :  { %2115 = vmatprep.subr.bf16.mxu1 %v2300_v25  ;;  %v2349_v25 = vld [vmem:[#allocation5 + $0x3a8] sm:$0xff]  }
  0xa1   :  { %2094 = vmatpush3.bf16.msra.mxu0 %v2299_v26  ;;  %v2352_v26 = vld [vmem:[#allocation5 + $0x3f0] sm:$0xff]  }
  0xa2   :  { %2095 = vmatprep.subr.bf16.mxu0 %v2302_v27  ;;  %v2351_v27 = vld [vmem:[#allocation5 + $0x330] sm:$0xff]  }
  0xa3   :  { %2116 = vmatpush3.bf16.msra.mxu1 %v2301_v28  ;;  %v2354_v28 = vld [vmem:[#allocation5 + $0x378] sm:$0xff]  }
  0xa4   :  { %2117 = vmatprep.subr.bf16.mxu1 %v2304_v29  ;;  %v2353_v29 = vld [vmem:[#allocation5 + $0x3b0] sm:$0xff]  }
  0xa5   :  { %2096 = vmatpush3.bf16.msra.mxu0 %v2303_v30  ;;  %v2356_v30 = vld [vmem:[#allocation5 + $0x3f8] sm:$0xff]  }
  0xa6   :  { %2097 = vmatprep.subr.bf16.mxu0 %v2306_v31  ;;  %v2355_v31 = vld [vmem:[#allocation5 + $0x338] sm:$0xff]  }
  0xa7   :  { %2118 = vmatpush3.bf16.msra.mxu1 %v2305_v32  ;;  %v464_v32 = vrot.slane %v2636_v59, %v2620_v34 }
  0xa8   :  { %2119 = vmatprep.subr.bf16.mxu1 %v2308_v33  ;;  %v2359_v33 = vld [vmem:[#allocation5 + $0x440] sm:$0xff]  }
  0xa9   :  { %2098 = vmatpush3.bf16.msra.mxu0 %v2307_v35  ;;  %v2358_v35 = vld [vmem:[#allocation5 + $0x3b8] sm:$0xff]  }
  0xaa   :  { %2099 = vmatprep.subr.bf16.mxu0 %v2310_v36  ;;  %v2360_v36 = vld [vmem:[#allocation5 + $0x400] sm:$0xff]  }
  0xab   :  { %2120 = vmatpush3.bf16.msra.mxu1 %v2309_v37  ;;  %v480_v37 = vcombine.high %v464_v32, %v464_v32 }
  0xac   :  { %2121 = vmatprep.subr.bf16.mxu1 %v2312_v38  ;;  %v2361_v38 = vld [vmem:[#allocation5 + $0x448] sm:$0xff]  }
  0xad   :  { %2100 = vmatpush3.bf16.msra.mxu0 %v2311_v39  ;;  %v2362_v39 = vld [vmem:[#allocation5 + $0x408] sm:$0xff]  }
  0xae   :  { %2101 = vmatprep.subr.bf16.mxu0 %v2314_v40  ;;  %v2363_v40 = vld [vmem:[#allocation5 + $0x450] sm:$0xff]  }
  0xaf   :  { %2122 = vmatpush3.bf16.msra.mxu1 %v2313_v41  ;;  %v2364_v41 = vld [vmem:[#allocation5 + $0x410] sm:$0xff]  }
  0xb0   :  { %2123 = vmatprep.subr.bf16.mxu1 %v2316_v42  ;;  %v2365_v42 = vld [vmem:[#allocation5 + $0x458] sm:$0xff]  }
  0xb1   :  { %2102 = vmatpush3.bf16.msra.mxu0 %v2315_v43  ;;  %v2366_v43 = vld [vmem:[#allocation5 + $0x418] sm:$0xff]  }
  0xb2   :  { %2103 = vmatprep.subr.bf16.mxu0 %v2318_v44  ;;  %v2367_v44 = vld [vmem:[#allocation5 + $0x460] sm:$0xff]  }
  0xb3   :  { %2124 = vmatpush3.bf16.msra.mxu1 %v2317_v45  ;;  %v1852_v45 = vld.sshfl [vmem:[#allocation2 + $0x10] sm:$0x11 pattern:$0x75316420] }
  0xb4   :  { %2125 = vmatprep.subr.bf16.mxu1 %v2320_v46  ;;  %v490_v46 = vcombine.high %v1852_v45, %v1852_v45 }
  0xb5   :  { %2104 = vmatpush3.bf16.msra.mxu0 %v2319_v47  ;;  %v2368_v47 = vld [vmem:[#allocation5 + $0x420] sm:$0xff]  }
  0xb6   :  { %2105 = vmatprep.subr.bf16.mxu0 %v2322_v48  ;;  %v504_v48 = vrot.slane %v490_v46, %v2620_v34 }
  0xb7   :  { %2126 = vmatpush3.bf16.msra.mxu1 %v2321_v49  ;;  %v2369_v49 = vld [vmem:[#allocation5 + $0x468] sm:$0xff]  }
  0xb8   :  { %2127 = vmatprep.subr.bf16.mxu1 %v2324_v50  ;;  %v2370_v50 = vld [vmem:[#allocation5 + $0x428] sm:$0xff]  }
  0xb9   :  { %2106 = vmatpush3.bf16.msra.mxu0 %v2323_v52  ;;  %v2372_v52 = vld [vmem:[#allocation5 + $0x430] sm:$0xff]  }
  0xba   :  { %2135 = vmatprep.subr.bf16.mxu0 %v2326_v55  ;;  %v497_v55 = vrot.slane %v1852_v45, %v2620_v34 }
  0xbb   :  { %2128 = vmatpush3.bf16.msra.mxu1 %v2325_v57  ;;  %v2527_v57 = vmov 0.0  }
  0xbc   :  { %1580 = vmatmul.mubr.bf16.vlgmr.msra.gmra.mrb[8].mxu0 %v457_v58  ;;  %2157 = vmatprep.subr.bf16.mxu1 %v2328_v60  ;;  %v2376_v58 = vld [vmem:[#allocation8 + $0x8] sm:$0xff]   ;;  %v1851_v60 = vld [vmem:[#allocation7] ss:$0 sm:$0xff] }
  0xbd   :  { %2136 = vmatpush3.bf16.msra.mxu0 %v2327_v62  ;;  %1659 = vmatprep.mubr.bf16.mxu0 %v478_v4  ;;  %v2377_v62 = vld [vmem:[#allocation8 + $0x10] sm:$0xff]  }
  0xbe   :  { %1620 = vmatmul.mubr.bf16.vlgmr.msra.gmra.mrb[8].mxu1 %v479_v0  ;;  %2137 = vmatprep.subr.bf16.mxu0 %v2330_v1 }
  0xbf   :  { %2158 = vmatpush3.bf16.msra.mxu1 %v2329_v3  ;;  %1699 = vmatprep.mubr.bf16.mxu1 %v482_v7  ;;  %v2378_v7 = vld [vmem:[#allocation8 + $0x18] sm:$0xff]  }
  0xc0   :  { %2159 = vmatprep.subr.bf16.mxu1 %v2332_v5 }
  0xc1   :  { %2138 = vmatpush3.bf16.msra.mxu0 %v2331_v6 }
  0xc2   :  { %2139 = vmatprep.subr.bf16.mxu0 %v2334_v8 }
  0xc3   :  { %2160 = vmatpush3.bf16.msra.mxu1 %v2333_v9 }
  0xc4   :  { %2161 = vmatprep.subr.bf16.mxu1 %v2336_v10 }
  0xc5   :  { %2140 = vmatpush3.bf16.msra.mxu0 %v2335_v11 }
  0xc6   :  { %2141 = vmatprep.subr.bf16.mxu0 %v2338_v12 }
  0xc7   :  { %2162 = vmatpush3.bf16.msra.mxu1 %v2337_v13 }
  0xc8   :  { %2163 = vmatprep.subr.bf16.mxu1 %v2340_v14 }
  0xc9   :  { %2142 = vmatpush3.bf16.msra.mxu0 %v2339_v15 }
  0xca   :  { %2143 = vmatprep.subr.bf16.mxu0 %v2342_v16 }
  0xcb   :  { %2164 = vmatpush3.bf16.msra.mxu1 %v2341_v17 }
  0xcc   :  { %2165 = vmatprep.subr.bf16.mxu1 %v2344_v18 }
  0xcd   :  { %2144 = vmatpush3.bf16.msra.mxu0 %v2343_v19 }
  0xce   :  { %2145 = vmatprep.subr.bf16.mxu0 %v2346_v20 }
  0xcf   :  { %2166 = vmatpush3.bf16.msra.mxu1 %v2345_v21 }
  0xd0   :  { %2167 = vmatprep.subr.bf16.mxu1 %v2348_v22 }
  0xd1   :  { %2146 = vmatpush3.bf16.msra.mxu0 %v2347_v23 }
  0xd2   :  { %2147 = vmatprep.subr.bf16.mxu0 %v2350_v24 }
  0xd3   :  { %2168 = vmatpush3.bf16.msra.mxu1 %v2349_v25 }
  0xd4   :  { %2169 = vmatprep.subr.bf16.mxu1 %v2352_v26 }
  0xd5   :  { %2148 = vmatpush3.bf16.msra.mxu0 %v2351_v27 }
  0xd6   :  { %2149 = vmatprep.subr.bf16.mxu0 %v2354_v28 }
  0xd7   :  { %2170 = vmatpush3.bf16.msra.mxu1 %v2353_v29 }
  0xd8   :  { %2171 = vmatprep.subr.bf16.mxu1 %v2356_v30 }
  0xd9   :  { %2150 = vmatpush3.bf16.msra.mxu0 %v2355_v31 }
  0xda   :  { %2179 = vmatprep.subr.bf16.mxu0 %v2359_v33 }
  0xdb   :  { %2172 = vmatpush3.bf16.msra.mxu1 %v2358_v35 }
  0xdc   :  { %1660 = vmatmul.mubr.bf16.vlgmr.msra.gmra.mrb[12].mxu0 %v464_v32  ;;  %2206 = vmatprep.subr.bf16.mxu1 %v2527_v57 }
  0xdd   :  { %2180 = vmatpush3.bf16.msra.mxu0 %v2360_v36  ;;  %1739 = vmatprep.mubr.bf16.mxu0 %v504_v48 }
  0xde   :  { %1700 = vmatmul.mubr.bf16.vlgmr.msra.gmra.mrb[12].mxu1 %v480_v37  ;;  %2181 = vmatprep.subr.bf16.mxu0 %v2361_v38 }
  0xdf   :  { %2207 = vmatpush3.bf16.msra.mxu1 %v2375_v56  ;;  %2214 = vmatprep.mubr.msk.bf16.mxu1 %vm2528_vm0, %v2527_v57 }
  0xe0   :  { %2208 = vmatprep.subr.bf16.mxu1 %v2527_v57 }
  0xe1   :  { %2182 = vmatpush3.bf16.msra.mxu0 %v2362_v39 }
  0xe2   :  { %2183 = vmatprep.subr.bf16.mxu0 %v2363_v40 }
  0xe3   :  { %2209 = vmatpush3.bf16.msra.mxu1 %v2376_v58 }
  0xe4   :  { %2210 = vmatprep.subr.bf16.mxu1 %v2527_v57 }
  0xe5   :  { %2184 = vmatpush3.bf16.msra.mxu0 %v2364_v41 }
  0xe6   :  { %2185 = vmatprep.subr.bf16.mxu0 %v2365_v42 }
  0xe7   :  { %2211 = vmatpush3.bf16.msra.mxu1 %v2377_v62 }
  0xe8   :  { %2212 = vmatprep.subr.bf16.mxu1 %v2527_v57 }
  0xe9   :  { %2186 = vmatpush3.bf16.msra.mxu0 %v2366_v43 }
  0xea   :  { %2187 = vmatprep.subr.bf16.mxu0 %v2367_v44 }
  0xeb   :  { %2213 = vmatpush3.bf16.msra.mxu1 %v2378_v7 }
  0xed   :  { %2188 = vmatpush3.bf16.msra.mxu0 %v2368_v47 }
  0xee   :  { %2189 = vmatprep.subr.bf16.mxu0 %v2369_v49 }
  0xf1   :  { %2190 = vmatpush3.bf16.msra.mxu0 %v2370_v50 }
  0xf2   :  { %2191 = vmatprep.subr.bf16.mxu0 %v2371_v51 }
  0xf5   :  { %2192 = vmatpush3.bf16.msra.mxu0 %v2372_v52 }
  0xf6   :  { %2193 = vmatprep.subr.bf16.mxu0 %v2373_v53 }
  0xf9   :  { %2194 = vmatpush3.bf16.msra.mxu0 %v2374_v54  ;;  %v1997_v54 = vld [vmem:[#allocation10] ss:$0 sm:$0xff] }
  0xfc   :  { %1740 = vmatmul.mubr.bf16.vlgmr.msra.gmra.mrb[16].mxu0 %v497_v55 }
 0x14f   :  { %v2019_v59 = vpop.f32.mrb[0].mxu0 }
 0x150   :  { %v2020_v61 = vpop.f32.mrb[1].mxu0 }
 0x151   :  { %v2021_v63 = vadd.f32 %v2020_v61, %v2019_v59  ;;  %v2022_v0 = vpop.f32.mrb[2].mxu0  ;;  %v2041_v1 = vpop.f32.mrb[0].mxu1 }
 0x152   :  { %v2023_v2 = vpop.f32.mrb[3].mxu0  ;;  %v2042_v3 = vpop.f32.mrb[1].mxu1 }
 0x153   :  { %v1422_v34 = vadd.f32 %v2021_v63, %v1851_v60  ;;  %v2043_v4 = vadd.f32 %v2042_v3, %v2041_v1  ;;  %v2044_v5 = vpop.f32.mrb[2].mxu1 }
 0x154   :  { %v2045_v6 = vpop.f32.mrb[3].mxu1 }
 0x155   :  { %v1462_v8 = vadd.f32 %v2043_v4, %v1422_v34 }
 0x16f   :  { %v2063_v9 = vpop.f32.mrb[4].mxu0 }
 0x170   :  { %v2064_v10 = vpop.f32.mrb[5].mxu0 }
 0x171   :  { %v2065_v11 = vadd.f32 %v2064_v10, %v2063_v9  ;;  %v2066_v12 = vpop.f32.mrb[6].mxu0  ;;  %v2085_v13 = vpop.f32.mrb[4].mxu1 }
 0x172   :  { %v2067_v14 = vpop.f32.mrb[7].mxu0  ;;  %v2086_v15 = vpop.f32.mrb[5].mxu1 }
 0x173   :  { %v1502_v16 = vadd.f32 %v2065_v11, %v1462_v8  ;;  %v2087_v17 = vadd.f32 %v2086_v15, %v2085_v13  ;;  %v2088_v18 = vpop.f32.mrb[6].mxu1 }
 0x174   :  { %v2089_v19 = vpop.f32.mrb[7].mxu1 }
 0x175   :  { %v1542_v20 = vadd.f32 %v2087_v17, %v1502_v16 }
 0x18f   :  { %v2107_v21 = vpop.f32.mrb[8].mxu0 }
 0x190   :  { %v2108_v22 = vpop.f32.mrb[9].mxu0 }
 0x191   :  { %v2109_v23 = vadd.f32 %v2108_v22, %v2107_v21  ;;  %v2110_v24 = vpop.f32.mrb[10].mxu0  ;;  %v2129_v25 = vpop.f32.mrb[8].mxu1 }
 0x192   :  { %v2111_v26 = vpop.f32.mrb[11].mxu0  ;;  %v2130_v27 = vpop.f32.mrb[9].mxu1 }
 0x193   :  { %v1582_v28 = vadd.f32 %v2109_v23, %v1542_v20  ;;  %v2131_v29 = vadd.f32 %v2130_v27, %v2129_v25  ;;  %v2132_v30 = vpop.f32.mrb[10].mxu1 }
 0x194   :  { %v2133_v31 = vpop.f32.mrb[11].mxu1 }
 0x195   :  { %v1622_v32 = vadd.f32 %v2131_v29, %v1582_v28 }
 0x1af   :  { %v2151_v33 = vpop.f32.mrb[12].mxu0 }
 0x1b0   :  { %v2152_v35 = vpop.f32.mrb[13].mxu0 }
 0x1b1   :  { %v2153_v36 = vadd.f32 %v2152_v35, %v2151_v33  ;;  %v2154_v37 = vpop.f32.mrb[14].mxu0  ;;  %v2173_v38 = vpop.f32.mrb[12].mxu1 }
 0x1b2   :  { %v2155_v39 = vpop.f32.mrb[15].mxu0  ;;  %v2174_v40 = vpop.f32.mrb[13].mxu1 }
 0x1b3   :  { %v1662_v41 = vadd.f32 %v2153_v36, %v1622_v32  ;;  %v2175_v42 = vadd.f32 %v2174_v40, %v2173_v38  ;;  %v2176_v43 = vpop.f32.mrb[14].mxu1 }
 0x1b4   :  { %v2177_v44 = vpop.f32.mrb[15].mxu1 }
 0x1b5   :  { %v1702_v45 = vadd.f32 %v2175_v42, %v1662_v41 }
 0x1cf   :  { %v2195_v46 = vpop.f32.mrb[16].mxu0 }
 0x1d0   :  { %v2196_v47 = vpop.f32.mrb[17].mxu0 }
 0x1d1   :  { %v2197_v48 = vadd.f32 %v2196_v47, %v2195_v46  ;;  %v2198_v49 = vpop.f32.mrb[18].mxu0 }
 0x1d2   :  { %v2199_v50 = vpop.f32.mrb[19].mxu0 }
 0x1d3   :  { %v1742_v51 = vadd.f32 %v2197_v48, %v1702_v45 }
 0x1d5   :  { %v1747_v52 = vmax.f32 %v1742_v51, 0.0 }
 0x1d7   :  { %v1748_v53 = vpack.c.bf16 %v1747_v52, %v1747_v52 }
 0x1d9   :  { %2215 = vmatmul.mubr.msk.bf16.vlgmr.msra.gmra.mrb[16].mxu1 %vm1788_vm1, %v1748_v53 }
 0x2ac   :  { %v1826_v55 = vpop.f32.mrb[16].mxu1 }
 0x2ad   :  { %v1827_v56 = vadd.f32 %v1997_v54, %v1826_v55  ;;  %v2216_v57 = vpop.f32.mrb[17].mxu1 }
 0x2ae   :  { %v1829_v58 = vpop.f32.mrb[18].mxu1 }
 0x2af   :  { %v2217_v59 = vpop.f32.mrb[19].mxu1  ;;  %1833 = vst.msk [vmem:[#allocation11] sm:$0x3] %vm1832_vm2, %v1827_v56 }
 0x2b0   :  { %2500 = shalt.err (!%p2497_p2)
}
 0x2b1   :  { %s2501_s30 = scalar_lea.hbm %s2663_s5, 32 }
 0x2b2   :  { %p2502_p3 = scmp.ne.s32.totalorder %s2663_s5, %s2501_s30  ;;  %p2505_p4 = scmp.lt.u32.totalorder %s2501_s30, %s2663_s5 }
 0x2b4   :  { %p2507_p5 = pnand %p2505_p4, %p2502_p3 }
 0x2b6   :  { %2510 = shalt.err (!%p2507_p5)
}
 0x2b7   :  { %1843 = dma.vmem_to_hbm [thread:$0]  %s1841_s27, 32, %s2663_s5, [#allocation4]  }
 0x2b8   :  { %2517 = dma.done.wait [#allocation4], 32  }
 0x2b9   :  { %2518 = vsyncadd [#allocation4], 4294967264 }
 0x2ba   :  { %1847 = vsyncpa [#allocation3], 1 }
 0x2bb   :  { %1848 = vsyncpa [#allocation6], 1 }
 0x2bc   :  { %1849 = vsyncpa [#allocation9], 1 }
 0x2bd   :  { %1850 = vsyncpa [#allocation4], 1 }

</bundles_post_ra>
